<compile_context>
chip_gen: v7x
topology: tpu7x:2x2x1
jax: 0.10.0
libtpu: 0.0.40
codegen_flags: <defaults>
</compile_context>

<pallas_src>
import functools

import jax
import jax.numpy as jnp
from jax.experimental import pallas as pl
from jax.experimental.pallas import tpu as pltpu

CP = 128      # padded channel width  (lane dim of every activation / weight tile)
NCP = 128     # padded number of classes (lane-dense logits tile)
COL0 = 8      # interior column offset inside the f32 workspace (8-aligned for f32)


# ---------------------------------------------------------------------------
# Fused kernel: stem conv -> res-block (2 convs + identity) -> GAP -> FC
# One grid step = one image; every activation stays in VMEM.
# ---------------------------------------------------------------------------
def _fused_forward_kernel(x_ref, w_ref, scale_ref, bias_ref, fcw_ref, fcb_ref,
                          o_ref, pad_ref, shift_ref, res_ref,
                          *, h, w, cin, wpad, inv_hw):
    hw = h * w

    # ---- per-step halo re-zeroing: border only; interior is rewritten below.
    pad_ref[0:1, :, :] = jnp.zeros((1, wpad, CP), jnp.float32)
    pad_ref[h + 1:h + 2, :, :] = jnp.zeros((1, wpad, CP), jnp.float32)
    pad_ref[:, COL0 - 1:COL0, :] = jnp.zeros((h + 2, 1, CP), jnp.float32)
    pad_ref[:, COL0 + w:COL0 + w + 1, :] = jnp.zeros((h + 2, 1, CP), jnp.float32)

    def store_interior(act_hwc_f32):
        pad_ref[1:1 + h, COL0:COL0 + w, :] = act_hwc_f32

    def build_shifts():
        # Three column-shifted copies built ONCE per conv (2 misaligned f32
        # reads instead of 6 per-tap ones), cast to bf16 once, reused by the
        # 3 kh rows with aligned slices.
        shift_ref[0] = pad_ref[:, COL0 - 1:COL0 + w - 1, :].astype(jnp.bfloat16)
        shift_ref[1] = pad_ref[:, COL0:COL0 + w, :].astype(jnp.bfloat16)
        shift_ref[2] = pad_ref[:, COL0 + 1:COL0 + w + 1, :].astype(jnp.bfloat16)

    def conv3x3(layer, residual=None, relu=True):
        build_shifts()
        acc = None
        for kh in range(3):
            for kw in range(3):
                # Aligned bf16 slice + layout-free reshape (w is the bf16 tile).
                patch = shift_ref[kw, kh:kh + h, :, :].reshape(hw, CP)
                d = jnp.dot(patch, w_ref[layer * 9 + kh * 3 + kw],
                            preferred_element_type=jnp.float32)
                acc = d if acc is None else acc + d
        # Folded-BN epilogue on the flat (H*W, C) accumulator, all f32 on the VPU.
        y = acc * scale_ref[layer:layer + 1, :] + bias_ref[layer:layer + 1, :]
        if residual is not None:
            y = y + residual
        if relu:
            y = jnp.maximum(y, 0.0)
        return y                                        # (hw, CP) f32

    # ---- input: unpadded (h, w, cin); expand lanes to 128 inside VMEM --------
    store_interior(jnp.zeros((h, w, CP), jnp.float32))   # zero lanes >= cin
    pad_ref[1:1 + h, COL0:COL0 + w, 0:cin] = x_ref[0]    # real image channels

    # ---- stem: conv3x3 -> BN -> ReLU -----------------------------------------
    h0 = conv3x3(0)
    res_ref[...] = h0                                    # f32 residual (bit parity)

    # ---- residual block -------------------------------------------------------
    store_interior(h0.reshape(h, w, CP))
    h1 = conv3x3(1)
    store_interior(h1.reshape(h, w, CP))
    h2 = conv3x3(2, residual=res_ref[...])

    # ---- AdaptiveAvgPool2d(1) + Linear head (lane-dense padded logits) --------
    feat = jnp.sum(h2, axis=0, keepdims=True) * inv_hw                 # (1, CP)
    logits = jnp.dot(feat.astype(jnp.bfloat16), fcw_ref[...],
                     preferred_element_type=jnp.float32) + fcb_ref[...]
    o_ref[0] = logits


# ---------------------------------------------------------------------------
# One-time weight prepack (hoisted out of the per-call forward).
# ---------------------------------------------------------------------------
def prepack_params(params, in_channels):
    width = params["stem_s"].shape[0]
    num_classes = params["fc_b"].shape[0]

    def pack_conv(wc, cin_real):
        wc = wc.reshape(9, cin_real, width)              # tap index = kh*3 + kw
        return jnp.pad(wc, ((0, 0), (0, CP - cin_real), (0, CP - width)))

    conv_w = jnp.concatenate(
        [pack_conv(params["stem_w"], in_channels),
         pack_conv(params["b1_w"], width),
         pack_conv(params["b2_w"], width)], axis=0).astype(jnp.bfloat16)  # (27,CP,CP)

    def pad_vec(v):
        return jnp.pad(v, (0, CP - v.shape[0]))

    scales = jnp.stack([pad_vec(params["stem_s"]), pad_vec(params["b1_s"]),
                        pad_vec(params["b2_s"])]).astype(jnp.float32)     # (3, CP)
    biases = jnp.stack([pad_vec(params["stem_b"]), pad_vec(params["b1_b"]),
                        pad_vec(params["b2_b"])]).astype(jnp.float32)     # (3, CP)
    fc_w = jnp.pad(params["fc_w"],
                   ((0, CP - width), (0, NCP - num_classes))).astype(jnp.bfloat16)
    fc_b = jnp.pad(params["fc_b"],
                   (0, NCP - num_classes)).reshape(1, NCP).astype(jnp.float32)

    packed = {"conv_w": conv_w, "scales": scales, "biases": biases,
              "fc_w": fc_w, "fc_b": fc_b}
    return jax.device_put(packed), num_classes


# ---------------------------------------------------------------------------
# Forward wrapper: layout plumbing + single fused pallas_call.
# ---------------------------------------------------------------------------
@functools.partial(jax.jit, static_argnames=("num_classes",))
def bengali_classifier_forward(packed, x_nchw, *, num_classes):
    n, cin, h, w = x_nchw.shape
    hw = h * w
    wpad = w + 2 * COL0                                   # zero | data | zero columns

    # NCHW -> NHWC (free reshape for cin == 1); NO channel padding in HBM.
    x = jnp.transpose(x_nchw, (0, 2, 3, 1)).astype(jnp.float32)

    kernel = functools.partial(_fused_forward_kernel,
                               h=h, w=w, cin=cin, wpad=wpad, inv_hw=1.0 / hw)

    out = pl.pallas_call(
        kernel,
        out_shape=jax.ShapeDtypeStruct((n, 1, NCP), jnp.float32),
        grid=(n,),
        in_specs=[
            pl.BlockSpec((1, h, w, cin), lambda i: (i, 0, 0, 0)),  # image i (unpadded)
            pl.BlockSpec((27, CP, CP), lambda i: (0, 0, 0)),       # conv weights (3x9 taps)
            pl.BlockSpec((3, CP), lambda i: (0, 0)),               # folded-BN scales
            pl.BlockSpec((3, CP), lambda i: (0, 0)),               # folded-BN biases
            pl.BlockSpec((CP, NCP), lambda i: (0, 0)),             # classifier weight
            pl.BlockSpec((1, NCP), lambda i: (0, 0)),              # classifier bias
        ],
        out_specs=pl.BlockSpec((1, 1, NCP), lambda i: (i, 0, 0)),
        scratch_shapes=[
            pltpu.VMEM((h + 2, wpad, CP), jnp.float32),     # zero-halo activation workspace
            pltpu.VMEM((3, h + 2, w, CP), jnp.bfloat16),    # column-shifted bf16 copies
            pltpu.VMEM((hw, CP), jnp.float32),              # stem output (residual)
        ],
        compiler_params=pltpu.CompilerParams(
            dimension_semantics=("parallel",),              # v7x: one image per TensorCore
            vmem_limit_bytes=32 * 1024 * 1024,
        ),
    )(x, packed["conv_w"], packed["scales"], packed["biases"],
      packed["fc_w"], packed["fc_b"])

    return out[:, 0, :num_classes]


# ---------------------------------------------------------------------------
# Parameters + pure-JAX reference (matched bf16-operand / f32-accumulate math)
# ---------------------------------------------------------------------------
def init_params(key, in_channels, width, num_classes):
    ks = jax.random.split(key, 7)

    def conv_w(k, cin, cout):
        fan_in = 3 * 3 * cin
        return jax.random.normal(k, (3, 3, cin, cout), jnp.float32) * (2.0 / fan_in) ** 0.5

    def bn(k, c):
        s, b = jax.random.split(k)
        return (1.0 + 0.1 * jax.random.normal(s, (c,), jnp.float32),
                0.1 * jax.random.normal(b, (c,), jnp.float32))

    stem_s, stem_b = bn(ks[1], width)
    b1_s, b1_b = bn(ks[3], width)
    b2_s, b2_b = bn(ks[5], width)
    return {
        "stem_w": conv_w(ks[0], in_channels, width), "stem_s": stem_s, "stem_b": stem_b,
        "b1_w": conv_w(ks[2], width, width), "b1_s": b1_s, "b1_b": b1_b,
        "b2_w": conv_w(ks[4], width, width), "b2_s": b2_s, "b2_b": b2_b,
        "fc_w": jax.random.normal(ks[6], (width, num_classes), jnp.float32) * (1.0 / width) ** 0.5,
        "fc_b": jnp.zeros((num_classes,), jnp.float32),
    }


def reference_forward(params, x_nchw):
    # Pure-JAX reference using the same precision recipe as the kernel
    # (bf16 matmul operands, f32 accumulation, f32 epilogues).
    x = jnp.transpose(x_nchw, (0, 2, 3, 1)).astype(jnp.float32)

    def conv(inp, wts):
        return jax.lax.conv_general_dilated(
            inp.astype(jnp.bfloat16), wts.astype(jnp.bfloat16), (1, 1), "SAME",
            dimension_numbers=("NHWC", "HWIO", "NHWC"),
            preferred_element_type=jnp.float32)

    h0 = jnp.maximum(conv(x, params["stem_w"]) * params["stem_s"] + params["stem_b"], 0.0)
    h1 = jnp.maximum(conv(h0, params["b1_w"]) * params["b1_s"] + params["b1_b"], 0.0)
    h2 = jnp.maximum(conv(h1, params["b2_w"]) * params["b2_s"] + params["b2_b"] + h0, 0.0)
    feat = jnp.mean(h2, axis=(1, 2))
    return (jnp.dot(feat.astype(jnp.bfloat16), params["fc_w"].astype(jnp.bfloat16),
                    preferred_element_type=jnp.float32) + params["fc_b"])


if __name__ == "__main__":
    key = jax.random.PRNGKey(0)
    kx, kp = jax.random.split(key)

    N, CIN, H, W = 2, 1, 16, 16          # PyTorch-style NCHW input, in_channels=1
    WIDTH, NUM_CLASSES = 8, 16

    x = jax.random.normal(kx, (N, CIN, H, W), jnp.float32)
    params = init_params(kp, CIN, WIDTH, NUM_CLASSES)

    packed, num_classes = prepack_params(params, CIN)    # one-time weight prepack

    out = jax.block_until_ready(
        bengali_classifier_forward(packed, x, num_classes=num_classes))
    assert out.shape == (N, NUM_CLASSES)

    ref = reference_forward(params, x)
    max_err = float(jnp.max(jnp.abs(out - ref)))
    assert max_err < 1e-2, f"mismatch vs reference: {max_err}"

    print("KERNEL_OK")
</pallas_src>

<mosaic_0001>
module attributes {stable_mosaic.version = 11 : i64} {
  func.func @_fused_forward_kernel(%arg0: i32, %arg1: memref<1x16x16x1xf32, #tpu.memory_space<vmem>>, %arg2: memref<27x128x128xbf16, #tpu.memory_space<vmem>>, %arg3: memref<3x128xf32, #tpu.memory_space<vmem>>, %arg4: memref<3x128xf32, #tpu.memory_space<vmem>>, %arg5: memref<128x128xbf16, #tpu.memory_space<vmem>>, %arg6: memref<1x128xf32, #tpu.memory_space<vmem>>, %arg7: memref<1x1x128xf32, #tpu.memory_space<vmem>>, %arg8: memref<18x32x128xf32, #tpu.memory_space<vmem>>, %arg9: memref<3x18x16x128xbf16, #tpu.memory_space<vmem>>, %arg10: memref<256x128xf32, #tpu.memory_space<vmem>>) attributes {dimension_semantics = [#tpu.dimension_semantics<parallel>], iteration_bounds = array<i64: 2>, scalar_prefetch = 0 : i64, scratch_operands = 3 : i64, tpu.core_type = #tpu.core_type<tc>, window_params = [{transform_indices = @transform_0, window_bounds = array<i64: 1, 16, 16, 1>}, {pipeline_mode = #tpu.pipeline_mode<synchronous>, transform_indices = @transform_1, window_bounds = array<i64: 27, 128, 128>}, {pipeline_mode = #tpu.pipeline_mode<synchronous>, transform_indices = @transform_2, window_bounds = array<i64: 3, 128>}, {pipeline_mode = #tpu.pipeline_mode<synchronous>, transform_indices = @transform_3, window_bounds = array<i64: 3, 128>}, {pipeline_mode = #tpu.pipeline_mode<synchronous>, transform_indices = @transform_4, window_bounds = array<i64: 128, 128>}, {pipeline_mode = #tpu.pipeline_mode<synchronous>, transform_indices = @transform_5, window_bounds = array<i64: 1, 128>}, {transform_indices = @transform_6, window_bounds = array<i64: 1, 1, 128>}]} {
    %cst = arith.constant 0.000000e+00 : f32
    %0 = vector.broadcast %cst : f32 to vector<1x32x128xf32>
    %c0 = arith.constant 0 : index
    %c0_0 = arith.constant 0 : index
    %c0_1 = arith.constant 0 : index
    %1 = vector.load %arg8[%c0, %c0_0, %c0_1] : memref<18x32x128xf32, #tpu.memory_space<vmem>>, vector<1x32x128xf32>
    tpu.vector_store %arg8[%c0, %c0_0, %c0_1], %0 {strides = array<i32>} : memref<18x32x128xf32, #tpu.memory_space<vmem>>, vector<1x32x128xf32>,
    %cst_2 = arith.constant 0.000000e+00 : f32
    %2 = vector.broadcast %cst_2 : f32 to vector<1x32x128xf32>
    %c17 = arith.constant 17 : index
    %c0_3 = arith.constant 0 : index
    %c0_4 = arith.constant 0 : index
    %3 = vector.load %arg8[%c17, %c0_3, %c0_4] : memref<18x32x128xf32, #tpu.memory_space<vmem>>, vector<1x32x128xf32>
    tpu.vector_store %arg8[%c17, %c0_3, %c0_4], %2 {strides = array<i32>} : memref<18x32x128xf32, #tpu.memory_space<vmem>>, vector<1x32x128xf32>,
    %cst_5 = arith.constant 0.000000e+00 : f32
    %4 = vector.broadcast %cst_5 : f32 to vector<18x1x128xf32>
    %c0_6 = arith.constant 0 : index
    %c7 = arith.constant 7 : index
    %c0_7 = arith.constant 0 : index
    %5 = vector.load %arg8[%c0_6, %c7, %c0_7] : memref<18x32x128xf32, #tpu.memory_space<vmem>>, vector<18x1x128xf32>
    tpu.vector_store %arg8[%c0_6, %c7, %c0_7], %4 {strides = array<i32>} : memref<18x32x128xf32, #tpu.memory_space<vmem>>, vector<18x1x128xf32>,
    %cst_8 = arith.constant 0.000000e+00 : f32
    %6 = vector.broadcast %cst_8 : f32 to vector<18x1x128xf32>
    %c0_9 = arith.constant 0 : index
    %c24 = arith.constant 24 : index
    %c0_10 = arith.constant 0 : index
    %7 = vector.load %arg8[%c0_9, %c24, %c0_10] : memref<18x32x128xf32, #tpu.memory_space<vmem>>, vector<18x1x128xf32>
    tpu.vector_store %arg8[%c0_9, %c24, %c0_10], %6 {strides = array<i32>} : memref<18x32x128xf32, #tpu.memory_space<vmem>>, vector<18x1x128xf32>,
    %cst_11 = arith.constant 0.000000e+00 : f32
    %8 = vector.broadcast %cst_11 : f32 to vector<16x16x128xf32>
    %c1 = arith.constant 1 : index
    %c8 = arith.constant 8 : index
    %c0_12 = arith.constant 0 : index
    %9 = vector.load %arg8[%c1, %c8, %c0_12] : memref<18x32x128xf32, #tpu.memory_space<vmem>>, vector<16x16x128xf32>
    tpu.vector_store %arg8[%c1, %c8, %c0_12], %8 {strides = array<i32>} : memref<18x32x128xf32, #tpu.memory_space<vmem>>, vector<16x16x128xf32>,
    %c0_13 = arith.constant 0 : index
    %c0_14 = arith.constant 0 : index
    %c0_15 = arith.constant 0 : index
    %c0_16 = arith.constant 0 : index
    %10 = vector.load %arg1[%c0_13, %c0_14, %c0_15, %c0_16] : memref<1x16x16x1xf32, #tpu.memory_space<vmem>>, vector<1x16x16x1xf32>
    %11 = vector.shape_cast %10 : vector<1x16x16x1xf32> to vector<16x16x1xf32>
    %c1_17 = arith.constant 1 : index
    %c8_18 = arith.constant 8 : index
    %c0_19 = arith.constant 0 : index
    %12 = vector.load %arg8[%c1_17, %c8_18, %c0_19] : memref<18x32x128xf32, #tpu.memory_space<vmem>>, vector<16x16x1xf32>
    tpu.vector_store %arg8[%c1_17, %c8_18, %c0_19], %11 {strides = array<i32>} : memref<18x32x128xf32, #tpu.memory_space<vmem>>, vector<16x16x1xf32>,
    %c0_20 = arith.constant 0 : index
    %c7_21 = arith.constant 7 : index
    %c0_22 = arith.constant 0 : index
    %13 = vector.load %arg8[%c0_20, %c7_21, %c0_22] : memref<18x32x128xf32, #tpu.memory_space<vmem>>, vector<18x16x128xf32>
    %14 = arith.truncf %13 : vector<18x16x128xf32> to vector<18x16x128xbf16>
    %c0_23 = arith.constant 0 : index
    %c0_24 = arith.constant 0 : index
    %c0_25 = arith.constant 0 : index
    %c0_26 = arith.constant 0 : index
    %15 = vector.load %arg9[%c0_23, %c0_24, %c0_25, %c0_26] : memref<3x18x16x128xbf16, #tpu.memory_space<vmem>>, vector<1x18x16x128xbf16>
    %16 = vector.shape_cast %15 : vector<1x18x16x128xbf16> to vector<18x16x128xbf16>
    %17 = vector.shape_cast %14 : vector<18x16x128xbf16> to vector<1x18x16x128xbf16>
    tpu.vector_store %arg9[%c0_23, %c0_24, %c0_25, %c0_26], %17 {strides = array<i32>} : memref<3x18x16x128xbf16, #tpu.memory_space<vmem>>, vector<1x18x16x128xbf16>,
    %c0_27 = arith.constant 0 : index
    %c8_28 = arith.constant 8 : index
    %c0_29 = arith.constant 0 : index
    %18 = vector.load %arg8[%c0_27, %c8_28, %c0_29] : memref<18x32x128xf32, #tpu.memory_space<vmem>>, vector<18x16x128xf32>
    %19 = arith.truncf %18 : vector<18x16x128xf32> to vector<18x16x128xbf16>
    %c1_30 = arith.constant 1 : index
    %c0_31 = arith.constant 0 : index
    %c0_32 = arith.constant 0 : index
    %c0_33 = arith.constant 0 : index
    %20 = vector.load %arg9[%c1_30, %c0_31, %c0_32, %c0_33] : memref<3x18x16x128xbf16, #tpu.memory_space<vmem>>, vector<1x18x16x128xbf16>
    %21 = vector.shape_cast %20 : vector<1x18x16x128xbf16> to vector<18x16x128xbf16>
    %22 = vector.shape_cast %19 : vector<18x16x128xbf16> to vector<1x18x16x128xbf16>
    tpu.vector_store %arg9[%c1_30, %c0_31, %c0_32, %c0_33], %22 {strides = array<i32>} : memref<3x18x16x128xbf16, #tpu.memory_space<vmem>>, vector<1x18x16x128xbf16>,
    %c0_34 = arith.constant 0 : index
    %c9 = arith.constant 9 : index
    %c0_35 = arith.constant 0 : index
    %23 = vector.load %arg8[%c0_34, %c9, %c0_35] : memref<18x32x128xf32, #tpu.memory_space<vmem>>, vector<18x16x128xf32>
    %24 = arith.truncf %23 : vector<18x16x128xf32> to vector<18x16x128xbf16>
    %c2 = arith.constant 2 : index
    %c0_36 = arith.constant 0 : index
    %c0_37 = arith.constant 0 : index
    %c0_38 = arith.constant 0 : index
    %25 = vector.load %arg9[%c2, %c0_36, %c0_37, %c0_38] : memref<3x18x16x128xbf16, #tpu.memory_space<vmem>>, vector<1x18x16x128xbf16>
    %26 = vector.shape_cast %25 : vector<1x18x16x128xbf16> to vector<18x16x128xbf16>
    %27 = vector.shape_cast %24 : vector<18x16x128xbf16> to vector<1x18x16x128xbf16>
    tpu.vector_store %arg9[%c2, %c0_36, %c0_37, %c0_38], %27 {strides = array<i32>} : memref<3x18x16x128xbf16, #tpu.memory_space<vmem>>, vector<1x18x16x128xbf16>,
    %c0_39 = arith.constant 0 : index
    %c0_40 = arith.constant 0 : index
    %c0_41 = arith.constant 0 : index
    %c0_42 = arith.constant 0 : index
    %28 = vector.load %arg9[%c0_39, %c0_40, %c0_41, %c0_42] : memref<3x18x16x128xbf16, #tpu.memory_space<vmem>>, vector<1x16x16x128xbf16>
    %29 = vector.shape_cast %28 : vector<1x16x16x128xbf16> to vector<16x16x128xbf16>
    %30 = vector.shape_cast %29 : vector<16x16x128xbf16> to vector<256x128xbf16>
    %c0_43 = arith.constant 0 : index
    %c0_44 = arith.constant 0 : index
    %c0_45 = arith.constant 0 : index
    %31 = vector.load %arg2[%c0_43, %c0_44, %c0_45] : memref<27x128x128xbf16, #tpu.memory_space<vmem>>, vector<1x128x128xbf16>
    %32 = vector.shape_cast %31 : vector<1x128x128xbf16> to vector<128x128xbf16>
    %cst_46 = arith.constant dense<0.000000e+00> : vector<256x128xf32>
    %33 = tpu.matmul %30, %32, %cst_46 {dimension_numbers = #tpu.dot_dimension_numbers<[1], [0], [0], [1], [0, 0, 1, 1], [], []>} : vector<256x128xbf16>, vector<128x128xbf16>, vector<256x128xf32> -> vector<256x128xf32>
    %c1_47 = arith.constant 1 : index
    %c0_48 = arith.constant 0 : index
    %c0_49 = arith.constant 0 : index
    %c0_50 = arith.constant 0 : index
    %34 = vector.load %arg9[%c1_47, %c0_48, %c0_49, %c0_50] : memref<3x18x16x128xbf16, #tpu.memory_space<vmem>>, vector<1x16x16x128xbf16>
    %35 = vector.shape_cast %34 : vector<1x16x16x128xbf16> to vector<16x16x128xbf16>
    %36 = vector.shape_cast %35 : vector<16x16x128xbf16> to vector<256x128xbf16>
    %c1_51 = arith.constant 1 : index
    %c0_52 = arith.constant 0 : index
    %c0_53 = arith.constant 0 : index
    %37 = vector.load %arg2[%c1_51, %c0_52, %c0_53] : memref<27x128x128xbf16, #tpu.memory_space<vmem>>, vector<1x128x128xbf16>
    %38 = vector.shape_cast %37 : vector<1x128x128xbf16> to vector<128x128xbf16>
    %cst_54 = arith.constant dense<0.000000e+00> : vector<256x128xf32>
    %39 = tpu.matmul %36, %38, %cst_54 {dimension_numbers = #tpu.dot_dimension_numbers<[1], [0], [0], [1], [0, 0, 1, 1], [], []>} : vector<256x128xbf16>, vector<128x128xbf16>, vector<256x128xf32> -> vector<256x128xf32>
    %40 = arith.addf %33, %39 : vector<256x128xf32>
    %c2_55 = arith.constant 2 : index
    %c0_56 = arith.constant 0 : index
    %c0_57 = arith.constant 0 : index
    %c0_58 = arith.constant 0 : index
    %41 = vector.load %arg9[%c2_55, %c0_56, %c0_57, %c0_58] : memref<3x18x16x128xbf16, #tpu.memory_space<vmem>>, vector<1x16x16x128xbf16>
    %42 = vector.shape_cast %41 : vector<1x16x16x128xbf16> to vector<16x16x128xbf16>
    %43 = vector.shape_cast %42 : vector<16x16x128xbf16> to vector<256x128xbf16>
    %c2_59 = arith.constant 2 : index
    %c0_60 = arith.constant 0 : index
    %c0_61 = arith.constant 0 : index
    %44 = vector.load %arg2[%c2_59, %c0_60, %c0_61] : memref<27x128x128xbf16, #tpu.memory_space<vmem>>, vector<1x128x128xbf16>
    %45 = vector.shape_cast %44 : vector<1x128x128xbf16> to vector<128x128xbf16>
    %cst_62 = arith.constant dense<0.000000e+00> : vector<256x128xf32>
    %46 = tpu.matmul %43, %45, %cst_62 {dimension_numbers = #tpu.dot_dimension_numbers<[1], [0], [0], [1], [0, 0, 1, 1], [], []>} : vector<256x128xbf16>, vector<128x128xbf16>, vector<256x128xf32> -> vector<256x128xf32>
    %47 = arith.addf %40, %46 : vector<256x128xf32>
    %c0_63 = arith.constant 0 : index
    %c1_64 = arith.constant 1 : index
    %c0_65 = arith.constant 0 : index
    %c0_66 = arith.constant 0 : index
    %48 = vector.load %arg9[%c0_63, %c1_64, %c0_65, %c0_66] : memref<3x18x16x128xbf16, #tpu.memory_space<vmem>>, vector<1x16x16x128xbf16>
    %49 = vector.shape_cast %48 : vector<1x16x16x128xbf16> to vector<16x16x128xbf16>
    %50 = vector.shape_cast %49 : vector<16x16x128xbf16> to vector<256x128xbf16>
    %c3 = arith.constant 3 : index
    %c0_67 = arith.constant 0 : index
    %c0_68 = arith.constant 0 : index
    %51 = vector.load %arg2[%c3, %c0_67, %c0_68] : memref<27x128x128xbf16, #tpu.memory_space<vmem>>, vector<1x128x128xbf16>
    %52 = vector.shape_cast %51 : vector<1x128x128xbf16> to vector<128x128xbf16>
    %cst_69 = arith.constant dense<0.000000e+00> : vector<256x128xf32>
    %53 = tpu.matmul %50, %52, %cst_69 {dimension_numbers = #tpu.dot_dimension_numbers<[1], [0], [0], [1], [0, 0, 1, 1], [], []>} : vector<256x128xbf16>, vector<128x128xbf16>, vector<256x128xf32> -> vector<256x128xf32>
    %54 = arith.addf %47, %53 : vector<256x128xf32>
    %c1_70 = arith.constant 1 : index
    %c1_71 = arith.constant 1 : index
    %c0_72 = arith.constant 0 : index
    %c0_73 = arith.constant 0 : index
    %55 = vector.load %arg9[%c1_70, %c1_71, %c0_72, %c0_73] : memref<3x18x16x128xbf16, #tpu.memory_space<vmem>>, vector<1x16x16x128xbf16>
    %56 = vector.shape_cast %55 : vector<1x16x16x128xbf16> to vector<16x16x128xbf16>
    %57 = vector.shape_cast %56 : vector<16x16x128xbf16> to vector<256x128xbf16>
    %c4 = arith.constant 4 : index
    %c0_74 = arith.constant 0 : index
    %c0_75 = arith.constant 0 : index
    %58 = vector.load %arg2[%c4, %c0_74, %c0_75] : memref<27x128x128xbf16, #tpu.memory_space<vmem>>, vector<1x128x128xbf16>
    %59 = vector.shape_cast %58 : vector<1x128x128xbf16> to vector<128x128xbf16>
    %cst_76 = arith.constant dense<0.000000e+00> : vector<256x128xf32>
    %60 = tpu.matmul %57, %59, %cst_76 {dimension_numbers = #tpu.dot_dimension_numbers<[1], [0], [0], [1], [0, 0, 1, 1], [], []>} : vector<256x128xbf16>, vector<128x128xbf16>, vector<256x128xf32> -> vector<256x128xf32>
    %61 = arith.addf %54, %60 : vector<256x128xf32>
    %c2_77 = arith.constant 2 : index
    %c1_78 = arith.constant 1 : index
    %c0_79 = arith.constant 0 : index
    %c0_80 = arith.constant 0 : index
    %62 = vector.load %arg9[%c2_77, %c1_78, %c0_79, %c0_80] : memref<3x18x16x128xbf16, #tpu.memory_space<vmem>>, vector<1x16x16x128xbf16>
    %63 = vector.shape_cast %62 : vector<1x16x16x128xbf16> to vector<16x16x128xbf16>
    %64 = vector.shape_cast %63 : vector<16x16x128xbf16> to vector<256x128xbf16>
    %c5 = arith.constant 5 : index
    %c0_81 = arith.constant 0 : index
    %c0_82 = arith.constant 0 : index
    %65 = vector.load %arg2[%c5, %c0_81, %c0_82] : memref<27x128x128xbf16, #tpu.memory_space<vmem>>, vector<1x128x128xbf16>
    %66 = vector.shape_cast %65 : vector<1x128x128xbf16> to vector<128x128xbf16>
    %cst_83 = arith.constant dense<0.000000e+00> : vector<256x128xf32>
    %67 = tpu.matmul %64, %66, %cst_83 {dimension_numbers = #tpu.dot_dimension_numbers<[1], [0], [0], [1], [0, 0, 1, 1], [], []>} : vector<256x128xbf16>, vector<128x128xbf16>, vector<256x128xf32> -> vector<256x128xf32>
    %68 = arith.addf %61, %67 : vector<256x128xf32>
    %c0_84 = arith.constant 0 : index
    %c2_85 = arith.constant 2 : index
    %c0_86 = arith.constant 0 : index
    %c0_87 = arith.constant 0 : index
    %69 = vector.load %arg9[%c0_84, %c2_85, %c0_86, %c0_87] : memref<3x18x16x128xbf16, #tpu.memory_space<vmem>>, vector<1x16x16x128xbf16>
    %70 = vector.shape_cast %69 : vector<1x16x16x128xbf16> to vector<16x16x128xbf16>
    %71 = vector.shape_cast %70 : vector<16x16x128xbf16> to vector<256x128xbf16>
    %c6 = arith.constant 6 : index
    %c0_88 = arith.constant 0 : index
    %c0_89 = arith.constant 0 : index
    %72 = vector.load %arg2[%c6, %c0_88, %c0_89] : memref<27x128x128xbf16, #tpu.memory_space<vmem>>, vector<1x128x128xbf16>
    %73 = vector.shape_cast %72 : vector<1x128x128xbf16> to vector<128x128xbf16>
    %cst_90 = arith.constant dense<0.000000e+00> : vector<256x128xf32>
    %74 = tpu.matmul %71, %73, %cst_90 {dimension_numbers = #tpu.dot_dimension_numbers<[1], [0], [0], [1], [0, 0, 1, 1], [], []>} : vector<256x128xbf16>, vector<128x128xbf16>, vector<256x128xf32> -> vector<256x128xf32>
    %75 = arith.addf %68, %74 : vector<256x128xf32>
    %c1_91 = arith.constant 1 : index
    %c2_92 = arith.constant 2 : index
    %c0_93 = arith.constant 0 : index
    %c0_94 = arith.constant 0 : index
    %76 = vector.load %arg9[%c1_91, %c2_92, %c0_93, %c0_94] : memref<3x18x16x128xbf16, #tpu.memory_space<vmem>>, vector<1x16x16x128xbf16>
    %77 = vector.shape_cast %76 : vector<1x16x16x128xbf16> to vector<16x16x128xbf16>
    %78 = vector.shape_cast %77 : vector<16x16x128xbf16> to vector<256x128xbf16>
    %c7_95 = arith.constant 7 : index
    %c0_96 = arith.constant 0 : index
    %c0_97 = arith.constant 0 : index
    %79 = vector.load %arg2[%c7_95, %c0_96, %c0_97] : memref<27x128x128xbf16, #tpu.memory_space<vmem>>, vector<1x128x128xbf16>
    %80 = vector.shape_cast %79 : vector<1x128x128xbf16> to vector<128x128xbf16>
    %cst_98 = arith.constant dense<0.000000e+00> : vector<256x128xf32>
    %81 = tpu.matmul %78, %80, %cst_98 {dimension_numbers = #tpu.dot_dimension_numbers<[1], [0], [0], [1], [0, 0, 1, 1], [], []>} : vector<256x128xbf16>, vector<128x128xbf16>, vector<256x128xf32> -> vector<256x128xf32>
    %82 = arith.addf %75, %81 : vector<256x128xf32>
    %c2_99 = arith.constant 2 : index
    %c2_100 = arith.constant 2 : index
    %c0_101 = arith.constant 0 : index
    %c0_102 = arith.constant 0 : index
    %83 = vector.load %arg9[%c2_99, %c2_100, %c0_101, %c0_102] : memref<3x18x16x128xbf16, #tpu.memory_space<vmem>>, vector<1x16x16x128xbf16>
    %84 = vector.shape_cast %83 : vector<1x16x16x128xbf16> to vector<16x16x128xbf16>
    %85 = vector.shape_cast %84 : vector<16x16x128xbf16> to vector<256x128xbf16>
    %c8_103 = arith.constant 8 : index
    %c0_104 = arith.constant 0 : index
    %c0_105 = arith.constant 0 : index
    %86 = vector.load %arg2[%c8_103, %c0_104, %c0_105] : memref<27x128x128xbf16, #tpu.memory_space<vmem>>, vector<1x128x128xbf16>
    %87 = vector.shape_cast %86 : vector<1x128x128xbf16> to vector<128x128xbf16>
    %cst_106 = arith.constant dense<0.000000e+00> : vector<256x128xf32>
    %88 = tpu.matmul %85, %87, %cst_106 {dimension_numbers = #tpu.dot_dimension_numbers<[1], [0], [0], [1], [0, 0, 1, 1], [], []>} : vector<256x128xbf16>, vector<128x128xbf16>, vector<256x128xf32> -> vector<256x128xf32>
    %89 = arith.addf %82, %88 : vector<256x128xf32>
    %c0_107 = arith.constant 0 : index
    %c0_108 = arith.constant 0 : index
    %90 = vector.load %arg3[%c0_107, %c0_108] : memref<3x128xf32, #tpu.memory_space<vmem>>, vector<1x128xf32>
    %91 = vector.broadcast %90 : vector<1x128xf32> to vector<256x128xf32>
    %92 = arith.mulf %89, %91 : vector<256x128xf32>
    %c0_109 = arith.constant 0 : index
    %c0_110 = arith.constant 0 : index
    %93 = vector.load %arg4[%c0_109, %c0_110] : memref<3x128xf32, #tpu.memory_space<vmem>>, vector<1x128xf32>
    %94 = vector.broadcast %93 : vector<1x128xf32> to vector<256x128xf32>
    %95 = arith.addf %92, %94 : vector<256x128xf32>
    %cst_111 = arith.constant 0.000000e+00 : f32
    %96 = vector.broadcast %cst_111 : f32 to vector<256x128xf32>
    %97 = arith.maximumf %95, %96 : vector<256x128xf32>
    %c0_112 = arith.constant 0 : index
    %c0_113 = arith.constant 0 : index
    %98 = vector.load %arg10[%c0_112, %c0_113] : memref<256x128xf32, #tpu.memory_space<vmem>>, vector<256x128xf32>
    tpu.vector_store %arg10[%c0_112, %c0_113], %97 {strides = array<i32>} : memref<256x128xf32, #tpu.memory_space<vmem>>, vector<256x128xf32>,
    %99 = vector.shape_cast %97 : vector<256x128xf32> to vector<16x16x128xf32>
    %c1_114 = arith.constant 1 : index
    %c8_115 = arith.constant 8 : index
    %c0_116 = arith.constant 0 : index
    %100 = vector.load %arg8[%c1_114, %c8_115, %c0_116] : memref<18x32x128xf32, #tpu.memory_space<vmem>>, vector<16x16x128xf32>
    tpu.vector_store %arg8[%c1_114, %c8_115, %c0_116], %99 {strides = array<i32>} : memref<18x32x128xf32, #tpu.memory_space<vmem>>, vector<16x16x128xf32>,
    %c0_117 = arith.constant 0 : index
    %c7_118 = arith.constant 7 : index
    %c0_119 = arith.constant 0 : index
    %101 = vector.load %arg8[%c0_117, %c7_118, %c0_119] : memref<18x32x128xf32, #tpu.memory_space<vmem>>, vector<18x16x128xf32>
    %102 = arith.truncf %101 : vector<18x16x128xf32> to vector<18x16x128xbf16>
    %c0_120 = arith.constant 0 : index
    %c0_121 = arith.constant 0 : index
    %c0_122 = arith.constant 0 : index
    %c0_123 = arith.constant 0 : index
    %103 = vector.load %arg9[%c0_120, %c0_121, %c0_122, %c0_123] : memref<3x18x16x128xbf16, #tpu.memory_space<vmem>>, vector<1x18x16x128xbf16>
    %104 = vector.shape_cast %103 : vector<1x18x16x128xbf16> to vector<18x16x128xbf16>
    %105 = vector.shape_cast %102 : vector<18x16x128xbf16> to vector<1x18x16x128xbf16>
    tpu.vector_store %arg9[%c0_120, %c0_121, %c0_122, %c0_123], %105 {strides = array<i32>} : memref<3x18x16x128xbf16, #tpu.memory_space<vmem>>, vector<1x18x16x128xbf16>,
    %c0_124 = arith.constant 0 : index
    %c8_125 = arith.constant 8 : index
    %c0_126 = arith.constant 0 : index
    %106 = vector.load %arg8[%c0_124, %c8_125, %c0_126] : memref<18x32x128xf32, #tpu.memory_space<vmem>>, vector<18x16x128xf32>
    %107 = arith.truncf %106 : vector<18x16x128xf32> to vector<18x16x128xbf16>
    %c1_127 = arith.constant 1 : index
    %c0_128 = arith.constant 0 : index
    %c0_129 = arith.constant 0 : index
    %c0_130 = arith.constant 0 : index
    %108 = vector.load %arg9[%c1_127, %c0_128, %c0_129, %c0_130] : memref<3x18x16x128xbf16, #tpu.memory_space<vmem>>, vector<1x18x16x128xbf16>
    %109 = vector.shape_cast %108 : vector<1x18x16x128xbf16> to vector<18x16x128xbf16>
    %110 = vector.shape_cast %107 : vector<18x16x128xbf16> to vector<1x18x16x128xbf16>
    tpu.vector_store %arg9[%c1_127, %c0_128, %c0_129, %c0_130], %110 {strides = array<i32>} : memref<3x18x16x128xbf16, #tpu.memory_space<vmem>>, vector<1x18x16x128xbf16>,
    %c0_131 = arith.constant 0 : index
    %c9_132 = arith.constant 9 : index
    %c0_133 = arith.constant 0 : index
    %111 = vector.load %arg8[%c0_131, %c9_132, %c0_133] : memref<18x32x128xf32, #tpu.memory_space<vmem>>, vector<18x16x128xf32>
    %112 = arith.truncf %111 : vector<18x16x128xf32> to vector<18x16x128xbf16>
    %c2_134 = arith.constant 2 : index
    %c0_135 = arith.constant 0 : index
    %c0_136 = arith.constant 0 : index
    %c0_137 = arith.constant 0 : index
    %113 = vector.load %arg9[%c2_134, %c0_135, %c0_136, %c0_137] : memref<3x18x16x128xbf16, #tpu.memory_space<vmem>>, vector<1x18x16x128xbf16>
    %114 = vector.shape_cast %113 : vector<1x18x16x128xbf16> to vector<18x16x128xbf16>
    %115 = vector.shape_cast %112 : vector<18x16x128xbf16> to vector<1x18x16x128xbf16>
    tpu.vector_store %arg9[%c2_134, %c0_135, %c0_136, %c0_137], %115 {strides = array<i32>} : memref<3x18x16x128xbf16, #tpu.memory_space<vmem>>, vector<1x18x16x128xbf16>,
    %c0_138 = arith.constant 0 : index
    %c0_139 = arith.constant 0 : index
    %c0_140 = arith.constant 0 : index
    %c0_141 = arith.constant 0 : index
    %116 = vector.load %arg9[%c0_138, %c0_139, %c0_140, %c0_141] : memref<3x18x16x128xbf16, #tpu.memory_space<vmem>>, vector<1x16x16x128xbf16>
    %117 = vector.shape_cast %116 : vector<1x16x16x128xbf16> to vector<16x16x128xbf16>
    %118 = vector.shape_cast %117 : vector<16x16x128xbf16> to vector<256x128xbf16>
    %c9_142 = arith.constant 9 : index
    %c0_143 = arith.constant 0 : index
    %c0_144 = arith.constant 0 : index
    %119 = vector.load %arg2[%c9_142, %c0_143, %c0_144] : memref<27x128x128xbf16, #tpu.memory_space<vmem>>, vector<1x128x128xbf16>
    %120 = vector.shape_cast %119 : vector<1x128x128xbf16> to vector<128x128xbf16>
    %cst_145 = arith.constant dense<0.000000e+00> : vector<256x128xf32>
    %121 = tpu.matmul %118, %120, %cst_145 {dimension_numbers = #tpu.dot_dimension_numbers<[1], [0], [0], [1], [0, 0, 1, 1], [], []>} : vector<256x128xbf16>, vector<128x128xbf16>, vector<256x128xf32> -> vector<256x128xf32>
    %c1_146 = arith.constant 1 : index
    %c0_147 = arith.constant 0 : index
    %c0_148 = arith.constant 0 : index
    %c0_149 = arith.constant 0 : index
    %122 = vector.load %arg9[%c1_146, %c0_147, %c0_148, %c0_149] : memref<3x18x16x128xbf16, #tpu.memory_space<vmem>>, vector<1x16x16x128xbf16>
    %123 = vector.shape_cast %122 : vector<1x16x16x128xbf16> to vector<16x16x128xbf16>
    %124 = vector.shape_cast %123 : vector<16x16x128xbf16> to vector<256x128xbf16>
    %c10 = arith.constant 10 : index
    %c0_150 = arith.constant 0 : index
    %c0_151 = arith.constant 0 : index
    %125 = vector.load %arg2[%c10, %c0_150, %c0_151] : memref<27x128x128xbf16, #tpu.memory_space<vmem>>, vector<1x128x128xbf16>
    %126 = vector.shape_cast %125 : vector<1x128x128xbf16> to vector<128x128xbf16>
    %cst_152 = arith.constant dense<0.000000e+00> : vector<256x128xf32>
    %127 = tpu.matmul %124, %126, %cst_152 {dimension_numbers = #tpu.dot_dimension_numbers<[1], [0], [0], [1], [0, 0, 1, 1], [], []>} : vector<256x128xbf16>, vector<128x128xbf16>, vector<256x128xf32> -> vector<256x128xf32>
    %128 = arith.addf %121, %127 : vector<256x128xf32>
    %c2_153 = arith.constant 2 : index
    %c0_154 = arith.constant 0 : index
    %c0_155 = arith.constant 0 : index
    %c0_156 = arith.constant 0 : index
    %129 = vector.load %arg9[%c2_153, %c0_154, %c0_155, %c0_156] : memref<3x18x16x128xbf16, #tpu.memory_space<vmem>>, vector<1x16x16x128xbf16>
    %130 = vector.shape_cast %129 : vector<1x16x16x128xbf16> to vector<16x16x128xbf16>
    %131 = vector.shape_cast %130 : vector<16x16x128xbf16> to vector<256x128xbf16>
    %c11 = arith.constant 11 : index
    %c0_157 = arith.constant 0 : index
    %c0_158 = arith.constant 0 : index
    %132 = vector.load %arg2[%c11, %c0_157, %c0_158] : memref<27x128x128xbf16, #tpu.memory_space<vmem>>, vector<1x128x128xbf16>
    %133 = vector.shape_cast %132 : vector<1x128x128xbf16> to vector<128x128xbf16>
    %cst_159 = arith.constant dense<0.000000e+00> : vector<256x128xf32>
    %134 = tpu.matmul %131, %133, %cst_159 {dimension_numbers = #tpu.dot_dimension_numbers<[1], [0], [0], [1], [0, 0, 1, 1], [], []>} : vector<256x128xbf16>, vector<128x128xbf16>, vector<256x128xf32> -> vector<256x128xf32>
    %135 = arith.addf %128, %134 : vector<256x128xf32>
    %c0_160 = arith.constant 0 : index
    %c1_161 = arith.constant 1 : index
    %c0_162 = arith.constant 0 : index
    %c0_163 = arith.constant 0 : index
    %136 = vector.load %arg9[%c0_160, %c1_161, %c0_162, %c0_163] : memref<3x18x16x128xbf16, #tpu.memory_space<vmem>>, vector<1x16x16x128xbf16>
    %137 = vector.shape_cast %136 : vector<1x16x16x128xbf16> to vector<16x16x128xbf16>
    %138 = vector.shape_cast %137 : vector<16x16x128xbf16> to vector<256x128xbf16>
    %c12 = arith.constant 12 : index
    %c0_164 = arith.constant 0 : index
    %c0_165 = arith.constant 0 : index
    %139 = vector.load %arg2[%c12, %c0_164, %c0_165] : memref<27x128x128xbf16, #tpu.memory_space<vmem>>, vector<1x128x128xbf16>
    %140 = vector.shape_cast %139 : vector<1x128x128xbf16> to vector<128x128xbf16>
    %cst_166 = arith.constant dense<0.000000e+00> : vector<256x128xf32>
    %141 = tpu.matmul %138, %140, %cst_166 {dimension_numbers = #tpu.dot_dimension_numbers<[1], [0], [0], [1], [0, 0, 1, 1], [], []>} : vector<256x128xbf16>, vector<128x128xbf16>, vector<256x128xf32> -> vector<256x128xf32>
    %142 = arith.addf %135, %141 : vector<256x128xf32>
    %c1_167 = arith.constant 1 : index
    %c1_168 = arith.constant 1 : index
    %c0_169 = arith.constant 0 : index
    %c0_170 = arith.constant 0 : index
    %143 = vector.load %arg9[%c1_167, %c1_168, %c0_169, %c0_170] : memref<3x18x16x128xbf16, #tpu.memory_space<vmem>>, vector<1x16x16x128xbf16>
    %144 = vector.shape_cast %143 : vector<1x16x16x128xbf16> to vector<16x16x128xbf16>
    %145 = vector.shape_cast %144 : vector<16x16x128xbf16> to vector<256x128xbf16>
    %c13 = arith.constant 13 : index
    %c0_171 = arith.constant 0 : index
    %c0_172 = arith.constant 0 : index
    %146 = vector.load %arg2[%c13, %c0_171, %c0_172] : memref<27x128x128xbf16, #tpu.memory_space<vmem>>, vector<1x128x128xbf16>
    %147 = vector.shape_cast %146 : vector<1x128x128xbf16> to vector<128x128xbf16>
    %cst_173 = arith.constant dense<0.000000e+00> : vector<256x128xf32>
    %148 = tpu.matmul %145, %147, %cst_173 {dimension_numbers = #tpu.dot_dimension_numbers<[1], [0], [0], [1], [0, 0, 1, 1], [], []>} : vector<256x128xbf16>, vector<128x128xbf16>, vector<256x128xf32> -> vector<256x128xf32>
    %149 = arith.addf %142, %148 : vector<256x128xf32>
    %c2_174 = arith.constant 2 : index
    %c1_175 = arith.constant 1 : index
    %c0_176 = arith.constant 0 : index
    %c0_177 = arith.constant 0 : index
    %150 = vector.load %arg9[%c2_174, %c1_175, %c0_176, %c0_177] : memref<3x18x16x128xbf16, #tpu.memory_space<vmem>>, vector<1x16x16x128xbf16>
    %151 = vector.shape_cast %150 : vector<1x16x16x128xbf16> to vector<16x16x128xbf16>
    %152 = vector.shape_cast %151 : vector<16x16x128xbf16> to vector<256x128xbf16>
    %c14 = arith.constant 14 : index
    %c0_178 = arith.constant 0 : index
    %c0_179 = arith.constant 0 : index
    %153 = vector.load %arg2[%c14, %c0_178, %c0_179] : memref<27x128x128xbf16, #tpu.memory_space<vmem>>, vector<1x128x128xbf16>
    %154 = vector.shape_cast %153 : vector<1x128x128xbf16> to vector<128x128xbf16>
    %cst_180 = arith.constant dense<0.000000e+00> : vector<256x128xf32>
    %155 = tpu.matmul %152, %154, %cst_180 {dimension_numbers = #tpu.dot_dimension_numbers<[1], [0], [0], [1], [0, 0, 1, 1], [], []>} : vector<256x128xbf16>, vector<128x128xbf16>, vector<256x128xf32> -> vector<256x128xf32>
    %156 = arith.addf %149, %155 : vector<256x128xf32>
    %c0_181 = arith.constant 0 : index
    %c2_182 = arith.constant 2 : index
    %c0_183 = arith.constant 0 : index
    %c0_184 = arith.constant 0 : index
    %157 = vector.load %arg9[%c0_181, %c2_182, %c0_183, %c0_184] : memref<3x18x16x128xbf16, #tpu.memory_space<vmem>>, vector<1x16x16x128xbf16>
    %158 = vector.shape_cast %157 : vector<1x16x16x128xbf16> to vector<16x16x128xbf16>
    %159 = vector.shape_cast %158 : vector<16x16x128xbf16> to vector<256x128xbf16>
    %c15 = arith.constant 15 : index
    %c0_185 = arith.constant 0 : index
    %c0_186 = arith.constant 0 : index
    %160 = vector.load %arg2[%c15, %c0_185, %c0_186] : memref<27x128x128xbf16, #tpu.memory_space<vmem>>, vector<1x128x128xbf16>
    %161 = vector.shape_cast %160 : vector<1x128x128xbf16> to vector<128x128xbf16>
    %cst_187 = arith.constant dense<0.000000e+00> : vector<256x128xf32>
    %162 = tpu.matmul %159, %161, %cst_187 {dimension_numbers = #tpu.dot_dimension_numbers<[1], [0], [0], [1], [0, 0, 1, 1], [], []>} : vector<256x128xbf16>, vector<128x128xbf16>, vector<256x128xf32> -> vector<256x128xf32>
    %163 = arith.addf %156, %162 : vector<256x128xf32>
    %c1_188 = arith.constant 1 : index
    %c2_189 = arith.constant 2 : index
    %c0_190 = arith.constant 0 : index
    %c0_191 = arith.constant 0 : index
    %164 = vector.load %arg9[%c1_188, %c2_189, %c0_190, %c0_191] : memref<3x18x16x128xbf16, #tpu.memory_space<vmem>>, vector<1x16x16x128xbf16>
    %165 = vector.shape_cast %164 : vector<1x16x16x128xbf16> to vector<16x16x128xbf16>
    %166 = vector.shape_cast %165 : vector<16x16x128xbf16> to vector<256x128xbf16>
    %c16 = arith.constant 16 : index
    %c0_192 = arith.constant 0 : index
    %c0_193 = arith.constant 0 : index
    %167 = vector.load %arg2[%c16, %c0_192, %c0_193] : memref<27x128x128xbf16, #tpu.memory_space<vmem>>, vector<1x128x128xbf16>
    %168 = vector.shape_cast %167 : vector<1x128x128xbf16> to vector<128x128xbf16>
    %cst_194 = arith.constant dense<0.000000e+00> : vector<256x128xf32>
    %169 = tpu.matmul %166, %168, %cst_194 {dimension_numbers = #tpu.dot_dimension_numbers<[1], [0], [0], [1], [0, 0, 1, 1], [], []>} : vector<256x128xbf16>, vector<128x128xbf16>, vector<256x128xf32> -> vector<256x128xf32>
    %170 = arith.addf %163, %169 : vector<256x128xf32>
    %c2_195 = arith.constant 2 : index
    %c2_196 = arith.constant 2 : index
    %c0_197 = arith.constant 0 : index
    %c0_198 = arith.constant 0 : index
    %171 = vector.load %arg9[%c2_195, %c2_196, %c0_197, %c0_198] : memref<3x18x16x128xbf16, #tpu.memory_space<vmem>>, vector<1x16x16x128xbf16>
    %172 = vector.shape_cast %171 : vector<1x16x16x128xbf16> to vector<16x16x128xbf16>
    %173 = vector.shape_cast %172 : vector<16x16x128xbf16> to vector<256x128xbf16>
    %c17_199 = arith.constant 17 : index
    %c0_200 = arith.constant 0 : index
    %c0_201 = arith.constant 0 : index
    %174 = vector.load %arg2[%c17_199, %c0_200, %c0_201] : memref<27x128x128xbf16, #tpu.memory_space<vmem>>, vector<1x128x128xbf16>
    %175 = vector.shape_cast %174 : vector<1x128x128xbf16> to vector<128x128xbf16>
    %cst_202 = arith.constant dense<0.000000e+00> : vector<256x128xf32>
    %176 = tpu.matmul %173, %175, %cst_202 {dimension_numbers = #tpu.dot_dimension_numbers<[1], [0], [0], [1], [0, 0, 1, 1], [], []>} : vector<256x128xbf16>, vector<128x128xbf16>, vector<256x128xf32> -> vector<256x128xf32>
    %177 = arith.addf %170, %176 : vector<256x128xf32>
    %c1_203 = arith.constant 1 : index
    %c0_204 = arith.constant 0 : index
    %178 = vector.load %arg3[%c1_203, %c0_204] : memref<3x128xf32, #tpu.memory_space<vmem>>, vector<1x128xf32>
    %179 = vector.broadcast %178 : vector<1x128xf32> to vector<256x128xf32>
    %180 = arith.mulf %177, %179 : vector<256x128xf32>
    %c1_205 = arith.constant 1 : index
    %c0_206 = arith.constant 0 : index
    %181 = vector.load %arg4[%c1_205, %c0_206] : memref<3x128xf32, #tpu.memory_space<vmem>>, vector<1x128xf32>
    %182 = vector.broadcast %181 : vector<1x128xf32> to vector<256x128xf32>
    %183 = arith.addf %180, %182 : vector<256x128xf32>
    %cst_207 = arith.constant 0.000000e+00 : f32
    %184 = vector.broadcast %cst_207 : f32 to vector<256x128xf32>
    %185 = arith.maximumf %183, %184 : vector<256x128xf32>
    %186 = vector.shape_cast %185 : vector<256x128xf32> to vector<16x16x128xf32>
    %c1_208 = arith.constant 1 : index
    %c8_209 = arith.constant 8 : index
    %c0_210 = arith.constant 0 : index
    %187 = vector.load %arg8[%c1_208, %c8_209, %c0_210] : memref<18x32x128xf32, #tpu.memory_space<vmem>>, vector<16x16x128xf32>
    tpu.vector_store %arg8[%c1_208, %c8_209, %c0_210], %186 {strides = array<i32>} : memref<18x32x128xf32, #tpu.memory_space<vmem>>, vector<16x16x128xf32>,
    %c0_211 = arith.constant 0 : index
    %c0_212 = arith.constant 0 : index
    %188 = vector.load %arg10[%c0_211, %c0_212] : memref<256x128xf32, #tpu.memory_space<vmem>>, vector<256x128xf32>
    %c0_213 = arith.constant 0 : index
    %c7_214 = arith.constant 7 : index
    %c0_215 = arith.constant 0 : index
    %189 = vector.load %arg8[%c0_213, %c7_214, %c0_215] : memref<18x32x128xf32, #tpu.memory_space<vmem>>, vector<18x16x128xf32>
    %190 = arith.truncf %189 : vector<18x16x128xf32> to vector<18x16x128xbf16>
    %c0_216 = arith.constant 0 : index
    %c0_217 = arith.constant 0 : index
    %c0_218 = arith.constant 0 : index
    %c0_219 = arith.constant 0 : index
    %191 = vector.load %arg9[%c0_216, %c0_217, %c0_218, %c0_219] : memref<3x18x16x128xbf16, #tpu.memory_space<vmem>>, vector<1x18x16x128xbf16>
    %192 = vector.shape_cast %191 : vector<1x18x16x128xbf16> to vector<18x16x128xbf16>
    %193 = vector.shape_cast %190 : vector<18x16x128xbf16> to vector<1x18x16x128xbf16>
    tpu.vector_store %arg9[%c0_216, %c0_217, %c0_218, %c0_219], %193 {strides = array<i32>} : memref<3x18x16x128xbf16, #tpu.memory_space<vmem>>, vector<1x18x16x128xbf16>,
    %c0_220 = arith.constant 0 : index
    %c8_221 = arith.constant 8 : index
    %c0_222 = arith.constant 0 : index
    %194 = vector.load %arg8[%c0_220, %c8_221, %c0_222] : memref<18x32x128xf32, #tpu.memory_space<vmem>>, vector<18x16x128xf32>
    %195 = arith.truncf %194 : vector<18x16x128xf32> to vector<18x16x128xbf16>
    %c1_223 = arith.constant 1 : index
    %c0_224 = arith.constant 0 : index
    %c0_225 = arith.constant 0 : index
    %c0_226 = arith.constant 0 : index
    %196 = vector.load %arg9[%c1_223, %c0_224, %c0_225, %c0_226] : memref<3x18x16x128xbf16, #tpu.memory_space<vmem>>, vector<1x18x16x128xbf16>
    %197 = vector.shape_cast %196 : vector<1x18x16x128xbf16> to vector<18x16x128xbf16>
    %198 = vector.shape_cast %195 : vector<18x16x128xbf16> to vector<1x18x16x128xbf16>
    tpu.vector_store %arg9[%c1_223, %c0_224, %c0_225, %c0_226], %198 {strides = array<i32>} : memref<3x18x16x128xbf16, #tpu.memory_space<vmem>>, vector<1x18x16x128xbf16>,
    %c0_227 = arith.constant 0 : index
    %c9_228 = arith.constant 9 : index
    %c0_229 = arith.constant 0 : index
    %199 = vector.load %arg8[%c0_227, %c9_228, %c0_229] : memref<18x32x128xf32, #tpu.memory_space<vmem>>, vector<18x16x128xf32>
    %200 = arith.truncf %199 : vector<18x16x128xf32> to vector<18x16x128xbf16>
    %c2_230 = arith.constant 2 : index
    %c0_231 = arith.constant 0 : index
    %c0_232 = arith.constant 0 : index
    %c0_233 = arith.constant 0 : index
    %201 = vector.load %arg9[%c2_230, %c0_231, %c0_232, %c0_233] : memref<3x18x16x128xbf16, #tpu.memory_space<vmem>>, vector<1x18x16x128xbf16>
    %202 = vector.shape_cast %201 : vector<1x18x16x128xbf16> to vector<18x16x128xbf16>
    %203 = vector.shape_cast %200 : vector<18x16x128xbf16> to vector<1x18x16x128xbf16>
    tpu.vector_store %arg9[%c2_230, %c0_231, %c0_232, %c0_233], %203 {strides = array<i32>} : memref<3x18x16x128xbf16, #tpu.memory_space<vmem>>, vector<1x18x16x128xbf16>,
    %c0_234 = arith.constant 0 : index
    %c0_235 = arith.constant 0 : index
    %c0_236 = arith.constant 0 : index
    %c0_237 = arith.constant 0 : index
    %204 = vector.load %arg9[%c0_234, %c0_235, %c0_236, %c0_237] : memref<3x18x16x128xbf16, #tpu.memory_space<vmem>>, vector<1x16x16x128xbf16>
    %205 = vector.shape_cast %204 : vector<1x16x16x128xbf16> to vector<16x16x128xbf16>
    %206 = vector.shape_cast %205 : vector<16x16x128xbf16> to vector<256x128xbf16>
    %c18 = arith.constant 18 : index
    %c0_238 = arith.constant 0 : index
    %c0_239 = arith.constant 0 : index
    %207 = vector.load %arg2[%c18, %c0_238, %c0_239] : memref<27x128x128xbf16, #tpu.memory_space<vmem>>, vector<1x128x128xbf16>
    %208 = vector.shape_cast %207 : vector<1x128x128xbf16> to vector<128x128xbf16>
    %cst_240 = arith.constant dense<0.000000e+00> : vector<256x128xf32>
    %209 = tpu.matmul %206, %208, %cst_240 {dimension_numbers = #tpu.dot_dimension_numbers<[1], [0], [0], [1], [0, 0, 1, 1], [], []>} : vector<256x128xbf16>, vector<128x128xbf16>, vector<256x128xf32> -> vector<256x128xf32>
    %c1_241 = arith.constant 1 : index
    %c0_242 = arith.constant 0 : index
    %c0_243 = arith.constant 0 : index
    %c0_244 = arith.constant 0 : index
    %210 = vector.load %arg9[%c1_241, %c0_242, %c0_243, %c0_244] : memref<3x18x16x128xbf16, #tpu.memory_space<vmem>>, vector<1x16x16x128xbf16>
    %211 = vector.shape_cast %210 : vector<1x16x16x128xbf16> to vector<16x16x128xbf16>
    %212 = vector.shape_cast %211 : vector<16x16x128xbf16> to vector<256x128xbf16>
    %c19 = arith.constant 19 : index
    %c0_245 = arith.constant 0 : index
    %c0_246 = arith.constant 0 : index
    %213 = vector.load %arg2[%c19, %c0_245, %c0_246] : memref<27x128x128xbf16, #tpu.memory_space<vmem>>, vector<1x128x128xbf16>
    %214 = vector.shape_cast %213 : vector<1x128x128xbf16> to vector<128x128xbf16>
    %cst_247 = arith.constant dense<0.000000e+00> : vector<256x128xf32>
    %215 = tpu.matmul %212, %214, %cst_247 {dimension_numbers = #tpu.dot_dimension_numbers<[1], [0], [0], [1], [0, 0, 1, 1], [], []>} : vector<256x128xbf16>, vector<128x128xbf16>, vector<256x128xf32> -> vector<256x128xf32>
    %216 = arith.addf %209, %215 : vector<256x128xf32>
    %c2_248 = arith.constant 2 : index
    %c0_249 = arith.constant 0 : index
    %c0_250 = arith.constant 0 : index
    %c0_251 = arith.constant 0 : index
    %217 = vector.load %arg9[%c2_248, %c0_249, %c0_250, %c0_251] : memref<3x18x16x128xbf16, #tpu.memory_space<vmem>>, vector<1x16x16x128xbf16>
    %218 = vector.shape_cast %217 : vector<1x16x16x128xbf16> to vector<16x16x128xbf16>
    %219 = vector.shape_cast %218 : vector<16x16x128xbf16> to vector<256x128xbf16>
    %c20 = arith.constant 20 : index
    %c0_252 = arith.constant 0 : index
    %c0_253 = arith.constant 0 : index
    %220 = vector.load %arg2[%c20, %c0_252, %c0_253] : memref<27x128x128xbf16, #tpu.memory_space<vmem>>, vector<1x128x128xbf16>
    %221 = vector.shape_cast %220 : vector<1x128x128xbf16> to vector<128x128xbf16>
    %cst_254 = arith.constant dense<0.000000e+00> : vector<256x128xf32>
    %222 = tpu.matmul %219, %221, %cst_254 {dimension_numbers = #tpu.dot_dimension_numbers<[1], [0], [0], [1], [0, 0, 1, 1], [], []>} : vector<256x128xbf16>, vector<128x128xbf16>, vector<256x128xf32> -> vector<256x128xf32>
    %223 = arith.addf %216, %222 : vector<256x128xf32>
    %c0_255 = arith.constant 0 : index
    %c1_256 = arith.constant 1 : index
    %c0_257 = arith.constant 0 : index
    %c0_258 = arith.constant 0 : index
    %224 = vector.load %arg9[%c0_255, %c1_256, %c0_257, %c0_258] : memref<3x18x16x128xbf16, #tpu.memory_space<vmem>>, vector<1x16x16x128xbf16>
    %225 = vector.shape_cast %224 : vector<1x16x16x128xbf16> to vector<16x16x128xbf16>
    %226 = vector.shape_cast %225 : vector<16x16x128xbf16> to vector<256x128xbf16>
    %c21 = arith.constant 21 : index
    %c0_259 = arith.constant 0 : index
    %c0_260 = arith.constant 0 : index
    %227 = vector.load %arg2[%c21, %c0_259, %c0_260] : memref<27x128x128xbf16, #tpu.memory_space<vmem>>, vector<1x128x128xbf16>
    %228 = vector.shape_cast %227 : vector<1x128x128xbf16> to vector<128x128xbf16>
    %cst_261 = arith.constant dense<0.000000e+00> : vector<256x128xf32>
    %229 = tpu.matmul %226, %228, %cst_261 {dimension_numbers = #tpu.dot_dimension_numbers<[1], [0], [0], [1], [0, 0, 1, 1], [], []>} : vector<256x128xbf16>, vector<128x128xbf16>, vector<256x128xf32> -> vector<256x128xf32>
    %230 = arith.addf %223, %229 : vector<256x128xf32>
    %c1_262 = arith.constant 1 : index
    %c1_263 = arith.constant 1 : index
    %c0_264 = arith.constant 0 : index
    %c0_265 = arith.constant 0 : index
    %231 = vector.load %arg9[%c1_262, %c1_263, %c0_264, %c0_265] : memref<3x18x16x128xbf16, #tpu.memory_space<vmem>>, vector<1x16x16x128xbf16>
    %232 = vector.shape_cast %231 : vector<1x16x16x128xbf16> to vector<16x16x128xbf16>
    %233 = vector.shape_cast %232 : vector<16x16x128xbf16> to vector<256x128xbf16>
    %c22 = arith.constant 22 : index
    %c0_266 = arith.constant 0 : index
    %c0_267 = arith.constant 0 : index
    %234 = vector.load %arg2[%c22, %c0_266, %c0_267] : memref<27x128x128xbf16, #tpu.memory_space<vmem>>, vector<1x128x128xbf16>
    %235 = vector.shape_cast %234 : vector<1x128x128xbf16> to vector<128x128xbf16>
    %cst_268 = arith.constant dense<0.000000e+00> : vector<256x128xf32>
    %236 = tpu.matmul %233, %235, %cst_268 {dimension_numbers = #tpu.dot_dimension_numbers<[1], [0], [0], [1], [0, 0, 1, 1], [], []>} : vector<256x128xbf16>, vector<128x128xbf16>, vector<256x128xf32> -> vector<256x128xf32>
    %237 = arith.addf %230, %236 : vector<256x128xf32>
    %c2_269 = arith.constant 2 : index
    %c1_270 = arith.constant 1 : index
    %c0_271 = arith.constant 0 : index
    %c0_272 = arith.constant 0 : index
    %238 = vector.load %arg9[%c2_269, %c1_270, %c0_271, %c0_272] : memref<3x18x16x128xbf16, #tpu.memory_space<vmem>>, vector<1x16x16x128xbf16>
    %239 = vector.shape_cast %238 : vector<1x16x16x128xbf16> to vector<16x16x128xbf16>
    %240 = vector.shape_cast %239 : vector<16x16x128xbf16> to vector<256x128xbf16>
    %c23 = arith.constant 23 : index
    %c0_273 = arith.constant 0 : index
    %c0_274 = arith.constant 0 : index
    %241 = vector.load %arg2[%c23, %c0_273, %c0_274] : memref<27x128x128xbf16, #tpu.memory_space<vmem>>, vector<1x128x128xbf16>
    %242 = vector.shape_cast %241 : vector<1x128x128xbf16> to vector<128x128xbf16>
    %cst_275 = arith.constant dense<0.000000e+00> : vector<256x128xf32>
    %243 = tpu.matmul %240, %242, %cst_275 {dimension_numbers = #tpu.dot_dimension_numbers<[1], [0], [0], [1], [0, 0, 1, 1], [], []>} : vector<256x128xbf16>, vector<128x128xbf16>, vector<256x128xf32> -> vector<256x128xf32>
    %244 = arith.addf %237, %243 : vector<256x128xf32>
    %c0_276 = arith.constant 0 : index
    %c2_277 = arith.constant 2 : index
    %c0_278 = arith.constant 0 : index
    %c0_279 = arith.constant 0 : index
    %245 = vector.load %arg9[%c0_276, %c2_277, %c0_278, %c0_279] : memref<3x18x16x128xbf16, #tpu.memory_space<vmem>>, vector<1x16x16x128xbf16>
    %246 = vector.shape_cast %245 : vector<1x16x16x128xbf16> to vector<16x16x128xbf16>
    %247 = vector.shape_cast %246 : vector<16x16x128xbf16> to vector<256x128xbf16>
    %c24_280 = arith.constant 24 : index
    %c0_281 = arith.constant 0 : index
    %c0_282 = arith.constant 0 : index
    %248 = vector.load %arg2[%c24_280, %c0_281, %c0_282] : memref<27x128x128xbf16, #tpu.memory_space<vmem>>, vector<1x128x128xbf16>
    %249 = vector.shape_cast %248 : vector<1x128x128xbf16> to vector<128x128xbf16>
    %cst_283 = arith.constant dense<0.000000e+00> : vector<256x128xf32>
    %250 = tpu.matmul %247, %249, %cst_283 {dimension_numbers = #tpu.dot_dimension_numbers<[1], [0], [0], [1], [0, 0, 1, 1], [], []>} : vector<256x128xbf16>, vector<128x128xbf16>, vector<256x128xf32> -> vector<256x128xf32>
    %251 = arith.addf %244, %250 : vector<256x128xf32>
    %c1_284 = arith.constant 1 : index
    %c2_285 = arith.constant 2 : index
    %c0_286 = arith.constant 0 : index
    %c0_287 = arith.constant 0 : index
    %252 = vector.load %arg9[%c1_284, %c2_285, %c0_286, %c0_287] : memref<3x18x16x128xbf16, #tpu.memory_space<vmem>>, vector<1x16x16x128xbf16>
    %253 = vector.shape_cast %252 : vector<1x16x16x128xbf16> to vector<16x16x128xbf16>
    %254 = vector.shape_cast %253 : vector<16x16x128xbf16> to vector<256x128xbf16>
    %c25 = arith.constant 25 : index
    %c0_288 = arith.constant 0 : index
    %c0_289 = arith.constant 0 : index
    %255 = vector.load %arg2[%c25, %c0_288, %c0_289] : memref<27x128x128xbf16, #tpu.memory_space<vmem>>, vector<1x128x128xbf16>
    %256 = vector.shape_cast %255 : vector<1x128x128xbf16> to vector<128x128xbf16>
    %cst_290 = arith.constant dense<0.000000e+00> : vector<256x128xf32>
    %257 = tpu.matmul %254, %256, %cst_290 {dimension_numbers = #tpu.dot_dimension_numbers<[1], [0], [0], [1], [0, 0, 1, 1], [], []>} : vector<256x128xbf16>, vector<128x128xbf16>, vector<256x128xf32> -> vector<256x128xf32>
    %258 = arith.addf %251, %257 : vector<256x128xf32>
    %c2_291 = arith.constant 2 : index
    %c2_292 = arith.constant 2 : index
    %c0_293 = arith.constant 0 : index
    %c0_294 = arith.constant 0 : index
    %259 = vector.load %arg9[%c2_291, %c2_292, %c0_293, %c0_294] : memref<3x18x16x128xbf16, #tpu.memory_space<vmem>>, vector<1x16x16x128xbf16>
    %260 = vector.shape_cast %259 : vector<1x16x16x128xbf16> to vector<16x16x128xbf16>
    %261 = vector.shape_cast %260 : vector<16x16x128xbf16> to vector<256x128xbf16>
    %c26 = arith.constant 26 : index
    %c0_295 = arith.constant 0 : index
    %c0_296 = arith.constant 0 : index
    %262 = vector.load %arg2[%c26, %c0_295, %c0_296] : memref<27x128x128xbf16, #tpu.memory_space<vmem>>, vector<1x128x128xbf16>
    %263 = vector.shape_cast %262 : vector<1x128x128xbf16> to vector<128x128xbf16>
    %cst_297 = arith.constant dense<0.000000e+00> : vector<256x128xf32>
    %264 = tpu.matmul %261, %263, %cst_297 {dimension_numbers = #tpu.dot_dimension_numbers<[1], [0], [0], [1], [0, 0, 1, 1], [], []>} : vector<256x128xbf16>, vector<128x128xbf16>, vector<256x128xf32> -> vector<256x128xf32>
    %265 = arith.addf %258, %264 : vector<256x128xf32>
    %c2_298 = arith.constant 2 : index
    %c0_299 = arith.constant 0 : index
    %266 = vector.load %arg3[%c2_298, %c0_299] : memref<3x128xf32, #tpu.memory_space<vmem>>, vector<1x128xf32>
    %267 = vector.broadcast %266 : vector<1x128xf32> to vector<256x128xf32>
    %268 = arith.mulf %265, %267 : vector<256x128xf32>
    %c2_300 = arith.constant 2 : index
    %c0_301 = arith.constant 0 : index
    %269 = vector.load %arg4[%c2_300, %c0_301] : memref<3x128xf32, #tpu.memory_space<vmem>>, vector<1x128xf32>
    %270 = vector.broadcast %269 : vector<1x128xf32> to vector<256x128xf32>
    %271 = arith.addf %268, %270 : vector<256x128xf32>
    %272 = arith.addf %271, %188 : vector<256x128xf32>
    %cst_302 = arith.constant 0.000000e+00 : f32
    %273 = vector.broadcast %cst_302 : f32 to vector<256x128xf32>
    %274 = arith.maximumf %272, %273 : vector<256x128xf32>
    %cst_303 = arith.constant dense<0.000000e+00> : vector<128xf32>
    %275 = vector.multi_reduction <add>, %274, %cst_303 [0] : vector<256x128xf32> to vector<128xf32>
    %276 = vector.shape_cast %275 : vector<128xf32> to vector<1x128xf32>
    %cst_304 = arith.constant 3.906250e-03 : f32
    %277 = vector.broadcast %cst_304 : f32 to vector<1x128xf32>
    %278 = arith.mulf %276, %277 : vector<1x128xf32>
    %279 = arith.truncf %278 : vector<1x128xf32> to vector<1x128xbf16>
    %c0_305 = arith.constant 0 : index
    %c0_306 = arith.constant 0 : index
    %280 = vector.load %arg5[%c0_305, %c0_306] : memref<128x128xbf16, #tpu.memory_space<vmem>>, vector<128x128xbf16>
    %cst_307 = arith.constant dense<0.000000e+00> : vector<1x128xf32>
    %281 = tpu.matmul %279, %280, %cst_307 {dimension_numbers = #tpu.dot_dimension_numbers<[1], [0], [0], [1], [0, 0, 1, 1], [], []>} : vector<1x128xbf16>, vector<128x128xbf16>, vector<1x128xf32> -> vector<1x128xf32>
    %c0_308 = arith.constant 0 : index
    %c0_309 = arith.constant 0 : index
    %282 = vector.load %arg6[%c0_308, %c0_309] : memref<1x128xf32, #tpu.memory_space<vmem>>, vector<1x128xf32>
    %283 = arith.addf %281, %282 : vector<1x128xf32>
    %c0_310 = arith.constant 0 : index
    %c0_311 = arith.constant 0 : index
    %c0_312 = arith.constant 0 : index
    %284 = vector.load %arg7[%c0_310, %c0_311, %c0_312] : memref<1x1x128xf32, #tpu.memory_space<vmem>>, vector<1x1x128xf32>
    %285 = vector.shape_cast %284 : vector<1x1x128xf32> to vector<1x128xf32>
    %286 = vector.shape_cast %283 : vector<1x128xf32> to vector<1x1x128xf32>
    tpu.vector_store %arg7[%c0_310, %c0_311, %c0_312], %286 {strides = array<i32>} : memref<1x1x128xf32, #tpu.memory_space<vmem>>, vector<1x1x128xf32>,
    return
  }
  func.func @transform_0(%arg0: i32) -> (i32, i32, i32, i32) {
    %c0_i32 = arith.constant 0 : i32
    %c0_i32_0 = arith.constant 0 : i32
    %c0_i32_1 = arith.constant 0 : i32
    %c0_i32_2 = arith.constant 0 : i32
    return %arg0, %c0_i32, %c0_i32_0, %c0_i32_1 : i32, i32, i32, i32
  }
  func.func @transform_1(%arg0: i32) -> (i32, i32, i32) {
    %c0_i32 = arith.constant 0 : i32
    %c0_i32_0 = arith.constant 0 : i32
    %c0_i32_1 = arith.constant 0 : i32
    %c0_i32_2 = arith.constant 0 : i32
    return %c0_i32, %c0_i32_0, %c0_i32_1 : i32, i32, i32
  }
  func.func @transform_2(%arg0: i32) -> (i32, i32) {
    %c0_i32 = arith.constant 0 : i32
    %c0_i32_0 = arith.constant 0 : i32
    %c0_i32_1 = arith.constant 0 : i32
    return %c0_i32, %c0_i32_0 : i32, i32
  }
  func.func @transform_3(%arg0: i32) -> (i32, i32) {
    %c0_i32 = arith.constant 0 : i32
    %c0_i32_0 = arith.constant 0 : i32
    %c0_i32_1 = arith.constant 0 : i32
    return %c0_i32, %c0_i32_0 : i32, i32
  }
  func.func @transform_4(%arg0: i32) -> (i32, i32) {
    %c0_i32 = arith.constant 0 : i32
    %c0_i32_0 = arith.constant 0 : i32
    %c0_i32_1 = arith.constant 0 : i32
    return %c0_i32, %c0_i32_0 : i32, i32
  }
  func.func @transform_5(%arg0: i32) -> (i32, i32) {
    %c0_i32 = arith.constant 0 : i32
    %c0_i32_0 = arith.constant 0 : i32
    %c0_i32_1 = arith.constant 0 : i32
    return %c0_i32, %c0_i32_0 : i32, i32
  }
  func.func @transform_6(%arg0: i32) -> (i32, i32, i32) {
    %c0_i32 = arith.constant 0 : i32
    %c0_i32_0 = arith.constant 0 : i32
    %c0_i32_1 = arith.constant 0 : i32
    return %arg0, %c0_i32, %c0_i32_0 : i32, i32, i32
  }
}

</mosaic_0001>

<bundles_post_ra>
// kernel: bengali_classifier_forward.1
= control target key start
LH: loop header
LB: loop body
LE: loop exit
PB: predicated region body
PF: predicated region fallthrough
CT: control target
= control target key end

     0   :  { %11 = vsyncpa [#allocation6], 0  ;;  %s13835_s0 = inlined_call_operand.vmem [shape: f32[2,16,16,1], index: 0, kind: input, shape index: {}]   ;;  %s13836_s1 = inlined_call_operand.hbm [shape: bf16[27,128,128], index: 1, kind: input, shape index: {}]   ;;  %s13837_s2 = inlined_call_operand.vmem [shape: f32[3,128], index: 2, kind: input, shape index: {}]   ;;  %s13838_s3 = inlined_call_operand.vmem [shape: f32[3,128], index: 3, kind: input, shape index: {}]   ;;  %s13839_s4 = inlined_call_operand.vmem [shape: bf16[128,128], index: 4, kind: input, shape index: {}]   ;;  %s13840_s5 = inlined_call_operand.vmem [shape: f32[1,128], index: 5, kind: input, shape index: {}]   ;;  %s13841_s6 = inlined_call_operand.hbm [shape: f32[2,1,128], index: 6, kind: output, shape index: {}]  }
   0x1   :  { %12 = vsyncpa [#allocation7], 0 }
   0x2   :  { %14 = vsyncpa [#allocation7 + $0x1], 0  ;;  %s12398_s21 = smov 0   ;;  %s12400_s22 = smov 0  }
   0x3   :  { %s12402_s23 = smov 0   ;;  %s12404_s24 = smov 0  }
   0x4 LB: > { %s12419_s25 = sadd.s32 4294967295, %s12354_s24   ;;  %s8972_s26 = sadd.s32 4294967294, %s12354_s24   ;;  %s12354_s24 = sphi %s12404_s24, %s13923_s24   ;;  %s12350_s23 = sphi %s12402_s23, %s13922_s23   ;;  %s12346_s22 = sphi %s12400_s22, %s13921_s22   ;;  %s12342_s21 = sphi %s12398_s21, %s13920_s21  }
   0x5   : > { %s12423_s27 = sadd.s32 1, %s12354_s24   ;;  %s158_s28 = sadd.s32 1, %s12350_s23 }
   0x6   : > { %s155_s29 = ssub.s32 %s12354_s24, %s12423_s27  ;;  %p168_p0 = scmp.ne.s32.totalorder %s12350_s23, %s12346_s22 }
   0x7   : > { %p156_p1 = scmp.eq.s32.totalorder %s155_s29, 0  ;;  %p169_p2 = scmp.eq.s32.totalorder %s12419_s25, 1 }
   0x8   : > { %p174_p3 = scmp.ne.s32.totalorder %s12346_s22, %s12342_s21  ;;  %p175_p4 = scmp.eq.s32.totalorder %s8972_s26, 1 }
   0x9   : > { %s12434_s30 = scalar_select %p156_p1, %s12350_s23, %s158_s28  }
   0xa   : > { %p12436_p5 = por %p169_p2, %p168_p0  ;;  %p12440_p6 = por %p175_p4, %p174_p3 }
   0xb   : > { %p8973_p7 = scmp.ge.s32.totalorder %s12354_s24, 1  ;;  %p182_p8 = scmp.lt.s32.totalorder %s12354_s24, 3 }
   0xc   : > { %s13867_s7 = scalar_select %p12436_p5, 1, 0 }
   0xd   : > { %s13868_s8 = scalar_select %p12440_p6, 1, 0 }
   0xe   : > { %p13842_p9 = scmp.eq.s32.totalorder %s12419_s25, 0  ;;  %p12447_p10 = pnand %p8973_p7, %p182_p8 }
   0xf   : > { %s12356_s10 = smov [#allocation5]   ;;  %s12260_s15 = scalar_lea.hbm %s13836_s1, 27648 }
  0x10   : > { %s13869_s9 = scalar_select %p12447_p10, 1, 0 }
  0x11   : > { %s194_s11 = sshll.u32 %s12356_s10, 4  ;;  %p11977_p11 = pneg %p12447_p10  ;;  %s195_s11 = int_to_ptr.vmem [resolvable:$true] %s194_s11 }
  0x12   : > { %p12261_p13 = scmp.ne.s32.totalorder %s13836_s1, %s12260_s15  ;;  %p12267_p3 = scmp.lt.u32.totalorder %s12260_s15, %s13836_s1 }
  0x13   : > { %p12455_p12 = pnand %p13842_p9, %p11977_p11 }
  0x15   : > { %p12262_p0 = pneg %p12455_p12 }
  0x17   : > { %p12263_p1 = pnand %p12262_p0, %p12261_p13 }
  0x19   : > { %p12264_p2 = pneg %p12263_p1 }
  0x1b   : > { %p12269_p4 = pnand %p12267_p3, %p12264_p2 }
  0x1d   : > { %12272 = shalt.err (!%p12269_p4)
}
  0x1e   : > { %s12273_s20 = scalar_lea.vmem %s195_s11, 27648  ;;  %p12281_p9 = scmp.lt.s32.totalorder %s195_s11, %s195_s11 }
  0x1f   : > { %p12274_p7 = scmp.ne.s32.totalorder %s195_s11, %s12273_s20  ;;  %p12282_p6 = scmp.lt.s32.totalorder %s12273_s20, %s12273_s20 }
  0x21   : > { %p12276_p8 = pnand %p12274_p7, %p12262_p0  ;;  %p12283_p5 = por %p12282_p6, %p12281_p9 }
  0x23   : > { %p12277_p11 = pneg %p12276_p8 }
  0x25   : > { %p12284_p10 = pnand %p12283_p5, %p12277_p11 }
  0x27   : > { %12287 = shalt.err (!%p12284_p10)
}
  0x28   : > { %s12357_s26 = smov 64   ;;  %s12358_s28 = smov 4  }
  0x29   : > { %11980 = dma.hbm_to_vmem [thread:$0]  (!%p12455_p12), %s13836_s1, 27648, %s195_s11, [#allocation6], %s12357_s26, %s12357_s26, %s12358_s28  }
  0x2a   : > { %p13871_p13 = scmp.ne.s32.totalorder %s13869_s9, 0 }
  0x2c   : > { %230 = sbr.rel (%p13871_p13) target bundleno = 2330 (0x91a), region = 44 }
  0x33   : > { %p13872_p1 = scmp.eq.s32.totalorder %s12419_s25, 0 }
  0x35   : > { %12333 = dma.done.wait (%p13872_p1), [#allocation6], 27648   ;;  %p13873_p0 = pmov %p13872_p1 }
  0x36   : > { %v12359_v0 = vmov 0.0   ;;  %v12360_v1 = vmov 0.0|0.0   ;;  %v12025_v2 = vld [vmem:[#allocation5 + $0x40] sm:$0xff]   ;;  %v12027_v4 = vld [vmem:[#allocation5 + $0x48] sm:$0xff]   ;;  %p259_p5 = scmp.lt.s32.totalorder %s12419_s25, 1  ;;  %v12029_v6 = vld [vmem:[#allocation5 + $0x50] sm:$0xff]  }
  0x37   : > { %12335 = vsyncadd (%p13873_p0), [#allocation6], 4294939648  ;;  %266 = vst [vmem:[#allocation2 + $0x8] sm:$0xff] %v12359_v0  ;;  %9887 = vmatprep.mubr.bf16.mxu1 %v12360_v1  ;;  %v12026_v3 = vld [vmem:[#allocation5 + $0x100] sm:$0xff]   ;;  %9871 = vmatprep.subr.bf16.mxu1 %v12025_v2  ;;  %v12028_v5 = vld [vmem:[#allocation5 + $0x108] sm:$0xff]   ;;  %vm375_vm0 = vcmask 7168  }
  0x38   : > { %267 = vst [vmem:[#allocation2 + $0x10] sm:$0xff] %v12359_v0  ;;  %265 = vst [vmem:[#allocation2] sm:$0xff] %v12359_v0  ;;  %10063 = vmatprep.subr.bf16.mxu0 %v12026_v3  ;;  %9872 = vmatpush3.bf16.msra.mxu1 %v12025_v2  ;;  %v12030_v7 = vld [vmem:[#allocation5 + $0x110] sm:$0xff]   ;;  %s260_s9 = scalar_select %p259_p5, %s12419_s25, 1  ;;  %v12031_v8 = vld [vmem:[#allocation5 + $0x58] sm:$0xff]   ;;  %vm12361_vm1 = vmmov 0  }
  0x39   : > { %268 = vst [vmem:[#allocation2 + $0x18] sm:$0xff] %v12359_v0  ;;  %270 = vst [vmem:[#allocation2 + $0x220] sm:$0xff] %v12359_v0  ;;  %10064 = vmatpush3.bf16.msra.mxu0 %v12026_v3  ;;  %9873 = vmatprep.subr.bf16.mxu1 %v12027_v4  ;;  %v12032_v9 = vld [vmem:[#allocation5 + $0x118] sm:$0xff]   ;;  %v12033_v10 = vld [vmem:[#allocation5 + $0x60] sm:$0xff]   ;;  %s257_s13 = sand.u32 1, %s12346_s22   ;;  %s9210_s16 = sshll.u32 %s12419_s25, 4 }
  0x3a   : > { %271 = vst [vmem:[#allocation2 + $0x228] sm:$0xff] %v12359_v0  ;;  %272 = vst [vmem:[#allocation2 + $0x230] sm:$0xff] %v12359_v0  ;;  %10065 = vmatprep.subr.bf16.mxu0 %v12028_v5  ;;  %s9213_s11 = sshll.u32 %s260_s9, 8  ;;  %v12034_v11 = vld [vmem:[#allocation5 + $0x120] sm:$0xff]   ;;  %v12035_v12 = vld [vmem:[#allocation5 + $0x68] sm:$0xff]   ;;  %s258_s17 = scalar_lea.vmem [#allocation8], %s257_s13 }
  0x3b   : > { %273 = vst [vmem:[#allocation2 + $0x238] sm:$0xff] %v12359_v0  ;;  %275 = vst [vmem:[#allocation2 + $0x27] sm:$0x1] %v12359_v0  ;;  %s12562_s14 = scalar_lea.vmem %s13835_s0, %s9213_s11  ;;  %v12036_v15 = vld [vmem:[#allocation5 + $0x128] sm:$0xff]   ;;  %v12037_v18 = vld [vmem:[#allocation5 + $0x70] sm:$0xff]   ;;  %s8905_s18 = sshll.u32 %s258_s17, 4  ;;  %s13795_s18 = int_to_ptr.vmem [resolvable:$true] %s8905_s18 }
  0x3c   : > { %276 = vst [vmem:[#allocation2 + $0x47] sm:$0x1] %v12359_v0  ;;  %277 = vst [vmem:[#allocation2 + $0x67] sm:$0x1] %v12359_v0  ;;  %9874 = vmatpush3.bf16.msra.mxu1 %v12027_v4  ;;  %v343_v13 = vld [vmem:[%s12562_s14] sm:$0xff]  ;;  %v344_v14 = vld [vmem:[%s12562_s14 + $0x8] sm:$0xff]  ;;  %s13793_s26 = scalar_lea.hbm %s13841_s6, %s9210_s16 }
  0x3d   : > { %278 = vst [vmem:[#allocation2 + $0x87] sm:$0x1] %v12359_v0  ;;  %279 = vst [vmem:[#allocation2 + $0xa7] sm:$0x1] %v12359_v0  ;;  %10066 = vmatpush3.bf16.msra.mxu0 %v12028_v5  ;;  %9875 = vmatprep.subr.bf16.mxu1 %v12029_v6  ;;  %v345_v16 = vld [vmem:[%s12562_s14 + $0x10] sm:$0xff]  ;;  %v346_v17 = vld [vmem:[%s12562_s14 + $0x18] sm:$0xff] }
  0x3e   : > { %280 = vst [vmem:[#allocation2 + $0xc7] sm:$0x1] %v12359_v0  ;;  %281 = vst [vmem:[#allocation2 + $0xe7] sm:$0x1] %v12359_v0  ;;  %10067 = vmatprep.subr.bf16.mxu0 %v12030_v7  ;;  %v347_v19 = vld [vmem:[%s12562_s14 + $0x20] sm:$0xff]  ;;  %v348_v20 = vld [vmem:[%s12562_s14 + $0x28] sm:$0xff] }
  0x3f   : > { %282 = vst [vmem:[#allocation2 + $0x107] sm:$0x1] %v12359_v0  ;;  %283 = vst [vmem:[#allocation2 + $0x127] sm:$0x1] %v12359_v0  ;;  %v12038_v21 = vld [vmem:[#allocation5 + $0x130] sm:$0xff]   ;;  %v350_v23 = vld [vmem:[%s12562_s14 + $0x38] sm:$0xff] }
  0x40   : > { %284 = vst [vmem:[#allocation2 + $0x147] sm:$0x1] %v12359_v0  ;;  %285 = vst [vmem:[#allocation2 + $0x167] sm:$0x1] %v12359_v0  ;;  %9876 = vmatpush3.bf16.msra.mxu1 %v12029_v6  ;;  %v349_v22 = vld [vmem:[%s12562_s14 + $0x30] sm:$0xff]  ;;  %v12039_v24 = vld [vmem:[#allocation5 + $0x78] sm:$0xff]  }
  0x41   : > { %286 = vst [vmem:[#allocation2 + $0x187] sm:$0x1] %v12359_v0  ;;  %287 = vst [vmem:[#allocation2 + $0x1a7] sm:$0x1] %v12359_v0  ;;  %10068 = vmatpush3.bf16.msra.mxu0 %v12030_v7  ;;  %9877 = vmatprep.subr.bf16.mxu1 %v12031_v8  ;;  %v12040_v27 = vld [vmem:[#allocation5 + $0x138] sm:$0xff]   ;;  %v351_v29 = vld [vmem:[%s12562_s14 + $0x40] sm:$0xff] }
  0x42   : > { %288 = vst [vmem:[#allocation2 + $0x1c7] sm:$0x1] %v12359_v0  ;;  %289 = vst [vmem:[#allocation2 + $0x1e7] sm:$0x1] %v12359_v0  ;;  %10069 = vmatprep.subr.bf16.mxu0 %v12032_v9  ;;  %v352_v30 = vld [vmem:[%s12562_s14 + $0x48] sm:$0xff]  ;;  %v12041_v31 = vld [vmem:[#allocation5] sm:$0xff]  }
  0x43   : > { %290 = vst [vmem:[#allocation2 + $0x207] sm:$0x1] %v12359_v0  ;;  %293 = vst [vmem:[#allocation2 + $0x38] sm:$0x1] %v12359_v0  ;;  %v353_v32 = vld [vmem:[%s12562_s14 + $0x50] sm:$0xff]  ;;  %v354_v35 = vld [vmem:[%s12562_s14 + $0x58] sm:$0xff] }
  0x44   : > { %294 = vst [vmem:[#allocation2 + $0x58] sm:$0x1] %v12359_v0  ;;  %295 = vst [vmem:[#allocation2 + $0x78] sm:$0x1] %v12359_v0  ;;  %9878 = vmatpush3.bf16.msra.mxu1 %v12031_v8  ;;  %v12042_v36 = vld [vmem:[#allocation5 + $0x140] sm:$0xff]   ;;  %v356_v41 = vld [vmem:[%s12562_s14 + $0x68] sm:$0xff] }
  0x45   : > { %296 = vst [vmem:[#allocation2 + $0x98] sm:$0x1] %v12359_v0  ;;  %297 = vst [vmem:[#allocation2 + $0xb8] sm:$0x1] %v12359_v0  ;;  %10070 = vmatpush3.bf16.msra.mxu0 %v12032_v9  ;;  %9879 = vmatprep.subr.bf16.mxu1 %v12033_v10  ;;  %v355_v40 = vld [vmem:[%s12562_s14 + $0x60] sm:$0xff]  ;;  %v12043_v42 = vld [vmem:[#allocation5 + $0x148] sm:$0xff]  }
  0x46   : > { %298 = vst [vmem:[#allocation2 + $0xd8] sm:$0x1] %v12359_v0  ;;  %299 = vst [vmem:[#allocation2 + $0xf8] sm:$0x1] %v12359_v0  ;;  %10071 = vmatprep.subr.bf16.mxu0 %v12034_v11  ;;  %v357_v44 = vld [vmem:[%s12562_s14 + $0x70] sm:$0xff]  ;;  %v12044_v45 = vld [vmem:[#allocation5 + $0x8] sm:$0xff]  }
  0x47   : > { %300 = vst [vmem:[#allocation2 + $0x118] sm:$0x1] %v12359_v0  ;;  %301 = vst [vmem:[#allocation2 + $0x138] sm:$0x1] %v12359_v0  ;;  %v358_v46 = vld [vmem:[%s12562_s14 + $0x78] sm:$0xff]  ;;  %v12047_v48 = vld [vmem:[#allocation5 + $0x10] sm:$0xff]  }
  0x48   : > { %302 = vst [vmem:[#allocation2 + $0x158] sm:$0x1] %v12359_v0  ;;  %303 = vst [vmem:[#allocation2 + $0x178] sm:$0x1] %v12359_v0  ;;  %9880 = vmatpush3.bf16.msra.mxu1 %v12033_v10  ;;  %v12045_v50 = vld [vmem:[#allocation5 + $0x150] sm:$0xff]   ;;  %v359_v53 = vld [vmem:[%s12562_s14 + $0x80] sm:$0xff] }
  0x49   : > { %304 = vst [vmem:[#allocation2 + $0x198] sm:$0x1] %v12359_v0  ;;  %305 = vst [vmem:[#allocation2 + $0x1b8] sm:$0x1] %v12359_v0  ;;  %10072 = vmatpush3.bf16.msra.mxu0 %v12034_v11  ;;  %9881 = vmatprep.subr.bf16.mxu1 %v12035_v12  ;;  %v360_v54 = vld [vmem:[%s12562_s14 + $0x88] sm:$0xff]  ;;  %v12046_v57 = vld [vmem:[#allocation5 + $0x158] sm:$0xff]  }
  0x4a   : > { %306 = vst [vmem:[#allocation2 + $0x1d8] sm:$0x1] %v12359_v0  ;;  %307 = vst [vmem:[#allocation2 + $0x1f8] sm:$0x1] %v12359_v0  ;;  %10073 = vmatprep.subr.bf16.mxu0 %v12036_v15  ;;  %v12050_v58 = vld [vmem:[#allocation5 + $0x18] sm:$0xff]   ;;  %v361_v59 = vld [vmem:[%s12562_s14 + $0x90] sm:$0xff] }
  0x4b   : > { %308 = vst [vmem:[#allocation2 + $0x218] sm:$0x1] %v12359_v0  ;;  %311 = vst [vmem:[#allocation2 + $0x28] sm:$0xff] %v12359_v0  ;;  %v12048_v62 = vld [vmem:[#allocation5 + $0x160] sm:$0xff]   ;;  %v362_v63 = vld [vmem:[%s12562_s14 + $0x98] sm:$0xff]  ;;  %s8893_s28 = scalar_lea.sflag [#allocation7], %s257_s13 }
  0x4c   : > { %312 = vst [vmem:[#allocation2 + $0x30] sm:$0xff] %v12359_v0  ;;  %313 = vst [vmem:[#allocation2 + $0x48] sm:$0xff] %v12359_v0  ;;  %9882 = vmatpush3.bf16.msra.mxu1 %v12035_v12  ;;  %v364_v1 = vld [vmem:[%s12562_s14 + $0xa8] sm:$0xff]  ;;  %v12053_v4 = vld [vmem:[#allocation5 + $0x20] sm:$0xff]   ;;  %s12288_s25 = scalar_lea.vmem %s13795_s18, 16  ;;  %p13918_p9 = scmp.ne.s32.totalorder %s13867_s7, 0 }
  0x4d   : > { %314 = vst [vmem:[#allocation2 + $0x50] sm:$0xff] %v12359_v0  ;;  %315 = vst [vmem:[#allocation2 + $0x68] sm:$0xff] %v12359_v0  ;;  %10074 = vmatpush3.bf16.msra.mxu0 %v12036_v15  ;;  %9883 = vmatprep.subr.bf16.mxu1 %v12037_v18  ;;  %v365_v7 = vld [vmem:[%s12562_s14 + $0xb0] sm:$0xff]  ;;  %v366_v8 = vld [vmem:[%s12562_s14 + $0xb8] sm:$0xff]  ;;  %p12289_p6 = scmp.ne.s32.totalorder %s13795_s18, %s12288_s25  ;;  %s12362_s29 = smov [#allocation8]  }
  0x4e   : > { %316 = vst [vmem:[#allocation2 + $0x70] sm:$0xff] %v12359_v0  ;;  %317 = vst [vmem:[#allocation2 + $0x88] sm:$0xff] %v12359_v0  ;;  %10075 = vmatprep.subr.bf16.mxu0 %v12038_v21  ;;  %v12049_v9 = vld [vmem:[#allocation5 + $0x168] sm:$0xff]   ;;  %v367_v10 = vld [vmem:[%s12562_s14 + $0xc0] sm:$0xff]  ;;  %s12292_s10 = sshll.u32 %s12362_s29, 4  ;;  %s12293_s10 = int_to_ptr.vmem [resolvable:$false] %s12292_s10 }
  0x4f   : > { %318 = vst [vmem:[#allocation2 + $0x90] sm:$0xff] %v12359_v0  ;;  %319 = vst [vmem:[#allocation2 + $0xa8] sm:$0xff] %v12359_v0  ;;  %v368_v11 = vld [vmem:[%s12562_s14 + $0xc8] sm:$0xff]  ;;  %p12290_p10 = pnand %p12289_p6, %p13918_p9  ;;  %s12294_s9 = scalar_lea.vmem %s12293_s10, 32 }
  0x50   : > { %320 = vst [vmem:[#allocation2 + $0xb0] sm:$0xff] %v12359_v0  ;;  %321 = vst [vmem:[#allocation2 + $0xc8] sm:$0xff] %v12359_v0  ;;  %9884 = vmatpush3.bf16.msra.mxu1 %v12037_v18  ;;  %v12055_v12 = vld [vmem:[#allocation5 + $0x28] sm:$0xff]   ;;  %v12057_v18 = vld [vmem:[#allocation5 + $0x30] sm:$0xff]   ;;  %p12295_p2 = scmp.lt.s32.totalorder %s13795_s18, %s12293_s10  ;;  %p12296_p3 = scmp.lt.s32.totalorder %s12294_s9, %s12288_s25 }
  0x51   : > { %322 = vst [vmem:[#allocation2 + $0xd0] sm:$0xff] %v12359_v0  ;;  %323 = vst [vmem:[#allocation2 + $0xe8] sm:$0xff] %v12359_v0  ;;  %10076 = vmatpush3.bf16.msra.mxu0 %v12038_v21  ;;  %9885 = vmatprep.subr.bf16.mxu1 %v12039_v24  ;;  %p12291_p12 = pneg %p12290_p10 }
  0x52   : > { %324 = vst [vmem:[#allocation2 + $0xf0] sm:$0xff] %v12359_v0  ;;  %325 = vst [vmem:[#allocation2 + $0x108] sm:$0xff] %v12359_v0  ;;  %10077 = vmatprep.subr.bf16.mxu0 %v12040_v27  ;;  %p12297_p4 = por %p12296_p3, %p12295_p2 }
  0x53   : > { %326 = vst [vmem:[#allocation2 + $0x110] sm:$0xff] %v12359_v0  ;;  %327 = vst [vmem:[#allocation2 + $0x128] sm:$0xff] %v12359_v0 }
  0x54   : > { %328 = vst [vmem:[#allocation2 + $0x130] sm:$0xff] %v12359_v0  ;;  %329 = vst [vmem:[#allocation2 + $0x148] sm:$0xff] %v12359_v0  ;;  %9886 = vmatpush3.bf16.msra.mxu1 %v12039_v24  ;;  %p12298_p7 = pnand %p12297_p4, %p12291_p12 }
  0x55   : > { %330 = vst [vmem:[#allocation2 + $0x150] sm:$0xff] %v12359_v0  ;;  %331 = vst [vmem:[#allocation2 + $0x168] sm:$0xff] %v12359_v0  ;;  %10078 = vmatpush3.bf16.msra.mxu0 %v12040_v27  ;;  %9919 = vmatprep.subr.bf16.mxu1 %v12041_v31 }
  0x56   : > { %332 = vst [vmem:[#allocation2 + $0x170] sm:$0xff] %v12359_v0  ;;  %333 = vst [vmem:[#allocation2 + $0x188] sm:$0xff] %v12359_v0  ;;  %10111 = vmatprep.subr.bf16.mxu0 %v12042_v36 }
  0x57   : > { %334 = vst [vmem:[#allocation2 + $0x190] sm:$0xff] %v12359_v0  ;;  %335 = vst [vmem:[#allocation2 + $0x1a8] sm:$0xff] %v12359_v0 }
  0x58   : > { %336 = vst [vmem:[#allocation2 + $0x1b0] sm:$0xff] %v12359_v0  ;;  %337 = vst [vmem:[#allocation2 + $0x1c8] sm:$0xff] %v12359_v0 }
  0x59   : > { %338 = vst [vmem:[#allocation2 + $0x1d0] sm:$0xff] %v12359_v0  ;;  %339 = vst [vmem:[#allocation2 + $0x1e8] sm:$0xff] %v12359_v0 }
  0x5a   : > { %340 = vst [vmem:[#allocation2 + $0x1f0] sm:$0xff] %v12359_v0  ;;  %341 = vst [vmem:[#allocation2 + $0x208] sm:$0xff] %v12359_v0 }
  0x5b   : > { %342 = vst [vmem:[#allocation2 + $0x210] sm:$0xff] %v12359_v0  ;;  %274 = vst [vmem:[#allocation2 + $0x7] sm:$0x1] %v12359_v0 }
  0x5c   : > { %291 = vst [vmem:[#allocation2 + $0x227] sm:$0x1] %v12359_v0  ;;  %292 = vst [vmem:[#allocation2 + $0x18] sm:$0x1] %v12359_v0 }
  0x5d   : > { %309 = vst [vmem:[#allocation2 + $0x238] sm:$0x1] %v12359_v0  ;;  %376 = vst.msk [vmem:[#allocation2 + $0x28] sm:$0xff] %vm375_vm0, %v343_v13  ;;  %v363_v0 = vld [vmem:[%s12562_s14 + $0xa0] sm:$0xff]  ;;  %v12051_v13 = vld [vmem:[#allocation5 + $0x170] sm:$0xff]  }
  0x5e   : > { %377 = vst.msk [vmem:[#allocation2 + $0x30] sm:$0xff] %vm375_vm0, %v344_v14  ;;  %378 = vst.msk [vmem:[#allocation2 + $0x48] sm:$0xff] %vm375_vm0, %v345_v16 }
  0x5f   : > { %379 = vst.msk [vmem:[#allocation2 + $0x50] sm:$0xff] %vm375_vm0, %v346_v17  ;;  %380 = vst.msk [vmem:[#allocation2 + $0x68] sm:$0xff] %vm375_vm0, %v347_v19  ;;  %v369_v19 = vld [vmem:[%s12562_s14 + $0xd0] sm:$0xff] }
  0x60   : > { %381 = vst.msk [vmem:[#allocation2 + $0x70] sm:$0xff] %vm375_vm0, %v348_v20  ;;  %382 = vst.msk [vmem:[#allocation2 + $0x88] sm:$0xff] %vm375_vm0, %v349_v22  ;;  %v370_v20 = vld [vmem:[%s12562_s14 + $0xd8] sm:$0xff]  ;;  %v371_v22 = vld [vmem:[%s12562_s14 + $0xe0] sm:$0xff] }
  0x61   : > { %383 = vst.msk [vmem:[#allocation2 + $0x90] sm:$0xff] %vm375_vm0, %v350_v23  ;;  %384 = vst.msk [vmem:[#allocation2 + $0xa8] sm:$0xff] %vm375_vm0, %v351_v29  ;;  %v372_v23 = vld [vmem:[%s12562_s14 + $0xe8] sm:$0xff] }
  0x62   : > { %385 = vst.msk [vmem:[#allocation2 + $0xb0] sm:$0xff] %vm375_vm0, %v352_v30  ;;  %386 = vst.msk [vmem:[#allocation2 + $0xc8] sm:$0xff] %vm375_vm0, %v353_v32 }
  0x63   : > { %387 = vst.msk [vmem:[#allocation2 + $0xd0] sm:$0xff] %vm375_vm0, %v354_v35  ;;  %388 = vst.msk [vmem:[#allocation2 + $0xe8] sm:$0xff] %vm375_vm0, %v355_v40 }
  0x64   : > { %v482_v25 = vld [vmem:[#allocation2 + $0x28] sm:$0xff]  ;;  %389 = vst.msk [vmem:[#allocation2 + $0xf0] sm:$0xff] %vm375_vm0, %v356_v41  ;;  %390 = vst.msk [vmem:[#allocation2 + $0x108] sm:$0xff] %vm375_vm0, %v357_v44  ;;  %v12663_v41 = vld [vmem:[#allocation5 + $0x80] sm:$0xff]  }
  0x65   : > { %v483_v26 = vld [vmem:[#allocation2 + $0x30] sm:$0xff]  ;;  %v484_v33 = vld [vmem:[#allocation2 + $0x48] sm:$0xff]  ;;  %391 = vst.msk [vmem:[#allocation2 + $0x110] sm:$0xff] %vm375_vm0, %v358_v46  ;;  %392 = vst.msk [vmem:[#allocation2 + $0x128] sm:$0xff] %vm375_vm0, %v359_v53 }
  0x66   : > { %v517_v28 = vpack.c.bf16 %v483_v26, %v482_v25  ;;  %v485_v34 = vld [vmem:[#allocation2 + $0x50] sm:$0xff]  ;;  %v486_v37 = vld [vmem:[#allocation2 + $0x68] sm:$0xff]  ;;  %393 = vst.msk [vmem:[#allocation2 + $0x130] sm:$0xff] %vm375_vm0, %v360_v54  ;;  %394 = vst.msk [vmem:[#allocation2 + $0x148] sm:$0xff] %vm375_vm0, %v361_v59 }
  0x67   : > { %v487_v38 = vld [vmem:[#allocation2 + $0x70] sm:$0xff]  ;;  %v12588_v39 = vpack.c.bf16 %v485_v34, %v484_v33  ;;  %v488_v47 = vld [vmem:[#allocation2 + $0x88] sm:$0xff]  ;;  %395 = vst.msk [vmem:[#allocation2 + $0x150] sm:$0xff] %vm375_vm0, %v362_v63  ;;  %396 = vst.msk [vmem:[#allocation2 + $0x168] sm:$0xff] %vm375_vm0, %v363_v0 }
  0x68   : > { %10079 = vmatprep.mubr.bf16.mxu0 %v517_v28  ;;  %v12593_v43 = vpack.c.bf16 %v487_v38, %v486_v37  ;;  %9888 = vmatmul.mubr.bf16.vlgmr.msra.gmra.mrb[0].mxu1 %v517_v28  ;;  %v489_v49 = vld [vmem:[#allocation2 + $0x90] sm:$0xff]  ;;  %v490_v51 = vld [vmem:[#allocation2 + $0xa8] sm:$0xff]  ;;  %397 = vst.msk [vmem:[#allocation2 + $0x170] sm:$0xff] %vm375_vm0, %v364_v1  ;;  %398 = vst.msk [vmem:[#allocation2 + $0x188] sm:$0xff] %vm375_vm0, %v365_v7 }
  0x69   : > { %10080 = vmatmul.mubr.bf16.vlgmr.msra.gmra.mrb[0].mxu0 %v12588_v39  ;;  %9920 = vmatpush3.bf16.msra.mxu1 %v12041_v31  ;;  %v491_v52 = vld [vmem:[#allocation2 + $0xb0] sm:$0xff]  ;;  %v12605_v55 = vpack.c.bf16 %v489_v49, %v488_v47  ;;  %v492_v60 = vld [vmem:[#allocation2 + $0xc8] sm:$0xff]  ;;  %399 = vst.msk [vmem:[#allocation2 + $0x190] sm:$0xff] %vm375_vm0, %v366_v8  ;;  %400 = vst.msk [vmem:[#allocation2 + $0x1a8] sm:$0xff] %vm375_vm0, %v367_v10 }
  0x6a   : > { %10112 = vmatpush3.bf16.msra.mxu0 %v12042_v36  ;;  %9891 = vmatprep.mubr.bf16.mxu1 %v12588_v39  ;;  %v12609_v56 = vpack.c.bf16 %v491_v52, %v490_v51  ;;  %v493_v61 = vld [vmem:[#allocation2 + $0xd0] sm:$0xff]  ;;  %v494_v2 = vld [vmem:[#allocation2 + $0xe8] sm:$0xff]  ;;  %401 = vst.msk [vmem:[#allocation2 + $0x1b0] sm:$0xff] %vm375_vm0, %v368_v11  ;;  %402 = vst.msk [vmem:[#allocation2 + $0x1c8] sm:$0xff] %vm375_vm0, %v369_v19 }
  0x6b   : > { %10113 = vmatprep.subr.bf16.mxu0 %v12043_v42  ;;  %10083 = vmatprep.mubr.bf16.mxu0 %v12593_v43  ;;  %v495_v3 = vld [vmem:[#allocation2 + $0xf0] sm:$0xff]  ;;  %v12623_v5 = vpack.c.bf16 %v493_v61, %v492_v60  ;;  %v496_v14 = vld [vmem:[#allocation2 + $0x108] sm:$0xff]  ;;  %403 = vst.msk [vmem:[#allocation2 + $0x1d0] sm:$0xff] %vm375_vm0, %v370_v20  ;;  %404 = vst.msk [vmem:[#allocation2 + $0x1e8] sm:$0xff] %vm375_vm0, %v371_v22 }
  0x6c   : > { %9921 = vmatprep.subr.bf16.mxu1 %v12044_v45  ;;  %v12625_v6 = vpack.c.bf16 %v495_v3, %v494_v2  ;;  %v497_v15 = vld [vmem:[#allocation2 + $0x110] sm:$0xff]  ;;  %405 = vst.msk [vmem:[#allocation2 + $0x1f0] sm:$0xff] %vm375_vm0, %v372_v23  ;;  %v12052_v25 = vld [vmem:[#allocation5 + $0x178] sm:$0xff]   ;;  %v498_v26 = vld [vmem:[#allocation2 + $0x128] sm:$0xff] }
  0x6d   : > { %9922 = vmatpush3.bf16.msra.mxu1 %v12044_v45  ;;  %v555_v16 = vld [vmem:[#allocation2 + $0x29] sm:$0xff]  ;;  %v556_v17 = vld [vmem:[#allocation2 + $0x31] sm:$0xff]  ;;  %v12641_v21 = vpack.c.bf16 %v497_v15, %v496_v14  ;;  %v12054_v33 = vld [vmem:[#allocation5 + $0x180] sm:$0xff]  }
  0x6e   : > { %10114 = vmatpush3.bf16.msra.mxu0 %v12043_v42  ;;  %9923 = vmatprep.subr.bf16.mxu1 %v12047_v48  ;;  %v12647_v24 = vpack.c.bf16 %v556_v17, %v555_v16  ;;  %v557_v27 = vld [vmem:[#allocation2 + $0x49] sm:$0xff]  ;;  %v12059_v28 = vld [vmem:[#allocation5 + $0x38] sm:$0xff]  }
  0x6f   : > { %10115 = vmatprep.subr.bf16.mxu0 %v12045_v50  ;;  %v499_v29 = vld [vmem:[#allocation2 + $0x130] sm:$0xff]  ;;  %v500_v31 = vld [vmem:[#allocation2 + $0x148] sm:$0xff]  ;;  %v12060_v59 = vld [vmem:[#allocation5 + $0x198] sm:$0xff]  }
  0x70   : > { %9892 = vmatmul.mubr.bf16.gmra.mrb[4].mxu1 %v12593_v43  ;;  %v558_v30 = vld [vmem:[#allocation2 + $0x51] sm:$0xff]  ;;  %v559_v34 = vld [vmem:[#allocation2 + $0x69] sm:$0xff]  ;;  %v12655_v36 = vpack.c.bf16 %v499_v29, %v498_v26 }
  0x71   : > { %10084 = vmatmul.mubr.bf16.gmra.mrb[4].mxu0 %v12605_v55  ;;  %9895 = vmatprep.mubr.bf16.mxu1 %v12605_v55  ;;  %v501_v32 = vld [vmem:[#allocation2 + $0x150] sm:$0xff]  ;;  %v12657_v37 = vpack.c.bf16 %v558_v30, %v557_v27  ;;  %v12056_v42 = vld [vmem:[#allocation5 + $0x188] sm:$0xff]  }
  0x72   : > { %10116 = vmatpush3.bf16.msra.mxu0 %v12045_v50  ;;  %10087 = vmatprep.mubr.bf16.mxu0 %v12609_v56  ;;  %v560_v35 = vld [vmem:[#allocation2 + $0x71] sm:$0xff]  ;;  %v12659_v38 = vpack.c.bf16 %v501_v32, %v500_v31  ;;  %v561_v44 = vld [vmem:[#allocation2 + $0x89] sm:$0xff] }
  0x73   : > { %10117 = vmatprep.subr.bf16.mxu0 %v12046_v57  ;;  %9924 = vmatpush3.bf16.msra.mxu1 %v12047_v48  ;;  %v12661_v40 = vpack.c.bf16 %v560_v35, %v559_v34  ;;  %v562_v45 = vld [vmem:[#allocation2 + $0x91] sm:$0xff]  ;;  %v502_v46 = vld [vmem:[#allocation2 + $0x168] sm:$0xff] }
  0x74   : > { %9925 = vmatprep.subr.bf16.mxu1 %v12050_v58  ;;  %v503_v47 = vld [vmem:[#allocation2 + $0x170] sm:$0xff]  ;;  %v504_v48 = vld [vmem:[#allocation2 + $0x188] sm:$0xff]  ;;  %v12672_v54 = vpack.c.bf16 %v562_v45, %v561_v44  ;;  %v12068_v31 = vld [vmem:[#allocation5 + $0x1b8] sm:$0xff]  }
  0x75   : > { %v563_v49 = vld [vmem:[#allocation2 + $0xa9] sm:$0xff]  ;;  %v564_v51 = vld [vmem:[#allocation2 + $0xb1] sm:$0xff]  ;;  %v12670_v53 = vpack.c.bf16 %v503_v47, %v502_v46  ;;  %v12707_v45 = vld [vmem:[#allocation5 + $0x1c0] sm:$0xff]  }
  0x76   : > { %10118 = vmatpush3.bf16.msra.mxu0 %v12046_v57  ;;  %v505_v50 = vld [vmem:[#allocation2 + $0x190] sm:$0xff]  ;;  %v508_v1 = vld [vmem:[#allocation2 + $0x1c8] sm:$0xff] }
  0x77   : > { %10119 = vmatprep.subr.bf16.mxu0 %v12048_v62  ;;  %9926 = vmatpush3.bf16.msra.mxu1 %v12050_v58  ;;  %v12058_v52 = vld [vmem:[#allocation5 + $0x190] sm:$0xff]   ;;  %v12674_v57 = vpack.c.bf16 %v505_v50, %v504_v48  ;;  %v12676_v58 = vpack.c.bf16 %v564_v51, %v563_v49  ;;  %v408_v16 = vld [vmem:[#allocation2 + $0x7] sm:$0xff] }
  0x78   : > { %9896 = vmatmul.mubr.bf16.gmra.mrb[8].mxu1 %v12609_v56  ;;  %9927 = vmatprep.subr.bf16.mxu1 %v12053_v4  ;;  %v565_v60 = vld [vmem:[#allocation2 + $0xc9] sm:$0xff]  ;;  %v566_v61 = vld [vmem:[#allocation2 + $0xd1] sm:$0xff] }
  0x79   : > { %10088 = vmatmul.mubr.bf16.gmra.mrb[8].mxu0 %v12623_v5  ;;  %9899 = vmatprep.mubr.bf16.mxu1 %v12623_v5  ;;  %v507_v63 = vld [vmem:[#allocation2 + $0x1b0] sm:$0xff]  ;;  %v12686_v10 = vpack.c.bf16 %v566_v61, %v565_v60  ;;  %v510_v17 = vld [vmem:[#allocation2 + $0x1e8] sm:$0xff] }
  0x7a   : > { %10120 = vmatpush3.bf16.msra.mxu0 %v12048_v62  ;;  %10091 = vmatprep.mubr.bf16.mxu0 %v12625_v6  ;;  %v506_v62 = vld [vmem:[#allocation2 + $0x1a8] sm:$0xff]  ;;  %v509_v2 = vld [vmem:[#allocation2 + $0x1d0] sm:$0xff] }
  0x7b   : > { %10121 = vmatprep.subr.bf16.mxu0 %v12049_v9  ;;  %9928 = vmatpush3.bf16.msra.mxu1 %v12053_v4  ;;  %v567_v0 = vld [vmem:[#allocation2 + $0xe9] sm:$0xff]  ;;  %v568_v3 = vld [vmem:[#allocation2 + $0xf1] sm:$0xff]  ;;  %v12062_v4 = vld [vmem:[#allocation5 + $0x1a0] sm:$0xff]   ;;  %v12682_v7 = vpack.c.bf16 %v507_v63, %v506_v62  ;;  %v12688_v11 = vpack.c.bf16 %v509_v2, %v508_v1 }
  0x7c   : > { %9929 = vmatprep.subr.bf16.mxu1 %v12055_v12  ;;  %v373_v8 = vld [vmem:[%s12562_s14 + $0xf0] sm:$0xff]  ;;  %v410_v29 = vld [vmem:[#allocation2 + $0x27] sm:$0xff] }
  0x7d   : > { %406 = vst.msk [vmem:[#allocation2 + $0x208] sm:$0xff] %vm375_vm0, %v373_v8  ;;  %v569_v14 = vld [vmem:[#allocation2 + $0x109] sm:$0xff]  ;;  %v570_v15 = vld [vmem:[#allocation2 + $0x111] sm:$0xff] }
  0x7e   : > { %10122 = vmatpush3.bf16.msra.mxu0 %v12049_v9  ;;  %v374_v9 = vld [vmem:[%s12562_s14 + $0xf8] sm:$0xff]  ;;  %v409_v19 = vld [vmem:[#allocation2 + $0xf] sm:$0xff]  ;;  %v12700_v26 = vpack.c.bf16 %v570_v15, %v569_v14  ;;  %v412_v34 = vld [vmem:[#allocation2 + $0x47] sm:$0xff] }
  0x7f   : > { %10123 = vmatprep.subr.bf16.mxu0 %v12051_v13  ;;  %9930 = vmatpush3.bf16.msra.mxu1 %v12055_v12  ;;  %407 = vst.msk [vmem:[#allocation2 + $0x210] sm:$0xff] %vm375_vm0, %v374_v9  ;;  %v12692_v12 = vpack.c.bf16 %v568_v3, %v567_v0  ;;  %v571_v20 = vld [vmem:[#allocation2 + $0x129] sm:$0xff]  ;;  %v572_v22 = vld [vmem:[#allocation2 + $0x131] sm:$0xff]  ;;  %v444_v27 = vpack.c.bf16 %v409_v19, %v408_v16 }
  0x80   : > { %9900 = vmatmul.mubr.bf16.gmra.mrb[12].mxu1 %v12625_v6  ;;  %9931 = vmatprep.subr.bf16.mxu1 %v12057_v18  ;;  %v12066_v23 = vld [vmem:[#allocation5 + $0x1b0] sm:$0xff]   ;;  %v414_v50 = vld [vmem:[#allocation2 + $0x67] sm:$0xff] }
  0x81   : > { %10092 = vmatmul.mubr.bf16.gmra.mrb[12].mxu0 %v12641_v21  ;;  %9903 = vmatprep.mubr.bf16.mxu1 %v12641_v21  ;;  %v411_v30 = vld [vmem:[#allocation2 + $0x2f] sm:$0xff]  ;;  %v416_v61 = vld [vmem:[#allocation2 + $0x87] sm:$0xff] }
  0x82   : > { %10124 = vmatpush3.bf16.msra.mxu0 %v12051_v13  ;;  %10127 = vmatprep.mubr.bf16.mxu0 %v12647_v24  ;;  %v12064_v13 = vld [vmem:[#allocation5 + $0x1a8] sm:$0xff]   ;;  %v576_v44 = vld [vmem:[#allocation2 + $0x171] sm:$0xff]  ;;  %v12709_v46 = vpack.c.bf16 %v411_v30, %v410_v29 }
  0x83   : > { %10125 = vmatprep.subr.bf16.mxu0 %v12052_v25  ;;  %9932 = vmatpush3.bf16.msra.mxu1 %v12057_v18  ;;  %v511_v18 = vld [vmem:[#allocation2 + $0x1f0] sm:$0xff]  ;;  %v420_v16 = vld [vmem:[#allocation2 + $0xc7] sm:$0xff] }
  0x84   : > { %9933 = vmatprep.subr.bf16.mxu1 %v12059_v28  ;;  %v573_v32 = vld [vmem:[#allocation2 + $0x149] sm:$0xff]  ;;  %v578_v60 = vld [vmem:[#allocation2 + $0x191] sm:$0xff] }
  0x85   : > { %v413_v35 = vld [vmem:[#allocation2 + $0x4f] sm:$0xff]  ;;  %v422_v30 = vld [vmem:[#allocation2 + $0xe7] sm:$0xff] }
  0x86   : > { %10126 = vmatpush3.bf16.msra.mxu0 %v12052_v25  ;;  %v12698_v25 = vpack.c.bf16 %v511_v18, %v510_v17  ;;  %v12713_v48 = vpack.c.bf16 %v413_v35, %v412_v34  ;;  %v415_v51 = vld [vmem:[#allocation2 + $0x6f] sm:$0xff] }
  0x87   : > { %10159 = vmatprep.subr.bf16.mxu0 %v12054_v33  ;;  %9934 = vmatpush3.bf16.msra.mxu1 %v12059_v28  ;;  %v12702_v28 = vpack.c.bf16 %v572_v22, %v571_v20  ;;  %v417_v62 = vld [vmem:[#allocation2 + $0x8f] sm:$0xff]  ;;  %v12723_v2 = vpack.c.bf16 %v415_v51, %v414_v50  ;;  %v12069_v20 = vld [vmem:[#allocation5 + $0xa0] sm:$0xff]  }
  0x88   : > { %9904 = vmatmul.mubr.bf16.gmra.mrb[16].mxu1 %v12655_v36  ;;  %9967 = vmatprep.subr.bf16.mxu1 %v12663_v41  ;;  %v579_v63 = vld [vmem:[#allocation2 + $0x1a9] sm:$0xff]  ;;  %v580_v1 = vld [vmem:[#allocation2 + $0x1b1] sm:$0xff] }
  0x89   : > { %10128 = vmatmul.mubr.bf16.vlgmr.msra.gmra.mrb[0].mxu0 %v12657_v37  ;;  %9907 = vmatprep.mubr.bf16.mxu1 %v12659_v38  ;;  %v12065_v0 = vld [vmem:[#allocation5 + $0x90] sm:$0xff]   ;;  %v12729_v8 = vpack.c.bf16 %v580_v1, %v579_v63 }
  0x8a   : > { %10160 = vmatpush3.bf16.msra.mxu0 %v12054_v33  ;;  %10131 = vmatprep.mubr.bf16.mxu0 %v12661_v40  ;;  %v574_v33 = vld [vmem:[#allocation2 + $0x151] sm:$0xff]  ;;  %v581_v14 = vld [vmem:[#allocation2 + $0x1c9] sm:$0xff] }
  0x8b   : > { %10161 = vmatprep.subr.bf16.mxu0 %v12056_v42  ;;  %v12711_v47 = vpack.c.bf16 %v574_v33, %v573_v32  ;;  %v419_v9 = vld [vmem:[#allocation2 + $0xaf] sm:$0xff]  ;;  %v424_v33 = vld [vmem:[#allocation2 + $0x107] sm:$0xff] }
  0x8c   : > { %v582_v15 = vld [vmem:[#allocation2 + $0x1d1] sm:$0xff]  ;;  %v583_v18 = vld [vmem:[#allocation2 + $0x1e9] sm:$0xff] }
  0x8d   : > { %v421_v17 = vld [vmem:[#allocation2 + $0xcf] sm:$0xff] }
  0x8e   : > { %10162 = vmatpush3.bf16.msra.mxu0 %v12056_v42  ;;  %v575_v42 = vld [vmem:[#allocation2 + $0x169] sm:$0xff]  ;;  %v584_v19 = vld [vmem:[#allocation2 + $0x1f1] sm:$0xff] }
  0x8f   : > { %10163 = vmatprep.subr.bf16.mxu0 %v12058_v52  ;;  %v12715_v49 = vpack.c.bf16 %v576_v44, %v575_v42  ;;  %v12741_v29 = vpack.c.bf16 %v584_v19, %v583_v18  ;;  %v12071_v32 = vld [vmem:[#allocation5 + $0xa8] sm:$0xff]   ;;  %v586_v42 = vld [vmem:[#allocation2 + $0x211] sm:$0xff] }
  0x90   : > { %9908 = vmatmul.mubr.bf16.gmra.mrb[20].mxu1 %v12670_v53  ;;  %v425_v34 = vld [vmem:[#allocation2 + $0x10f] sm:$0xff] }
  0x91   : > { %10132 = vmatmul.mubr.bf16.gmra.mrb[4].mxu0 %v12672_v54  ;;  %9911 = vmatprep.mubr.bf16.mxu1 %v12674_v57  ;;  %v585_v35 = vld [vmem:[#allocation2 + $0x209] sm:$0xff] }
  0x92   : > { %10135 = vmatprep.mubr.bf16.mxu0 %v12676_v58  ;;  %10164 = vmatpush3.bf16.msra.mxu0 %v12058_v52  ;;  %v12063_v52 = vld [vmem:[#allocation5 + $0x88] sm:$0xff]   ;;  %v12073_v44 = vld [vmem:[#allocation5 + $0xb0] sm:$0xff]   ;;  %v12749_v51 = vpack.c.bf16 %v586_v42, %v585_v35 }
  0x93   : > { %10165 = vmatprep.subr.bf16.mxu0 %v12060_v59  ;;  %v429_v63 = vld [vmem:[#allocation2 + $0x14f] sm:$0xff] }
  0x94   : > { %v12080_v42 = vld [vmem:[#allocation5 + $0x1e8] sm:$0xff]  }
  0x96   : > { %10166 = vmatpush3.bf16.msra.mxu0 %v12060_v59  ;;  %v577_v59 = vld [vmem:[#allocation2 + $0x189] sm:$0xff] }
  0x97   : > { %10167 = vmatprep.subr.bf16.mxu0 %v12062_v4  ;;  %v12725_v3 = vpack.c.bf16 %v578_v60, %v577_v59  ;;  %v12075_v59 = vld [vmem:[#allocation5 + $0xb8] sm:$0xff]   ;;  %v426_v60 = vld [vmem:[#allocation2 + $0x127] sm:$0xff] }
  0x98   : > { %9912 = vmatmul.mubr.bf16.gmra.mrb[24].mxu1 %v12682_v7 }
  0x99   : > { %10136 = vmatmul.mubr.bf16.gmra.mrb[8].mxu0 %v12686_v10  ;;  %9915 = vmatprep.mubr.bf16.mxu1 %v12688_v11 }
  0x9a   : > { %10139 = vmatprep.mubr.bf16.mxu0 %v12692_v12  ;;  %10168 = vmatpush3.bf16.msra.mxu0 %v12062_v4  ;;  %v12727_v4 = vpack.c.bf16 %v417_v62, %v416_v61  ;;  %v427_v61 = vld [vmem:[#allocation2 + $0x12f] sm:$0xff]  ;;  %v428_v62 = vld [vmem:[#allocation2 + $0x147] sm:$0xff] }
  0x9b   : > { %10169 = vmatprep.subr.bf16.mxu0 %v12064_v13  ;;  %v12759_v1 = vpack.c.bf16 %v427_v61, %v426_v60  ;;  %v553_v60 = vld [vmem:[#allocation2 + $0x9] sm:$0xff]  ;;  %v554_v61 = vld [vmem:[#allocation2 + $0x11] sm:$0xff] }
  0x9e   : > { %10170 = vmatpush3.bf16.msra.mxu0 %v12064_v13  ;;  %v12067_v13 = vld [vmem:[#allocation5 + $0x98] sm:$0xff]  }
  0x9f   : > { %10171 = vmatprep.subr.bf16.mxu0 %v12066_v23 }
  0xa0   : > { %9916 = vmatmul.mubr.bf16.gmra.mrb[28].mxu1 %v12698_v25 }
  0xa1   : > { %10140 = vmatmul.mubr.bf16.gmra.mrb[12].mxu0 %v12700_v26  ;;  %9935 = vmatprep.mubr.bf16.mxu1 %v444_v27  ;;  %v12739_v27 = vpack.c.bf16 %v421_v17, %v420_v16  ;;  %v433_v16 = vld [vmem:[#allocation2 + $0x18f] sm:$0xff] }
  0xa2   : > { %10143 = vmatprep.mubr.bf16.mxu0 %v12702_v28  ;;  %10172 = vmatpush3.bf16.msra.mxu0 %v12066_v23  ;;  %v12737_v23 = vpack.c.bf16 %v582_v15, %v581_v14  ;;  %v431_v14 = vld [vmem:[#allocation2 + $0x16f] sm:$0xff]  ;;  %v432_v15 = vld [vmem:[#allocation2 + $0x187] sm:$0xff] }
  0xa3   : > { %10173 = vmatprep.subr.bf16.mxu0 %v12068_v31  ;;  %v12074_v17 = vld [vmem:[#allocation5 + $0x1d0] sm:$0xff]   ;;  %v12771_v19 = vpack.c.bf16 %v433_v16, %v432_v15  ;;  %v12079_v15 = vld [vmem:[#allocation5 + $0xc8] sm:$0xff]  }
  0xa4   : > { %v12081_v16 = vld [vmem:[#allocation5 + $0xd0] sm:$0xff]  }
  0xa6   : > { %10174 = vmatpush3.bf16.msra.mxu0 %v12068_v31  ;;  %v423_v31 = vld [vmem:[#allocation2 + $0xef] sm:$0xff] }
  0xa7   : > { %10207 = vmatprep.subr.bf16.mxu0 %v12707_v45  ;;  %v12747_v50 = vpack.c.bf16 %v423_v31, %v422_v30  ;;  %v434_v30 = vld [vmem:[#allocation2 + $0x1a7] sm:$0xff]  ;;  %v435_v31 = vld [vmem:[#allocation2 + $0x1af] sm:$0xff] }
  0xa8   : > { %9936 = vmatmul.mubr.bf16.vlgmr.msra.gmra.mrb[0].mxu1 %v12709_v46 }
  0xa9   : > { %10144 = vmatmul.mubr.bf16.gmra.mrb[16].mxu0 %v12711_v47  ;;  %9968 = vmatpush3.bf16.msra.mxu1 %v12663_v41  ;;  %v418_v41 = vld [vmem:[#allocation2 + $0xa7] sm:$0xff] }
  0xaa   : > { %9939 = vmatprep.mubr.bf16.mxu1 %v12713_v48  ;;  %10147 = vmatprep.mubr.bf16.mxu0 %v12715_v49  ;;  %v12735_v22 = vpack.c.bf16 %v419_v9, %v418_v41  ;;  %v12761_v41 = vpack.c.bf16 %v429_v63, %v428_v62  ;;  %v12072_v9 = vld [vmem:[#allocation5 + $0x1c8] sm:$0xff]   ;;  %v12082_v62 = vld [vmem:[#allocation5 + $0x1f0] sm:$0xff]  }
  0xab   : > { %9969 = vmatprep.subr.bf16.mxu1 %v12063_v52 }
  0xad   : > { %9970 = vmatpush3.bf16.msra.mxu1 %v12063_v52  ;;  %v12751_v52 = vpack.c.bf16 %v425_v34, %v424_v33  ;;  %v437_v33 = vld [vmem:[#allocation2 + $0x1cf] sm:$0xff]  ;;  %v12777_v34 = vpack.c.bf16 %v435_v31, %v434_v30  ;;  %v12085_v30 = vld [vmem:[#allocation5 + $0xe0] sm:$0xff]  }
  0xae   : > { %9971 = vmatprep.subr.bf16.mxu1 %v12065_v0 }
  0xb0   : > { %9940 = vmatmul.mubr.bf16.gmra.mrb[4].mxu1 %v12723_v2 }
  0xb1   : > { %10148 = vmatmul.mubr.bf16.gmra.mrb[20].mxu0 %v12725_v3  ;;  %9943 = vmatprep.mubr.bf16.mxu1 %v12727_v4 }
  0xb2   : > { %10151 = vmatprep.mubr.bf16.mxu0 %v12729_v8  ;;  %9972 = vmatpush3.bf16.msra.mxu1 %v12065_v0  ;;  %v12756_v0 = vld [vmem:[#allocation5 + $0xc0] sm:$0xff]  }
  0xb3   : > { %9973 = vmatprep.subr.bf16.mxu1 %v12067_v13 }
  0xb6   : > { %9974 = vmatpush3.bf16.msra.mxu1 %v12067_v13  ;;  %v430_v13 = vld [vmem:[#allocation2 + $0x167] sm:$0xff] }
  0xb7   : > { %9975 = vmatprep.subr.bf16.mxu1 %v12069_v20  ;;  %v12769_v18 = vpack.c.bf16 %v431_v14, %v430_v13  ;;  %v12084_v13 = vld [vmem:[#allocation5 + $0x1f8] sm:$0xff]   ;;  %v12086_v14 = vld [vmem:[#allocation5 + $0x200] sm:$0xff]  }
  0xb8   : > { %9944 = vmatmul.mubr.bf16.gmra.mrb[8].mxu1 %v12735_v22 }
  0xb9   : > { %10152 = vmatmul.mubr.bf16.gmra.mrb[24].mxu0 %v12737_v23  ;;  %9947 = vmatprep.mubr.bf16.mxu1 %v12739_v27 }
  0xba   : > { %10155 = vmatprep.mubr.bf16.mxu0 %v12741_v29  ;;  %9976 = vmatpush3.bf16.msra.mxu1 %v12069_v20  ;;  %v12076_v20 = vld [vmem:[#allocation5 + $0x1d8] sm:$0xff]  }
  0xbb   : > { %9977 = vmatprep.subr.bf16.mxu1 %v12071_v32 }
  0xbe   : > { %9978 = vmatpush3.bf16.msra.mxu1 %v12071_v32  ;;  %v436_v32 = vld [vmem:[#allocation2 + $0x1c7] sm:$0xff] }
  0xbf   : > { %9979 = vmatprep.subr.bf16.mxu1 %v12073_v44  ;;  %v12779_v35 = vpack.c.bf16 %v437_v33, %v436_v32  ;;  %v442_v32 = vld [vmem:[#allocation2 + $0x227] sm:$0xff]  ;;  %v443_v33 = vld [vmem:[#allocation2 + $0x22f] sm:$0xff] }
  0xc0   : > { %9948 = vmatmul.mubr.bf16.gmra.mrb[12].mxu1 %v12747_v50 }
  0xc1   : > { %10156 = vmatmul.mubr.bf16.gmra.mrb[28].mxu0 %v12749_v51  ;;  %9951 = vmatprep.mubr.bf16.mxu1 %v12751_v52 }
  0xc2   : > { %10175 = vmatprep.mubr.bf16.mxu0 %v12713_v48  ;;  %9980 = vmatpush3.bf16.msra.mxu1 %v12073_v44  ;;  %v438_v44 = vld [vmem:[#allocation2 + $0x1e7] sm:$0xff] }
  0xc3   : > { %9981 = vmatprep.subr.bf16.mxu1 %v12075_v59 }
  0xc6   : > { %9982 = vmatpush3.bf16.msra.mxu1 %v12075_v59  ;;  %v439_v59 = vld [vmem:[#allocation2 + $0x1ef] sm:$0xff] }
  0xc7   : > { %10015 = vmatprep.subr.bf16.mxu1 %v12756_v0  ;;  %v12785_v63 = vpack.c.bf16 %v439_v59, %v438_v44  ;;  %v12091_v44 = vld [vmem:[#allocation5 + $0xf8] sm:$0xff]   ;;  %v12088_v59 = vld [vmem:[#allocation5 + $0x208] sm:$0xff]  }
  0xc8   : > { %9952 = vmatmul.mubr.bf16.gmra.mrb[16].mxu1 %v12759_v1 }
  0xc9   : > { %10176 = vmatmul.mubr.bf16.vlgmr.msra.gmra.mrb[0].mxu0 %v12723_v2  ;;  %9955 = vmatprep.mubr.bf16.mxu1 %v12761_v41 }
  0xca   : > { %10208 = vmatpush3.bf16.msra.mxu0 %v12707_v45  ;;  %10179 = vmatprep.mubr.bf16.mxu0 %v12727_v4  ;;  %v12078_v45 = vld [vmem:[#allocation5 + $0x1e0] sm:$0xff]  }
  0xcb   : > { %10209 = vmatprep.subr.bf16.mxu0 %v12072_v9 }
  0xce   : > { %10210 = vmatpush3.bf16.msra.mxu0 %v12072_v9  ;;  %v589_v9 = vpack.c.bf16 %v554_v61, %v553_v60  ;;  %v12249_v60 = vld [vmem:[#allocation5 + $0x100] sm:$0xff]   ;;  %v12090_v61 = vld [vmem:[#allocation5 + $0x210] sm:$0xff]  }
  0xcf   : > { %10211 = vmatprep.subr.bf16.mxu0 %v12074_v17 }
  0xd0   : > { %9956 = vmatmul.mubr.bf16.gmra.mrb[20].mxu1 %v12769_v18 }
  0xd1   : > { %10180 = vmatmul.mubr.bf16.gmra.mrb[4].mxu0 %v12735_v22  ;;  %9959 = vmatprep.mubr.bf16.mxu1 %v12771_v19 }
  0xd2   : > { %10183 = vmatprep.mubr.bf16.mxu0 %v12739_v27  ;;  %10212 = vmatpush3.bf16.msra.mxu0 %v12074_v17  ;;  %v12083_v17 = vld [vmem:[#allocation5 + $0xd8] sm:$0xff]  }
  0xd3   : > { %10213 = vmatprep.subr.bf16.mxu0 %v12076_v20 }
  0xd6   : > { %10214 = vmatpush3.bf16.msra.mxu0 %v12076_v20  ;;  %v441_v20 = vld [vmem:[#allocation2 + $0x20f] sm:$0xff] }
  0xd7   : > { %10215 = vmatprep.subr.bf16.mxu0 %v12078_v45 }
  0xd8   : > { %9960 = vmatmul.mubr.bf16.gmra.mrb[24].mxu1 %v12777_v34 }
  0xd9   : > { %10184 = vmatmul.mubr.bf16.gmra.mrb[8].mxu0 %v12747_v50  ;;  %9963 = vmatprep.mubr.bf16.mxu1 %v12779_v35 }
  0xda   : > { %10187 = vmatprep.mubr.bf16.mxu0 %v12751_v52  ;;  %10216 = vmatpush3.bf16.msra.mxu0 %v12078_v45  ;;  %v12089_v45 = vld [vmem:[#allocation5 + $0xf0] sm:$0xff]  }
  0xdb   : > { %10217 = vmatprep.subr.bf16.mxu0 %v12080_v42 }
  0xde   : > { %10218 = vmatpush3.bf16.msra.mxu0 %v12080_v42  ;;  %v461_v42 = vpack.c.bf16 %v443_v33, %v442_v32 }
  0xdf   : > { %10219 = vmatprep.subr.bf16.mxu0 %v12082_v62 }
  0xe0   : > { %9964 = vmatmul.mubr.bf16.gmra.mrb[28].mxu1 %v12785_v63 }
  0xe1   : > { %10188 = vmatmul.mubr.bf16.gmra.mrb[12].mxu0 %v12759_v1  ;;  %9983 = vmatprep.mubr.bf16.mxu1 %v589_v9  ;;  %v12253_v9 = vld [vmem:[#allocation5 + $0x120] sm:$0xff]  }
  0xe2   : > { %10191 = vmatprep.mubr.bf16.mxu0 %v12761_v41  ;;  %10220 = vmatpush3.bf16.msra.mxu0 %v12082_v62  ;;  %v12092_v62 = vld [vmem:[#allocation5 + $0x218] sm:$0xff]  }
  0xe3   : > { %10221 = vmatprep.subr.bf16.mxu0 %v12084_v13 }
  0xe6   : > { %10222 = vmatpush3.bf16.msra.mxu0 %v12084_v13 }
  0xe7   : > { %10255 = vmatprep.subr.bf16.mxu0 %v12086_v14 }
  0xe8   : > { %9984 = vmatmul.mubr.bf16.vlgmr.msra.gmra.mrb[0].mxu1 %v12647_v24  ;;  %v440_v24 = vld [vmem:[#allocation2 + $0x207] sm:$0xff] }
  0xe9   : > { %10192 = vmatmul.mubr.bf16.gmra.mrb[16].mxu0 %v12769_v18  ;;  %10016 = vmatpush3.bf16.msra.mxu1 %v12756_v0  ;;  %v12087_v0 = vld [vmem:[#allocation5 + $0xe8] sm:$0xff]   ;;  %v12799_v31 = vpack.c.bf16 %v441_v20, %v440_v24 }
  0xea   : > { %9987 = vmatprep.mubr.bf16.mxu1 %v12657_v37  ;;  %10195 = vmatprep.mubr.bf16.mxu0 %v12771_v19 }
  0xeb   : > { %10017 = vmatprep.subr.bf16.mxu1 %v12079_v15 }
  0xed   : > { %10018 = vmatpush3.bf16.msra.mxu1 %v12079_v15 }
  0xee   : > { %10019 = vmatprep.subr.bf16.mxu1 %v12081_v16 }
  0xf0   : > { %9988 = vmatmul.mubr.bf16.gmra.mrb[4].mxu1 %v12661_v40 }
  0xf1   : > { %10196 = vmatmul.mubr.bf16.gmra.mrb[20].mxu0 %v12777_v34  ;;  %9991 = vmatprep.mubr.bf16.mxu1 %v12672_v54 }
  0xf2   : > { %10199 = vmatprep.mubr.bf16.mxu0 %v12779_v35  ;;  %10020 = vmatpush3.bf16.msra.mxu1 %v12081_v16  ;;  %v12893_v16 = vld [vmem:[%s13838_s3] ss:$0 sm:$0xff] }
  0xf3   : > { %10021 = vmatprep.subr.bf16.mxu1 %v12083_v17 }
  0xf6   : > { %10022 = vmatpush3.bf16.msra.mxu1 %v12083_v17 }
  0xf7   : > { %10023 = vmatprep.subr.bf16.mxu1 %v12085_v30 }
  0xf8   : > { %9992 = vmatmul.mubr.bf16.gmra.mrb[8].mxu1 %v12676_v58 }
  0xf9   : > { %10200 = vmatmul.mubr.bf16.gmra.mrb[24].mxu0 %v12785_v63  ;;  %9995 = vmatprep.mubr.bf16.mxu1 %v12686_v10 }
  0xfa   : > { %10203 = vmatprep.mubr.bf16.mxu0 %v12799_v31  ;;  %10024 = vmatpush3.bf16.msra.mxu1 %v12085_v30 }
  0xfb   : > { %10025 = vmatprep.subr.bf16.mxu1 %v12087_v0 }
  0xfe   : > { %10026 = vmatpush3.bf16.msra.mxu1 %v12087_v0 }
  0xff   : > { %10027 = vmatprep.subr.bf16.mxu1 %v12089_v45 }
 0x100   : > { %9996 = vmatmul.mubr.bf16.gmra.mrb[12].mxu1 %v12692_v12 }
 0x101   : > { %10204 = vmatmul.mubr.bf16.gmra.mrb[28].mxu0 %v461_v42  ;;  %9999 = vmatprep.mubr.bf16.mxu1 %v12700_v26 }
 0x102   : > { %10223 = vmatprep.mubr.bf16.mxu0 %v12588_v39  ;;  %10028 = vmatpush3.bf16.msra.mxu1 %v12089_v45  ;;  %v12093_v39 = vld [vmem:[#allocation5 + $0x220] sm:$0xff]  }
 0x103   : > { %10029 = vmatprep.subr.bf16.mxu1 %v12091_v44 }
 0x106   : > { %10030 = vmatpush3.bf16.msra.mxu1 %v12091_v44 }
 0x107   : > { %11187 = vmatprep.subr.bf16.mxu1 %v12249_v60 }
 0x108   : > { %10000 = vmatmul.mubr.bf16.gmra.mrb[16].mxu1 %v12702_v28 }
 0x109   : > { %10224 = vmatmul.mubr.bf16.vlgmr.msra.gmra.mrb[0].mxu0 %v12593_v43  ;;  %10003 = vmatprep.mubr.bf16.mxu1 %v12711_v47  ;;  %v12094_v43 = vld [vmem:[#allocation5 + $0x228] sm:$0xff]  }
 0x10a   : > { %10256 = vmatpush3.bf16.msra.mxu0 %v12086_v14  ;;  %10227 = vmatprep.mubr.bf16.mxu0 %v12605_v55  ;;  %v12095_v55 = vld [vmem:[#allocation5 + $0x230] sm:$0xff]  }
 0x10b   : > { %10257 = vmatprep.subr.bf16.mxu0 %v12088_v59  ;;  %v12256_v14 = vld [vmem:[#allocation5 + $0x130] sm:$0xff]  }
 0x10e   : > { %10258 = vmatpush3.bf16.msra.mxu0 %v12088_v59 }
 0x10f   : > { %10259 = vmatprep.subr.bf16.mxu0 %v12090_v61 }
 0x110   : > { %10004 = vmatmul.mubr.bf16.gmra.mrb[20].mxu1 %v12715_v49 }
 0x111   : > { %10228 = vmatmul.mubr.bf16.gmra.mrb[4].mxu0 %v12609_v56  ;;  %10007 = vmatprep.mubr.bf16.mxu1 %v12725_v3  ;;  %v12096_v56 = vld [vmem:[#allocation5 + $0x238] sm:$0xff]  }
 0x112   : > { %10231 = vmatprep.mubr.bf16.mxu0 %v12623_v5  ;;  %10260 = vmatpush3.bf16.msra.mxu0 %v12090_v61  ;;  %v12250_v5 = vld [vmem:[#allocation5 + $0x108] sm:$0xff]  }
 0x113   : > { %10261 = vmatprep.subr.bf16.mxu0 %v12092_v62 }
 0x116   : > { %10262 = vmatpush3.bf16.msra.mxu0 %v12092_v62 }
 0x117   : > { %10263 = vmatprep.subr.bf16.mxu0 %v12093_v39 }
 0x118   : > { %10008 = vmatmul.mubr.bf16.gmra.mrb[24].mxu1 %v12729_v8 }
 0x119   : > { %10232 = vmatmul.mubr.bf16.gmra.mrb[8].mxu0 %v12625_v6  ;;  %10011 = vmatprep.mubr.bf16.mxu1 %v12737_v23  ;;  %v12251_v6 = vld [vmem:[#allocation5 + $0x110] sm:$0xff]  }
 0x11a   : > { %10235 = vmatprep.mubr.bf16.mxu0 %v12641_v21  ;;  %10264 = vmatpush3.bf16.msra.mxu0 %v12093_v39  ;;  %v512_v21 = vld [vmem:[#allocation2 + $0x208] sm:$0xff] }
 0x11b   : > { %10265 = vmatprep.subr.bf16.mxu0 %v12094_v43 }
 0x11e   : > { %10266 = vmatpush3.bf16.msra.mxu0 %v12094_v43 }
 0x11f   : > { %10267 = vmatprep.subr.bf16.mxu0 %v12095_v55 }
 0x120   : > { %10012 = vmatmul.mubr.bf16.gmra.mrb[28].mxu1 %v12741_v29 }
 0x121   : > { %10236 = vmatmul.mubr.bf16.gmra.mrb[12].mxu0 %v12655_v36  ;;  %10031 = vmatprep.mubr.bf16.mxu1 %v12709_v46  ;;  %v513_v46 = vld [vmem:[#allocation2 + $0x210] sm:$0xff] }
 0x122   : > { %10239 = vmatprep.mubr.bf16.mxu0 %v12659_v38  ;;  %10268 = vmatpush3.bf16.msra.mxu0 %v12095_v55 }
 0x123   : > { %10269 = vmatprep.subr.bf16.mxu0 %v12096_v56 }
 0x126   : > { %10270 = vmatpush3.bf16.msra.mxu0 %v12096_v56 }
 0x128   : > { %10032 = vmatmul.mubr.bf16.vlgmr.msra.gmra.mrb[0].mxu1 %v12713_v48  ;;  %v12252_v48 = vld [vmem:[#allocation5 + $0x118] sm:$0xff]  }
 0x129   : > { %10240 = vmatmul.mubr.bf16.gmra.mrb[16].mxu0 %v12670_v53  ;;  %11195 = vmatpush3.bf16.msra.mxu1 %v12249_v60 }
 0x12a   : > { %10035 = vmatprep.mubr.bf16.mxu1 %v12723_v2  ;;  %10243 = vmatprep.mubr.bf16.mxu0 %v12674_v57  ;;  %v532_v2 = vpack.c.bf16 %v513_v46, %v512_v21 }
 0x12b   : > { %11188 = vmatprep.subr.bf16.mxu1 %v12250_v5 }
 0x12d   : > { %11196 = vmatpush3.bf16.msra.mxu1 %v12250_v5 }
 0x12e   : > { %11189 = vmatprep.subr.bf16.mxu1 %v12251_v6 }
 0x130   : > { %10036 = vmatmul.mubr.bf16.gmra.mrb[4].mxu1 %v12727_v4  ;;  %v12254_v4 = vld [vmem:[#allocation5 + $0x128] sm:$0xff]  }
 0x131   : > { %10244 = vmatmul.mubr.bf16.gmra.mrb[20].mxu0 %v12682_v7  ;;  %10039 = vmatprep.mubr.bf16.mxu1 %v12735_v22  ;;  %v12255_v22 = vld [vmem:[#allocation2 + $0x8] sm:$0xff] }
 0x132   : > { %10247 = vmatprep.mubr.bf16.mxu0 %v12688_v11  ;;  %11197 = vmatpush3.bf16.msra.mxu1 %v12251_v6  ;;  %v533_v13 = vpack.c.bf16 %v12255_v22, %v12255_v22 }
 0x133   : > { %11190 = vmatprep.subr.bf16.mxu1 %v12252_v48 }
 0x136   : > { %11198 = vmatpush3.bf16.msra.mxu1 %v12252_v48 }
 0x137   : > { %11191 = vmatprep.subr.bf16.mxu1 %v12253_v9 }
 0x138   : > { %10040 = vmatmul.mubr.bf16.gmra.mrb[8].mxu1 %v12739_v27  ;;  %v12257_v27 = vld [vmem:[#allocation5 + $0x138] sm:$0xff]  }
 0x139   : > { %10248 = vmatmul.mubr.bf16.gmra.mrb[24].mxu0 %v12698_v25  ;;  %10043 = vmatprep.mubr.bf16.mxu1 %v12747_v50 }
 0x13a   : > { %10251 = vmatprep.mubr.bf16.mxu0 %v532_v2  ;;  %11199 = vmatpush3.bf16.msra.mxu1 %v12253_v9 }
 0x13b   : > { %11192 = vmatprep.subr.bf16.mxu1 %v12254_v4 }
 0x13e   : > { %11200 = vmatpush3.bf16.msra.mxu1 %v12254_v4 }
 0x13f   : > { %11193 = vmatprep.subr.bf16.mxu1 %v12256_v14 }
 0x140   : > { %10044 = vmatmul.mubr.bf16.gmra.mrb[12].mxu1 %v12751_v52 }
 0x141   : > { %10252 = vmatmul.mubr.bf16.gmra.mrb[28].mxu0 %v533_v13  ;;  %10047 = vmatprep.mubr.bf16.mxu1 %v12759_v1 }
 0x142   : > { %10271 = vmatprep.mubr.bf16.mxu0 %v12657_v37  ;;  %11201 = vmatpush3.bf16.msra.mxu1 %v12256_v14  ;;  %v588_v37 = vld [vmem:[#allocation2 + $0x231] sm:$0xff] }
 0x143   : > { %11194 = vmatprep.subr.bf16.mxu1 %v12257_v27 }
 0x146   : > { %11202 = vmatpush3.bf16.msra.mxu1 %v12257_v27 }
 0x148   : > { %10048 = vmatmul.mubr.bf16.gmra.mrb[16].mxu1 %v12761_v41 }
 0x149   : > { %10272 = vmatmul.mubr.bf16.vlgmr.msra.gmra.mrb[0].mxu0 %v12661_v40  ;;  %10051 = vmatprep.mubr.bf16.mxu1 %v12769_v18  ;;  %v12097_v40 = vld [vmem:[#allocation5 + $0x280] sm:$0xff]  }
 0x14a   : > { %10275 = vmatprep.mubr.bf16.mxu0 %v12672_v54  ;;  %10303 = vmatprep.subr.bf16.mxu1 %v12097_v40  ;;  %v12099_v54 = vld [vmem:[#allocation5 + $0x290] sm:$0xff]  }
 0x150   : > { %10052 = vmatmul.mubr.bf16.gmra.mrb[20].mxu1 %v12771_v19 }
 0x151   : > { %10276 = vmatmul.mubr.bf16.gmra.mrb[4].mxu0 %v12676_v58  ;;  %10055 = vmatprep.mubr.bf16.mxu1 %v12777_v34  ;;  %v12101_v58 = vld [vmem:[#allocation5 + $0x2a0] sm:$0xff]  }
 0x152   : > { %10279 = vmatprep.mubr.bf16.mxu0 %v12686_v10  ;;  %v12103_v10 = vld [vmem:[#allocation5 + $0x2b0] sm:$0xff]  }
 0x158   : > { %10056 = vmatmul.mubr.bf16.gmra.mrb[24].mxu1 %v12779_v35  ;;  %v12888_v35 = vld [vmem:[%s13837_s2] ss:$0 sm:$0xff] }
 0x159   : > { %10280 = vmatmul.mubr.bf16.gmra.mrb[8].mxu0 %v12692_v12  ;;  %10059 = vmatprep.mubr.bf16.mxu1 %v12785_v63  ;;  %v12866_v12 = vld [vmem:[#allocation5 + $0x240] sm:$0xff]  }
 0x15a   : > { %10283 = vmatprep.mubr.bf16.mxu0 %v12700_v26 }
 0x160   : > { %10060 = vmatmul.mubr.bf16.gmra.mrb[28].mxu1 %v12799_v31 }
 0x161   : > { %10284 = vmatmul.mubr.bf16.gmra.mrb[12].mxu0 %v12702_v28  ;;  %10095 = vmatprep.mubr.bf16.mxu1 %v12655_v36  ;;  %v587_v36 = vld [vmem:[#allocation2 + $0x229] sm:$0xff] }
 0x162   : > { %10287 = vmatprep.mubr.bf16.mxu0 %v12711_v47 }
 0x168   : > { %10096 = vmatmul.mubr.bf16.vlgmr.msra.gmra.mrb[16].mxu1 %v12659_v38  ;;  %v606_v38 = vpack.c.bf16 %v588_v37, %v587_v36 }
 0x169   : > { %10288 = vmatmul.mubr.bf16.gmra.mrb[16].mxu0 %v12715_v49  ;;  %10099 = vmatprep.mubr.bf16.mxu1 %v12670_v53  ;;  %v12098_v53 = vld [vmem:[#allocation5 + $0x288] sm:$0xff]  }
 0x16a   : > { %10291 = vmatprep.mubr.bf16.mxu0 %v12725_v3  ;;  %10304 = vmatpush3.bf16.msra.mxu1 %v12097_v40 }
 0x16b   : > { %10305 = vmatprep.subr.bf16.mxu1 %v12098_v53 }
 0x16e   : > { %10306 = vmatpush3.bf16.msra.mxu1 %v12098_v53 }
 0x16f   : > { %10307 = vmatprep.subr.bf16.mxu1 %v12099_v54 }
 0x170   : > { %10100 = vmatmul.mubr.bf16.gmra.mrb[20].mxu1 %v12674_v57  ;;  %v12100_v57 = vld [vmem:[#allocation5 + $0x298] sm:$0xff]  }
 0x171   : > { %10292 = vmatmul.mubr.bf16.gmra.mrb[20].mxu0 %v12729_v8  ;;  %10103 = vmatprep.mubr.bf16.mxu1 %v12682_v7  ;;  %v12102_v7 = vld [vmem:[#allocation5 + $0x2a8] sm:$0xff]  }
 0x172   : > { %10295 = vmatprep.mubr.bf16.mxu0 %v12737_v23  ;;  %10308 = vmatpush3.bf16.msra.mxu1 %v12099_v54 }
 0x173   : > { %10309 = vmatprep.subr.bf16.mxu1 %v12100_v57 }
 0x176   : > { %10310 = vmatpush3.bf16.msra.mxu1 %v12100_v57 }
 0x177   : > { %10311 = vmatprep.subr.bf16.mxu1 %v12101_v58 }
 0x178   : > { %10104 = vmatmul.mubr.bf16.gmra.mrb[24].mxu1 %v12688_v11  ;;  %v12104_v11 = vld [vmem:[#allocation5 + $0x2b8] sm:$0xff]  }
 0x179   : > { %10296 = vmatmul.mubr.bf16.gmra.mrb[24].mxu0 %v12741_v29  ;;  %10107 = vmatprep.mubr.bf16.mxu1 %v12698_v25 }
 0x17a   : > { %10299 = vmatprep.mubr.bf16.mxu0 %v12749_v51  ;;  %10312 = vmatpush3.bf16.msra.mxu1 %v12101_v58 }
 0x17b   : > { %10313 = vmatprep.subr.bf16.mxu1 %v12102_v7 }
 0x17e   : > { %10314 = vmatpush3.bf16.msra.mxu1 %v12102_v7  ;;  %v12107_v7 = vld [vmem:[#allocation5 + $0x250] sm:$0xff]  }
 0x17f   : > { %10315 = vmatprep.subr.bf16.mxu1 %v12103_v10 }
 0x180   : > { %10108 = vmatmul.mubr.bf16.gmra.mrb[28].mxu1 %v532_v2 }
 0x181   : > { %10300 = vmatmul.mubr.bf16.gmra.mrb[28].mxu0 %v606_v38  ;;  %10319 = vmatprep.mubr.bf16.mxu1 %v533_v13  ;;  %v12106_v13 = vld [vmem:[#allocation5 + $0x248] sm:$0xff]  }
 0x182   : > { %10316 = vmatpush3.bf16.msra.mxu1 %v12103_v10 }
 0x183   : > { %10317 = vmatprep.subr.bf16.mxu1 %v12104_v11 }
 0x186   : > { %10318 = vmatpush3.bf16.msra.mxu1 %v12104_v11 }
 0x187   : > { %10351 = vmatprep.subr.bf16.mxu1 %v12866_v12 }
 0x1fb   : > { %v10033_v25 = vpop.f32.mrb[0].mxu1 }
 0x1fc   : > { %v1499_v26 = vpop.f32.mrb[1].mxu1 }
 0x1fd   : > { %v10034_v28 = vpop.f32.mrb[2].mxu1 }
 0x1fe   : > { %v1502_v47 = vpop.f32.mrb[3].mxu1 }
 0x203   : > { %v10037_v49 = vpop.f32.mrb[4].mxu1 }
 0x204   : > { %v1515_v3 = vpop.f32.mrb[5].mxu1 }
 0x205   : > { %v10038_v8 = vpop.f32.mrb[6].mxu1 }
 0x206   : > { %v1518_v23 = vpop.f32.mrb[7].mxu1 }
 0x20b   : > { %v12869_v29 = vpop.f32.mrb[8].mxu1 }
 0x20c   : > { %v12871_v50 = vpop.f32.mrb[9].mxu1 }
 0x20d   : > { %v12873_v51 = vpop.f32.mrb[10].mxu1 }
 0x20e   : > { %v12875_v52 = vpop.f32.mrb[11].mxu1 }
 0x213   : > { %v12877_v1 = vpop.f32.mrb[12].mxu1 }
 0x214   : > { %v12879_v41 = vpop.f32.mrb[13].mxu1 }
 0x215   : > { %v12881_v18 = vpop.f32.mrb[14].mxu1 }
 0x216   : > { %v12883_v19 = vpop.f32.mrb[15].mxu1 }
 0x21c   : > { %v10273_v34 = vpop.f32.mrb[0].mxu0 }
 0x21d   : > { %v11203_v63 = vadd.f32 %v10273_v34, %v10033_v25  ;;  %v2874_v15 = vpop.f32.mrb[1].mxu0 }
 0x21e   : > { %v11204_v17 = vadd.f32 %v2874_v15, %v1499_v26  ;;  %v10274_v24 = vpop.f32.mrb[2].mxu0 }
 0x21f   : > { %v3040_v20 = vmul.f32 %v11203_v63, %v12888_v35  ;;  %v11205_v30 = vadd.f32 %v10274_v24, %v10034_v28  ;;  %v2877_v0 = vpop.f32.mrb[3].mxu0 }
 0x220   : > { %v3038_v31 = vmul.f32 %v11204_v17, %v12888_v35  ;;  %v11206_v32 = vadd.f32 %v2877_v0, %v1502_v47 }
 0x221   : > { %v3077_v33 = vadd.f32 %v12893_v16, %v3040_v20  ;;  %v3041_v45 = vmul.f32 %v11205_v30, %v12888_v35 }
 0x222   : > { %v3075_v42 = vadd.f32 %v12893_v16, %v3038_v31  ;;  %v3039_v44 = vmul.f32 %v11206_v32, %v12888_v35  ;;  %v12109_v31 = vld [vmem:[#allocation5 + $0x260] sm:$0xff]  }
 0x223   : > { %v12901_v59 = vmax.f32 %v3077_v33, 0.0  ;;  %v3078_v60 = vadd.f32 %v12893_v16, %v3041_v45 }
 0x224   : > { %v12904_v61 = vmax.f32 %v3075_v42, 0.0  ;;  %v3076_v62 = vadd.f32 %v12893_v16, %v3039_v44  ;;  %v10277_v39 = vpop.f32.mrb[4].mxu0 }
 0x225   : > { %3173 = vst [vmem:[#allocation2 + $0x48] sm:$0xff] %v12901_v59  ;;  %v12908_v43 = vmax.f32 %v3078_v60, 0.0  ;;  %v11207_v55 = vadd.f32 %v10277_v39, %v10037_v49  ;;  %v2890_v56 = vpop.f32.mrb[5].mxu0 }
 0x226   : > { %3171 = vst [vmem:[#allocation2 + $0x28] sm:$0xff] %v12904_v61  ;;  %v12911_v5 = vmax.f32 %v3076_v62, 0.0  ;;  %v11208_v6 = vadd.f32 %v2890_v56, %v1515_v3  ;;  %v10278_v21 = vpop.f32.mrb[6].mxu0 }
 0x227   : > { %3174 = vst [vmem:[#allocation2 + $0x50] sm:$0xff] %v12908_v43  ;;  %v3044_v46 = vmul.f32 %v11207_v55, %v12888_v35  ;;  %v11209_v48 = vadd.f32 %v10278_v21, %v10038_v8  ;;  %v2893_v2 = vpop.f32.mrb[7].mxu0  ;;  %v12925_v36 = vpack.c.bf16 %v12908_v43, %v12901_v59 }
 0x228   : > { %3172 = vst [vmem:[#allocation2 + $0x30] sm:$0xff] %v12911_v5  ;;  %v3042_v9 = vmul.f32 %v11208_v6, %v12888_v35  ;;  %v11210_v4 = vadd.f32 %v2893_v2, %v1518_v23  ;;  %v12919_v22 = vpack.c.bf16 %v12911_v5, %v12904_v61 }
 0x229   : > { %v3081_v14 = vadd.f32 %v12893_v16, %v3044_v46  ;;  %v3045_v27 = vmul.f32 %v11209_v48, %v12888_v35 }
 0x22a   : > { %v3079_v37 = vadd.f32 %v12893_v16, %v3042_v9  ;;  %v3043_v38 = vmul.f32 %v11210_v4, %v12888_v35  ;;  %10320 = vmatmul.mubr.bf16.vlgmr.msra.gmra.mrb[32].mxu1 %v12919_v22 }
 0x22b   : > { %v12930_v40 = vmax.f32 %v3081_v14, 0.0  ;;  %v3082_v53 = vadd.f32 %v12893_v16, %v3045_v27  ;;  %10323 = vmatprep.mubr.bf16.mxu1 %v12925_v36  ;;  %10352 = vmatpush3.bf16.msra.mxu1 %v12866_v12 }
 0x22c   : > { %v12935_v54 = vmax.f32 %v3079_v37, 0.0  ;;  %v3080_v57 = vadd.f32 %v12893_v16, %v3043_v38  ;;  %v10281_v58 = vpop.f32.mrb[8].mxu0  ;;  %10353 = vmatprep.subr.bf16.mxu1 %v12106_v13  ;;  %v12111_v38 = vld [vmem:[#allocation5 + $0x270] sm:$0xff]  }
 0x22d   : > { %3177 = vst [vmem:[#allocation2 + $0x88] sm:$0xff] %v12930_v40  ;;  %v12939_v10 = vmax.f32 %v3082_v53, 0.0  ;;  %v11211_v11 = vadd.f32 %v10281_v58, %v12869_v29  ;;  %v2906_v25 = vpop.f32.mrb[9].mxu0 }
 0x22e   : > { %3175 = vst [vmem:[#allocation2 + $0x68] sm:$0xff] %v12935_v54  ;;  %v12943_v26 = vmax.f32 %v3080_v57, 0.0  ;;  %v11212_v12 = vadd.f32 %v2906_v25, %v12871_v50  ;;  %v10282_v28 = vpop.f32.mrb[10].mxu0  ;;  %v12108_v50 = vld [vmem:[#allocation5 + $0x258] sm:$0xff]  }
 0x22f   : > { %3178 = vst [vmem:[#allocation2 + $0x90] sm:$0xff] %v12939_v10  ;;  %v3048_v47 = vmul.f32 %v11211_v11, %v12888_v35  ;;  %v11213_v49 = vadd.f32 %v10282_v28, %v12873_v51  ;;  %v2909_v3 = vpop.f32.mrb[11].mxu0  ;;  %10354 = vmatpush3.bf16.msra.mxu1 %v12106_v13  ;;  %v12960_v51 = vpack.c.bf16 %v12939_v10, %v12930_v40 }
 0x230   : > { %3176 = vst [vmem:[#allocation2 + $0x70] sm:$0xff] %v12943_v26  ;;  %v3046_v8 = vmul.f32 %v11212_v12, %v12888_v35  ;;  %v11214_v23 = vadd.f32 %v2909_v3, %v12875_v52  ;;  %v12954_v29 = vpack.c.bf16 %v12943_v26, %v12935_v54  ;;  %10355 = vmatprep.subr.bf16.mxu1 %v12107_v7 }
 0x231   : > { %v3085_v34 = vadd.f32 %v12893_v16, %v3048_v47  ;;  %v3049_v63 = vmul.f32 %v11213_v49, %v12888_v35 }
 0x232   : > { %v3083_v15 = vadd.f32 %v12893_v16, %v3046_v8  ;;  %v3047_v17 = vmul.f32 %v11214_v23, %v12888_v35  ;;  %10324 = vmatmul.mubr.bf16.gmra.mrb[36].mxu1 %v12954_v29 }
 0x233   : > { %v12965_v52 = vmax.f32 %v3085_v34, 0.0  ;;  %v3086_v24 = vadd.f32 %v12893_v16, %v3049_v63  ;;  %10327 = vmatprep.mubr.bf16.mxu1 %v12960_v51  ;;  %10356 = vmatpush3.bf16.msra.mxu1 %v12107_v7  ;;  %v12112_v34 = vld [vmem:[#allocation5 + $0x278] sm:$0xff]  }
 0x234   : > { %v12969_v20 = vmax.f32 %v3083_v15, 0.0  ;;  %v3084_v30 = vadd.f32 %v12893_v16, %v3047_v17  ;;  %v10285_v0 = vpop.f32.mrb[12].mxu0  ;;  %10357 = vmatprep.subr.bf16.mxu1 %v12108_v50 }
 0x235   : > { %13874 = vst [vmem:[#allocation11_spill] sm:$0xff] %v12965_v52  ;;  %3181 = vst [vmem:[#allocation2 + $0xc8] sm:$0xff] %v12965_v52  ;;  %v12973_v32 = vmax.f32 %v3086_v24, 0.0  ;;  %v11215_v33 = vadd.f32 %v10285_v0, %v12877_v1  ;;  %v2922_v45 = vpop.f32.mrb[13].mxu0 }
 0x236   : > { %3179 = vst [vmem:[#allocation2 + $0xa8] sm:$0xff] %v12969_v20  ;;  %v12977_v42 = vmax.f32 %v3084_v30, 0.0  ;;  %v11216_v44 = vadd.f32 %v2922_v45, %v12879_v41  ;;  %v10286_v60 = vpop.f32.mrb[14].mxu0  ;;  %v12110_v41 = vld [vmem:[#allocation5 + $0x268] sm:$0xff]  }
 0x237   : > { %13875 = vst [vmem:[#allocation12_spill] sm:$0xff] %v12973_v32  ;;  %3182 = vst [vmem:[#allocation2 + $0xd0] sm:$0xff] %v12973_v32  ;;  %v3052_v62 = vmul.f32 %v11215_v33, %v12888_v35  ;;  %v11217_v39 = vadd.f32 %v10286_v60, %v12881_v18  ;;  %v2925_v55 = vpop.f32.mrb[15].mxu0  ;;  %10358 = vmatpush3.bf16.msra.mxu1 %v12108_v50  ;;  %v12994_v18 = vpack.c.bf16 %v12973_v32, %v12965_v52 }
 0x238   : > { %13876 = vst [vmem:[#allocation13_spill] sm:$0xff] %v12977_v42  ;;  %3180 = vst [vmem:[#allocation2 + $0xb0] sm:$0xff] %v12977_v42  ;;  %v3050_v1 = vmul.f32 %v11216_v44, %v12888_v35  ;;  %v11218_v56 = vadd.f32 %v2925_v55, %v12883_v19  ;;  %v12988_v6 = vpack.c.bf16 %v12977_v42, %v12969_v20  ;;  %10359 = vmatprep.subr.bf16.mxu1 %v12109_v31 }
 0x239   : > { %v3089_v21 = vadd.f32 %v12893_v16, %v3052_v62  ;;  %v3053_v46 = vmul.f32 %v11217_v39, %v12888_v35  ;;  %v13036_v39 = vld [vmem:[#allocation5 + $0x2c0] sm:$0xff]  }
 0x23a   : > { %v3087_v48 = vadd.f32 %v12893_v16, %v3050_v1  ;;  %v3051_v2 = vmul.f32 %v11218_v56, %v12888_v35  ;;  %10328 = vmatmul.mubr.bf16.gmra.mrb[40].mxu1 %v12988_v6 }
 0x23b   : > { %v12999_v19 = vmax.f32 %v3089_v21, 0.0  ;;  %v3090_v9 = vadd.f32 %v12893_v16, %v3053_v46  ;;  %v10097_v4 = vpop.f32.mrb[16].mxu1  ;;  %10331 = vmatprep.mubr.bf16.mxu1 %v12994_v18  ;;  %10360 = vmatpush3.bf16.msra.mxu1 %v12109_v31 }
 0x23c   : > { %v13003_v13 = vmax.f32 %v3087_v48, 0.0  ;;  %v3088_v14 = vadd.f32 %v12893_v16, %v3051_v2  ;;  %v10289_v27 = vpop.f32.mrb[16].mxu0  ;;  %v1838_v37 = vpop.f32.mrb[17].mxu1  ;;  %10361 = vmatprep.subr.bf16.mxu1 %v12110_v41 }
 0x23d   : > { %13877 = vst [vmem:[#allocation14_spill] sm:$0xff] %v12999_v19  ;;  %3185 = vst [vmem:[#allocation2 + $0x108] sm:$0xff] %v12999_v19  ;;  %v13007_v53 = vmax.f32 %v3090_v9, 0.0  ;;  %v11219_v57 = vadd.f32 %v10289_v27, %v10097_v4  ;;  %v2938_v58 = vpop.f32.mrb[17].mxu0  ;;  %v10098_v7 = vpop.f32.mrb[18].mxu1 }
 0x23e   : > { %13878 = vst [vmem:[#allocation15_spill] sm:$0xff] %v13003_v13  ;;  %3183 = vst [vmem:[#allocation2 + $0xe8] sm:$0xff] %v13003_v13  ;;  %v13010_v11 = vmax.f32 %v3088_v14, 0.0  ;;  %v11220_v25 = vadd.f32 %v2938_v58, %v1838_v37  ;;  %v10290_v12 = vpop.f32.mrb[18].mxu0  ;;  %v1841_v28 = vpop.f32.mrb[19].mxu1 }
 0x23f   : > { %13879 = vst [vmem:[#allocation16_spill] sm:$0xff] %v13007_v53  ;;  %3186 = vst [vmem:[#allocation2 + $0x110] sm:$0xff] %v13007_v53  ;;  %v3056_v47 = vmul.f32 %v11219_v57, %v12888_v35  ;;  %v11221_v49 = vadd.f32 %v10290_v12, %v10098_v7  ;;  %v2941_v3 = vpop.f32.mrb[19].mxu0  ;;  %10362 = vmatpush3.bf16.msra.mxu1 %v12110_v41  ;;  %v13024_v17 = vpack.c.bf16 %v13007_v53, %v12999_v19 }
 0x240   : > { %13880 = vst [vmem:[#allocation17_spill] sm:$0xff] %v13010_v11  ;;  %3184 = vst [vmem:[#allocation2 + $0xf0] sm:$0xff] %v13010_v11  ;;  %v3054_v8 = vmul.f32 %v11220_v25, %v12888_v35  ;;  %v11222_v23 = vadd.f32 %v2941_v3, %v1841_v28  ;;  %v13018_v50 = vpack.c.bf16 %v13010_v11, %v13003_v13  ;;  %10363 = vmatprep.subr.bf16.mxu1 %v12111_v38 }
 0x241   : > { %v3093_v63 = vadd.f32 %v12893_v16, %v3056_v47  ;;  %v3057_v15 = vmul.f32 %v11221_v49, %v12888_v35 }
 0x242   : > { %v3091_v24 = vadd.f32 %v12893_v16, %v3054_v8  ;;  %v3055_v30 = vmul.f32 %v11222_v23, %v12888_v35  ;;  %10332 = vmatmul.mubr.bf16.gmra.mrb[44].mxu1 %v13018_v50 }
 0x243   : > { %v13029_v0 = vmax.f32 %v3093_v63, 0.0  ;;  %v3094_v31 = vadd.f32 %v12893_v16, %v3057_v15  ;;  %v10101_v33 = vpop.f32.mrb[20].mxu1  ;;  %10335 = vmatprep.mubr.bf16.mxu1 %v13024_v17  ;;  %10364 = vmatpush3.bf16.msra.mxu1 %v12111_v38 }
 0x244   : > { %v13033_v45 = vmax.f32 %v3091_v24, 0.0  ;;  %v3092_v44 = vadd.f32 %v12893_v16, %v3055_v30  ;;  %v10293_v60 = vpop.f32.mrb[20].mxu0  ;;  %v1854_v62 = vpop.f32.mrb[21].mxu1  ;;  %10365 = vmatprep.subr.bf16.mxu1 %v12112_v34 }
 0x245   : > { %13881 = vst [vmem:[#allocation18_spill] sm:$0xff] %v13029_v0  ;;  %3189 = vst [vmem:[#allocation2 + $0x148] sm:$0xff] %v13029_v0  ;;  %v13039_v55 = vmax.f32 %v3094_v31, 0.0  ;;  %v11223_v1 = vadd.f32 %v10293_v60, %v10101_v33  ;;  %v2954_v56 = vpop.f32.mrb[21].mxu0  ;;  %v10102_v41 = vpop.f32.mrb[22].mxu1 }
 0x246   : > { %13882 = vst [vmem:[#allocation19_spill] sm:$0xff] %v13033_v45  ;;  %3187 = vst [vmem:[#allocation2 + $0x128] sm:$0xff] %v13033_v45  ;;  %v13042_v21 = vmax.f32 %v3092_v44, 0.0  ;;  %v11224_v46 = vadd.f32 %v2954_v56, %v1854_v62  ;;  %v10294_v48 = vpop.f32.mrb[22].mxu0  ;;  %v1857_v2 = vpop.f32.mrb[23].mxu1  ;;  %v3364_v11 = vld [vmem:[#allocation2 + $0x111] sm:$0xff] }
 0x247   : > { %13883 = vst [vmem:[#allocation20_spill] sm:$0xff] %v13039_v55  ;;  %3190 = vst [vmem:[#allocation2 + $0x150] sm:$0xff] %v13039_v55  ;;  %v3060_v9 = vmul.f32 %v11223_v1, %v12888_v35  ;;  %v11225_v4 = vadd.f32 %v10294_v48, %v10102_v41  ;;  %v2957_v14 = vpop.f32.mrb[23].mxu0  ;;  %10366 = vmatpush3.bf16.msra.mxu1 %v12112_v34  ;;  %v13057_v7 = vpack.c.bf16 %v13039_v55, %v13029_v0  ;;  %v3359_v0 = vld [vmem:[#allocation2 + $0xc9] sm:$0xff] }
 0x248   : > { %13884 = vst [vmem:[#allocation21_spill] sm:$0xff] %v13042_v21  ;;  %3188 = vst [vmem:[#allocation2 + $0x130] sm:$0xff] %v13042_v21  ;;  %v3058_v27 = vmul.f32 %v11224_v46, %v12888_v35  ;;  %v11226_v37 = vadd.f32 %v2957_v14, %v1857_v2  ;;  %v13050_v38 = vpack.c.bf16 %v13042_v21, %v13033_v45  ;;  %10399 = vmatprep.subr.bf16.mxu1 %v13036_v39  ;;  %v3360_v45 = vld [vmem:[#allocation2 + $0xd1] sm:$0xff] }
 0x249   : > { %v3097_v57 = vadd.f32 %v12893_v16, %v3060_v9  ;;  %v3061_v58 = vmul.f32 %v11225_v4, %v12888_v35 }
 0x24a   : > { %v3095_v25 = vadd.f32 %v12893_v16, %v3058_v27  ;;  %v3059_v12 = vmul.f32 %v11226_v37, %v12888_v35  ;;  %10336 = vmatmul.mubr.bf16.gmra.mrb[48].mxu1 %v13050_v38 }
 0x24b   : > { %v13062_v28 = vmax.f32 %v3097_v57, 0.0  ;;  %v3098_v47 = vadd.f32 %v12893_v16, %v3061_v58  ;;  %v10105_v49 = vpop.f32.mrb[24].mxu1  ;;  %10339 = vmatprep.mubr.bf16.mxu1 %v13057_v7 }
 0x24c   : > { %v13066_v3 = vmax.f32 %v3095_v25, 0.0  ;;  %v3096_v8 = vadd.f32 %v12893_v16, %v3059_v12  ;;  %v10297_v23 = vpop.f32.mrb[24].mxu0  ;;  %v1870_v34 = vpop.f32.mrb[25].mxu1 }
 0x24d   : > { %13885 = vst [vmem:[#allocation22_spill] sm:$0xff] %v13062_v28  ;;  %3193 = vst [vmem:[#allocation2 + $0x188] sm:$0xff] %v13062_v28  ;;  %v13070_v63 = vmax.f32 %v3098_v47, 0.0  ;;  %v11227_v15 = vadd.f32 %v10297_v23, %v10105_v49  ;;  %v2970_v24 = vpop.f32.mrb[25].mxu0  ;;  %v10106_v30 = vpop.f32.mrb[26].mxu1 }
 0x24e   : > { %13886 = vst [vmem:[#allocation23_spill] sm:$0xff] %v13066_v3  ;;  %3191 = vst [vmem:[#allocation2 + $0x168] sm:$0xff] %v13066_v3  ;;  %v13073_v31 = vmax.f32 %v3096_v8, 0.0  ;;  %v11228_v33 = vadd.f32 %v2970_v24, %v1870_v34  ;;  %v10298_v44 = vpop.f32.mrb[26].mxu0  ;;  %v1873_v60 = vpop.f32.mrb[27].mxu1  ;;  %v3368_v13 = vld [vmem:[#allocation2 + $0x151] sm:$0xff] }
 0x24f   : > { %13887 = vst [vmem:[#allocation24_spill] sm:$0xff] %v13070_v63  ;;  %3194 = vst [vmem:[#allocation2 + $0x190] sm:$0xff] %v13070_v63  ;;  %v3064_v62 = vmul.f32 %v11227_v15, %v12888_v35  ;;  %v11229_v1 = vadd.f32 %v10298_v44, %v10106_v30  ;;  %v2973_v56 = vpop.f32.mrb[27].mxu0  ;;  %v13087_v4 = vpack.c.bf16 %v13070_v63, %v13062_v28  ;;  %v3349_v28 = vld [vmem:[#allocation2 + $0x29] sm:$0xff] }
 0x250   : > { %13888 = vst [vmem:[#allocation25_spill] sm:$0xff] %v13073_v31  ;;  %3192 = vst [vmem:[#allocation2 + $0x170] sm:$0xff] %v13073_v31  ;;  %v3062_v41 = vmul.f32 %v11228_v33, %v12888_v35  ;;  %v11230_v46 = vadd.f32 %v2973_v56, %v1873_v60  ;;  %v13081_v48 = vpack.c.bf16 %v13073_v31, %v13066_v3  ;;  %v3352_v3 = vld [vmem:[#allocation2 + $0x51] sm:$0xff] }
 0x251   : > { %v3101_v2 = vadd.f32 %v12893_v16, %v3064_v62  ;;  %v3065_v9 = vmul.f32 %v11229_v1, %v12888_v35 }
 0x252   : > { %v3099_v14 = vadd.f32 %v12893_v16, %v3062_v41  ;;  %v3063_v27 = vmul.f32 %v11230_v46, %v12888_v35  ;;  %10340 = vmatmul.mubr.bf16.gmra.mrb[52].mxu1 %v13081_v48 }
 0x253   : > { %v13092_v37 = vmax.f32 %v3101_v2, 0.0  ;;  %v3102_v57 = vadd.f32 %v12893_v16, %v3065_v9  ;;  %v10109_v58 = vpop.f32.mrb[28].mxu1  ;;  %10343 = vmatprep.mubr.bf16.mxu1 %v13087_v4 }
 0x254   : > { %v13096_v25 = vmax.f32 %v3099_v14, 0.0  ;;  %v3100_v12 = vadd.f32 %v12893_v16, %v3063_v27  ;;  %v10301_v47 = vpop.f32.mrb[28].mxu0  ;;  %v1886_v49 = vpop.f32.mrb[29].mxu1 }
 0x255   : > { %13889 = vst [vmem:[#allocation26_spill] sm:$0xff] %v13092_v37  ;;  %3197 = vst [vmem:[#allocation2 + $0x1c8] sm:$0xff] %v13092_v37  ;;  %v13100_v8 = vmax.f32 %v3102_v57, 0.0  ;;  %v11231_v23 = vadd.f32 %v10301_v47, %v10109_v58  ;;  %v2986_v34 = vpop.f32.mrb[29].mxu0  ;;  %v10110_v15 = vpop.f32.mrb[30].mxu1 }
 0x256   : > { %13890 = vst [vmem:[#allocation27_spill] sm:$0xff] %v13096_v25  ;;  %3195 = vst [vmem:[#allocation2 + $0x1a8] sm:$0xff] %v13096_v25  ;;  %v13103_v24 = vmax.f32 %v3100_v12, 0.0  ;;  %v11232_v30 = vadd.f32 %v2986_v34, %v1886_v49  ;;  %v10302_v33 = vpop.f32.mrb[30].mxu0  ;;  %v1889_v44 = vpop.f32.mrb[31].mxu1  ;;  %v3204_v34 = vld [vmem:[#allocation2 + $0xf] sm:$0xff] }
 0x257   : > { %13891 = vst [vmem:[#allocation28_spill] sm:$0xff] %v13100_v8  ;;  %3198 = vst [vmem:[#allocation2 + $0x1d0] sm:$0xff] %v13100_v8  ;;  %v3068_v60 = vmul.f32 %v11231_v23, %v12888_v35  ;;  %v11233_v62 = vadd.f32 %v10302_v33, %v10110_v15  ;;  %v2989_v1 = vpop.f32.mrb[31].mxu0  ;;  %v13117_v14 = vpack.c.bf16 %v13100_v8, %v13092_v37  ;;  %v3203_v23 = vld [vmem:[#allocation2 + $0x7] sm:$0xff] }
 0x258   : > { %13892 = vst [vmem:[#allocation29_spill] sm:$0xff] %v13103_v24  ;;  %3196 = vst [vmem:[#allocation2 + $0x1b0] sm:$0xff] %v13103_v24  ;;  %v3066_v56 = vmul.f32 %v11232_v30, %v12888_v35  ;;  %v11234_v41 = vadd.f32 %v2989_v1, %v1889_v44  ;;  %v13111_v46 = vpack.c.bf16 %v13103_v24, %v13096_v25  ;;  %v3208_v44 = vld [vmem:[#allocation2 + $0x4f] sm:$0xff]  ;;  %v3207_v1 = vld [vmem:[#allocation2 + $0x47] sm:$0xff] }
 0x259   : > { %v3105_v2 = vadd.f32 %v12893_v16, %v3068_v60  ;;  %v3069_v9 = vmul.f32 %v11233_v62, %v12888_v35  ;;  %v3239_v30 = vpack.c.bf16 %v3204_v34, %v3203_v23  ;;  %v3205_v60 = vld [vmem:[#allocation2 + $0x27] sm:$0xff]  ;;  %v12116_v23 = vld [vmem:[#allocation5 + $0x2d8] sm:$0xff]  }
 0x25a   : > { %v3103_v27 = vadd.f32 %v12893_v16, %v3066_v56  ;;  %v3067_v57 = vmul.f32 %v11234_v41, %v12888_v35  ;;  %10344 = vmatmul.mubr.bf16.gmra.mrb[56].mxu1 %v13111_v46  ;;  %v12114_v56 = vld [vmem:[#allocation5 + $0x2c8] sm:$0xff]   ;;  %v13144_v41 = vpack.c.bf16 %v3208_v44, %v3207_v1 }
 0x25b   : > { %v13122_v58 = vmax.f32 %v3105_v2, 0.0  ;;  %v3106_v12 = vadd.f32 %v12893_v16, %v3069_v9  ;;  %10347 = vmatprep.mubr.bf16.mxu1 %v13117_v14  ;;  %v12115_v2 = vld [vmem:[#allocation5 + $0x2d0] sm:$0xff]   ;;  %v3213_v44 = vld [vmem:[#allocation2 + $0xa7] sm:$0xff] }
 0x25c   : > { %v13126_v47 = vmax.f32 %v3103_v27, 0.0  ;;  %v3104_v49 = vadd.f32 %v12893_v16, %v3067_v57  ;;  %v3206_v16 = vld [vmem:[#allocation2 + $0x2f] sm:$0xff]  ;;  %v3209_v57 = vld [vmem:[#allocation2 + $0x67] sm:$0xff] }
 0x25d   : > { %3201 = vst [vmem:[#allocation2 + $0x208] sm:$0xff] %v13122_v58  ;;  %v13130_v15 = vmax.f32 %v3106_v12, 0.0  ;;  %v13142_v62 = vpack.c.bf16 %v3206_v16, %v3205_v60  ;;  %v3210_v9 = vld [vmem:[#allocation2 + $0x6f] sm:$0xff]  ;;  %v3215_v1 = vld [vmem:[#allocation2 + $0xc7] sm:$0xff] }
 0x25e   : > { %13893 = vst [vmem:[#allocation30_spill] sm:$0xff] %v13126_v47  ;;  %3199 = vst [vmem:[#allocation2 + $0x1e8] sm:$0xff] %v13126_v47  ;;  %v13133_v35 = vmax.f32 %v3104_v49, 0.0  ;;  %v3212_v27 = vld [vmem:[#allocation2 + $0x8f] sm:$0xff]  ;;  %v13149_v12 = vpack.c.bf16 %v3210_v9, %v3209_v57  ;;  %v3211_v49 = vld [vmem:[#allocation2 + $0x87] sm:$0xff] }
 0x25f   : > { %13894 = vst [vmem:[#allocation31_spill] sm:$0xff] %v13130_v15  ;;  %3202 = vst [vmem:[#allocation2 + $0x210] sm:$0xff] %v13130_v15  ;;  %v13151_v34 = vpack.c.bf16 %v3212_v27, %v3211_v49  ;;  %v3216_v16 = vld [vmem:[#allocation2 + $0xcf] sm:$0xff]  ;;  %v3217_v49 = vld [vmem:[#allocation2 + $0xe7] sm:$0xff] }
 0x260   : > { %13895 = vst [vmem:[#allocation32_spill] sm:$0xff] %v13133_v35  ;;  %3200 = vst [vmem:[#allocation2 + $0x1f0] sm:$0xff] %v13133_v35  ;;  %v13139_v33 = vpack.c.bf16 %v13133_v35, %v13126_v47  ;;  %v13157_v9 = vpack.c.bf16 %v3216_v16, %v3215_v1  ;;  %v3218_v27 = vld [vmem:[#allocation2 + $0xef] sm:$0xff]  ;;  %v3221_v47 = vld [vmem:[#allocation2 + $0x127] sm:$0xff] }
 0x261   : > { %v3220_v57 = vld [vmem:[#allocation2 + $0x10f] sm:$0xff]  ;;  %v13161_v35 = vpack.c.bf16 %v3218_v27, %v3217_v49  ;;  %v3227_v24 = vld [vmem:[#allocation2 + $0x187] sm:$0xff] }
 0x262   : > { %10348 = vmatmul.mubr.bf16.gmra.mrb[60].mxu1 %v13139_v33  ;;  %v3222_v16 = vld [vmem:[#allocation2 + $0x12f] sm:$0xff] }
 0x263   : > { %10367 = vmatprep.mubr.bf16.mxu1 %v3239_v30  ;;  %v3214_v30 = vld [vmem:[#allocation2 + $0xaf] sm:$0xff]  ;;  %v13167_v8 = vpack.c.bf16 %v3222_v16, %v3221_v47  ;;  %v3229_v16 = vld [vmem:[#allocation2 + $0x1a7] sm:$0xff] }
 0x264   : > { %v13155_v60 = vpack.c.bf16 %v3214_v30, %v3213_v44  ;;  %v12120_v30 = vld [vmem:[#allocation5 + $0x2f8] sm:$0xff]   ;;  %v3224_v1 = vld [vmem:[#allocation2 + $0x14f] sm:$0xff] }
 0x265   : > { %v3228_v49 = vld [vmem:[#allocation2 + $0x18f] sm:$0xff] }
 0x266   : > { %v13175_v37 = vpack.c.bf16 %v3228_v49, %v3227_v24  ;;  %v3230_v47 = vld [vmem:[#allocation2 + $0x1af] sm:$0xff]  ;;  %v3233_v49 = vld [vmem:[#allocation2 + $0x1e7] sm:$0xff] }
 0x267   : > { %v3234_v24 = vld [vmem:[#allocation2 + $0x1ef] sm:$0xff] }
 0x268   : > { %v13185_v31 = vpack.c.bf16 %v3234_v24, %v3233_v49  ;;  %v3354_v24 = vld [vmem:[#allocation2 + $0x71] sm:$0xff]  ;;  %v3355_v49 = vld [vmem:[#allocation2 + $0x89] sm:$0xff] }
 0x26a   : > { %10368 = vmatmul.mubr.bf16.vlgmr.msra.gmra.mrb[32].mxu1 %v13142_v62 }
 0x26b   : > { %10371 = vmatprep.mubr.bf16.mxu1 %v13144_v41  ;;  %10400 = vmatpush3.bf16.msra.mxu1 %v13036_v39  ;;  %v12117_v39 = vld [vmem:[#allocation5 + $0x2e0] sm:$0xff]  }
 0x26c   : > { %10401 = vmatprep.subr.bf16.mxu1 %v12114_v56 }
 0x26f   : > { %10402 = vmatpush3.bf16.msra.mxu1 %v12114_v56  ;;  %v12118_v56 = vld [vmem:[#allocation5 + $0x2e8] sm:$0xff]  }
 0x270   : > { %10403 = vmatprep.subr.bf16.mxu1 %v12115_v2 }
 0x272   : > { %10372 = vmatmul.mubr.bf16.gmra.mrb[36].mxu1 %v13149_v12 }
 0x273   : > { %10375 = vmatprep.mubr.bf16.mxu1 %v13151_v34  ;;  %10404 = vmatpush3.bf16.msra.mxu1 %v12115_v2  ;;  %v12119_v2 = vld [vmem:[#allocation5 + $0x2f0] sm:$0xff]  }
 0x274   : > { %10405 = vmatprep.subr.bf16.mxu1 %v12116_v23 }
 0x277   : > { %10406 = vmatpush3.bf16.msra.mxu1 %v12116_v23  ;;  %v3219_v23 = vld [vmem:[#allocation2 + $0x107] sm:$0xff] }
 0x278   : > { %10407 = vmatprep.subr.bf16.mxu1 %v12117_v39  ;;  %v13163_v44 = vpack.c.bf16 %v3220_v57, %v3219_v23  ;;  %v3226_v57 = vld [vmem:[#allocation2 + $0x16f] sm:$0xff]  ;;  %v3225_v23 = vld [vmem:[#allocation2 + $0x167] sm:$0xff] }
 0x27a   : > { %10376 = vmatmul.mubr.bf16.gmra.mrb[40].mxu1 %v13155_v60 }
 0x27b   : > { %10379 = vmatprep.mubr.bf16.mxu1 %v13157_v9  ;;  %10408 = vmatpush3.bf16.msra.mxu1 %v12117_v39  ;;  %v12121_v39 = vld [vmem:[#allocation5 + $0x300] sm:$0xff]  }
 0x27c   : > { %10409 = vmatprep.subr.bf16.mxu1 %v12118_v56 }
 0x27f   : > { %10410 = vmatpush3.bf16.msra.mxu1 %v12118_v56  ;;  %v3223_v56 = vld [vmem:[#allocation2 + $0x147] sm:$0xff] }
 0x280   : > { %10411 = vmatprep.subr.bf16.mxu1 %v12119_v2  ;;  %v13169_v27 = vpack.c.bf16 %v3224_v1, %v3223_v56  ;;  %v13179_v1 = vpack.c.bf16 %v3230_v47, %v3229_v16  ;;  %v3231_v56 = vld [vmem:[#allocation2 + $0x1c7] sm:$0xff]  ;;  %v3350_v47 = vld [vmem:[#allocation2 + $0x31] sm:$0xff] }
 0x281   : > { %v3351_v16 = vld [vmem:[#allocation2 + $0x49] sm:$0xff] }
 0x282   : > { %10380 = vmatmul.mubr.bf16.gmra.mrb[44].mxu1 %v13161_v35  ;;  %v13190_v55 = vpack.c.bf16 %v3352_v3, %v3351_v16  ;;  %v12125_v3 = vld [vmem:[#allocation5 + $0x320] sm:$0xff]   ;;  %v3358_v16 = vld [vmem:[#allocation2 + $0xb1] sm:$0xff] }
 0x283   : > { %10383 = vmatprep.mubr.bf16.mxu1 %v13163_v44  ;;  %10412 = vmatpush3.bf16.msra.mxu1 %v12119_v2  ;;  %v13173_v2 = vpack.c.bf16 %v3226_v57, %v3225_v23  ;;  %v3347_v57 = vld [vmem:[#allocation2 + $0x9] sm:$0xff]  ;;  %v3348_v23 = vld [vmem:[#allocation2 + $0x11] sm:$0xff] }
 0x284   : > { %10413 = vmatprep.subr.bf16.mxu1 %v12120_v30  ;;  %v3383_v63 = vpack.c.bf16 %v3348_v23, %v3347_v57  ;;  %v12123_v57 = vld [vmem:[#allocation5 + $0x310] sm:$0xff]  }
 0x285   : > { %v3353_v23 = vld [vmem:[#allocation2 + $0x69] sm:$0xff] }
 0x286   : > { %v13194_v21 = vpack.c.bf16 %v3354_v24, %v3353_v23  ;;  %v13202_v23 = vpack.c.bf16 %v3360_v45, %v3359_v0  ;;  %v3361_v24 = vld [vmem:[#allocation2 + $0xe9] sm:$0xff]  ;;  %v12129_v0 = vld [vmem:[#allocation5 + $0x340] sm:$0xff]  }
 0x287   : > { %10414 = vmatpush3.bf16.msra.mxu1 %v12120_v30  ;;  %v3232_v30 = vld [vmem:[#allocation2 + $0x1cf] sm:$0xff] }
 0x288   : > { %10447 = vmatprep.subr.bf16.mxu1 %v12121_v39  ;;  %v13181_v25 = vpack.c.bf16 %v3232_v30, %v3231_v56  ;;  %v13188_v30 = vpack.c.bf16 %v3350_v47, %v3349_v28  ;;  %v12122_v56 = vld [vmem:[#allocation5 + $0x308] sm:$0xff]   ;;  %v12124_v28 = vld [vmem:[#allocation5 + $0x318] sm:$0xff]  }
 0x289   : > { %v3365_v45 = vld [vmem:[#allocation2 + $0x129] sm:$0xff] }
 0x28a   : > { %10384 = vmatmul.mubr.bf16.gmra.mrb[48].mxu1 %v13167_v8 }
 0x28b   : > { %10387 = vmatprep.mubr.bf16.mxu1 %v13169_v27 }
 0x292   : > { %10388 = vmatmul.mubr.bf16.gmra.mrb[52].mxu1 %v13173_v2 }
 0x293   : > { %10391 = vmatprep.mubr.bf16.mxu1 %v13175_v37 }
 0x29a   : > { %10392 = vmatmul.mubr.bf16.gmra.mrb[56].mxu1 %v13179_v1 }
 0x29b   : > { %10395 = vmatprep.mubr.bf16.mxu1 %v13181_v25 }
 0x2a2   : > { %10396 = vmatmul.mubr.bf16.gmra.mrb[60].mxu1 %v13185_v31 }
 0x2a3   : > { %10415 = vmatprep.mubr.bf16.mxu1 %v3383_v63  ;;  %v3356_v63 = vld [vmem:[#allocation2 + $0x91] sm:$0xff] }
 0x2a4   : > { %v13196_v47 = vpack.c.bf16 %v3356_v63, %v3355_v49  ;;  %v3362_v49 = vld [vmem:[#allocation2 + $0xf1] sm:$0xff]  ;;  %v3363_v63 = vld [vmem:[#allocation2 + $0x109] sm:$0xff] }
 0x2a5   : > { %v13206_v19 = vpack.c.bf16 %v3362_v49, %v3361_v24  ;;  %v3370_v24 = vld [vmem:[#allocation2 + $0x171] sm:$0xff]  ;;  %v3371_v49 = vld [vmem:[#allocation2 + $0x189] sm:$0xff] }
 0x2aa   : > { %10416 = vmatmul.mubr.bf16.vlgmr.msra.gmra.mrb[32].mxu1 %v13188_v30 }
 0x2ab   : > { %10419 = vmatprep.mubr.bf16.mxu1 %v13190_v55  ;;  %10448 = vmatpush3.bf16.msra.mxu1 %v12121_v39  ;;  %v3357_v39 = vld [vmem:[#allocation2 + $0xa9] sm:$0xff] }
 0x2ac   : > { %10449 = vmatprep.subr.bf16.mxu1 %v12122_v56  ;;  %v13200_v53 = vpack.c.bf16 %v3358_v16, %v3357_v39  ;;  %v13208_v39 = vpack.c.bf16 %v3364_v11, %v3363_v63  ;;  %v3367_v16 = vld [vmem:[#allocation2 + $0x149] sm:$0xff] }
 0x2ad   : > { %v3369_v11 = vld [vmem:[#allocation2 + $0x169] sm:$0xff] }
 0x2ae   : > { %v13218_v63 = vpack.c.bf16 %v3370_v24, %v3369_v11  ;;  %v3377_v11 = vld [vmem:[#allocation2 + $0x1e9] sm:$0xff]  ;;  %v3378_v24 = vld [vmem:[#allocation2 + $0x1f1] sm:$0xff] }
 0x2af   : > { %10450 = vmatpush3.bf16.msra.mxu1 %v12122_v56  ;;  %v12126_v56 = vld [vmem:[#allocation5 + $0x328] sm:$0xff]  }
 0x2b0   : > { %10451 = vmatprep.subr.bf16.mxu1 %v12123_v57 }
 0x2b2   : > { %10420 = vmatmul.mubr.bf16.gmra.mrb[36].mxu1 %v13194_v21 }
 0x2b3   : > { %10423 = vmatprep.mubr.bf16.mxu1 %v13196_v47  ;;  %10452 = vmatpush3.bf16.msra.mxu1 %v12123_v57  ;;  %v12127_v57 = vld [vmem:[#allocation5 + $0x330] sm:$0xff]  }
 0x2b4   : > { %10453 = vmatprep.subr.bf16.mxu1 %v12124_v28 }
 0x2b7   : > { %10454 = vmatpush3.bf16.msra.mxu1 %v12124_v28  ;;  %v12128_v28 = vld [vmem:[#allocation5 + $0x338] sm:$0xff]  }
 0x2b8   : > { %10455 = vmatprep.subr.bf16.mxu1 %v12125_v3 }
 0x2ba   : > { %10424 = vmatmul.mubr.bf16.gmra.mrb[40].mxu1 %v13200_v53 }
 0x2bb   : > { %10427 = vmatprep.mubr.bf16.mxu1 %v13202_v23  ;;  %10456 = vmatpush3.bf16.msra.mxu1 %v12125_v3  ;;  %v3366_v3 = vld [vmem:[#allocation2 + $0x131] sm:$0xff] }
 0x2bc   : > { %10457 = vmatprep.subr.bf16.mxu1 %v12126_v56  ;;  %v13212_v32 = vpack.c.bf16 %v3366_v3, %v3365_v45  ;;  %v3374_v45 = vld [vmem:[#allocation2 + $0x1b1] sm:$0xff] }
 0x2bd   : > { %v3376_v3 = vld [vmem:[#allocation2 + $0x1d1] sm:$0xff] }
 0x2bf   : > { %10458 = vmatpush3.bf16.msra.mxu1 %v12126_v56  ;;  %v13214_v56 = vpack.c.bf16 %v3368_v13, %v3367_v16  ;;  %v3375_v13 = vld [vmem:[#allocation2 + $0x1c9] sm:$0xff] }
 0x2c0   : > { %10459 = vmatprep.subr.bf16.mxu1 %v12127_v57  ;;  %v13226_v52 = vpack.c.bf16 %v3376_v3, %v3375_v13  ;;  %v12133_v13 = vld [vmem:[#allocation5 + $0x360] sm:$0xff]   ;;  %v12136_v3 = vld [vmem:[#allocation5 + $0x378] sm:$0xff]  }
 0x2c2   : > { %10428 = vmatmul.mubr.bf16.gmra.mrb[44].mxu1 %v13206_v19 }
 0x2c3   : > { %10431 = vmatprep.mubr.bf16.mxu1 %v13208_v39  ;;  %10460 = vmatpush3.bf16.msra.mxu1 %v12127_v57  ;;  %v3372_v57 = vld [vmem:[#allocation2 + $0x191] sm:$0xff] }
 0x2c4   : > { %10461 = vmatprep.subr.bf16.mxu1 %v12128_v28  ;;  %v13220_v42 = vpack.c.bf16 %v3372_v57, %v3371_v49  ;;  %v13230_v49 = vpack.c.bf16 %v3378_v24, %v3377_v11  ;;  %v12130_v57 = vld [vmem:[#allocation5 + $0x348] sm:$0xff]   ;;  %v12137_v11 = vld [vmem:[#allocation5 + $0x380] sm:$0xff]  }
 0x2c5   : > { %v3236_v24 = vld [vmem:[#allocation2 + $0x20f] sm:$0xff] }
 0x2c7   : > { %10462 = vmatpush3.bf16.msra.mxu1 %v12128_v28  ;;  %v3373_v28 = vld [vmem:[#allocation2 + $0x1a9] sm:$0xff] }
 0x2c8   : > { %10495 = vmatprep.subr.bf16.mxu1 %v12129_v0  ;;  %v13224_v16 = vpack.c.bf16 %v3374_v45, %v3373_v28  ;;  %v12131_v28 = vld [vmem:[#allocation5 + $0x350] sm:$0xff]   ;;  %v12132_v45 = vld [vmem:[#allocation5 + $0x358] sm:$0xff]  }
 0x2ca   : > { %10432 = vmatmul.mubr.bf16.gmra.mrb[48].mxu1 %v13212_v32 }
 0x2cb   : > { %10435 = vmatprep.mubr.bf16.mxu1 %v13214_v56 }
 0x2d2   : > { %10436 = vmatmul.mubr.bf16.gmra.mrb[52].mxu1 %v13218_v63 }
 0x2d3   : > { %10439 = vmatprep.mubr.bf16.mxu1 %v13220_v42 }
 0x2da   : > { %10440 = vmatmul.mubr.bf16.gmra.mrb[56].mxu1 %v13224_v16 }
 0x2db   : > { %10443 = vmatprep.mubr.bf16.mxu1 %v13226_v52 }
 0x2e2   : > { %10444 = vmatmul.mubr.bf16.gmra.mrb[60].mxu1 %v13230_v49 }
 0x2e3   : > { %10463 = vmatprep.mubr.bf16.mxu1 %v13142_v62  ;;  %v12134_v62 = vld [vmem:[#allocation5 + $0x368] sm:$0xff]  }
 0x2ea   : > { %10464 = vmatmul.mubr.bf16.vlgmr.msra.gmra.mrb[32].mxu1 %v13144_v41 }
 0x2eb   : > { %10467 = vmatprep.mubr.bf16.mxu1 %v13149_v12  ;;  %10496 = vmatpush3.bf16.msra.mxu1 %v12129_v0  ;;  %v12135_v0 = vld [vmem:[#allocation5 + $0x370] sm:$0xff]  }
 0x2ec   : > { %10497 = vmatprep.subr.bf16.mxu1 %v12130_v57 }
 0x2ef   : > { %10498 = vmatpush3.bf16.msra.mxu1 %v12130_v57  ;;  %v3235_v57 = vld [vmem:[#allocation2 + $0x207] sm:$0xff] }
 0x2f0   : > { %10499 = vmatprep.subr.bf16.mxu1 %v12131_v28 }
 0x2f2   : > { %10468 = vmatmul.mubr.bf16.gmra.mrb[36].mxu1 %v13151_v34 }
 0x2f3   : > { %10471 = vmatprep.mubr.bf16.mxu1 %v13155_v60  ;;  %10500 = vmatpush3.bf16.msra.mxu1 %v12131_v28  ;;  %v13248_v28 = vpack.c.bf16 %v3236_v24, %v3235_v57  ;;  %v12145_v24 = vld [vmem:[#allocation5 + $0x3c0] sm:$0xff]   ;;  %v13268_v57 = vpack.c.bf16 %v13130_v15, %v13122_v58 }
 0x2f4   : > { %10501 = vmatprep.subr.bf16.mxu1 %v12132_v45 }
 0x2f7   : > { %10502 = vmatpush3.bf16.msra.mxu1 %v12132_v45  ;;  %v12138_v45 = vld [vmem:[#allocation5 + $0x388] sm:$0xff]  }
 0x2f8   : > { %10503 = vmatprep.subr.bf16.mxu1 %v12133_v13 }
 0x2fa   : > { %10472 = vmatmul.mubr.bf16.gmra.mrb[40].mxu1 %v13157_v9 }
 0x2fb   : > { %10475 = vmatprep.mubr.bf16.mxu1 %v13161_v35  ;;  %10504 = vmatpush3.bf16.msra.mxu1 %v12133_v13  ;;  %v12139_v13 = vld [vmem:[#allocation5 + $0x390] sm:$0xff]  }
 0x2fc   : > { %10505 = vmatprep.subr.bf16.mxu1 %v12134_v62 }
 0x2ff   : > { %10506 = vmatpush3.bf16.msra.mxu1 %v12134_v62  ;;  %v12140_v62 = vld [vmem:[#allocation5 + $0x398] sm:$0xff]  }
 0x300   : > { %10507 = vmatprep.subr.bf16.mxu1 %v12135_v0 }
 0x302   : > { %10476 = vmatmul.mubr.bf16.gmra.mrb[44].mxu1 %v13163_v44 }
 0x303   : > { %10479 = vmatprep.mubr.bf16.mxu1 %v13167_v8  ;;  %10508 = vmatpush3.bf16.msra.mxu1 %v12135_v0  ;;  %v12141_v0 = vld [vmem:[#allocation5 + $0x3a0] sm:$0xff]  }
 0x304   : > { %10509 = vmatprep.subr.bf16.mxu1 %v12136_v3 }
 0x307   : > { %10510 = vmatpush3.bf16.msra.mxu1 %v12136_v3  ;;  %v12143_v3 = vld [vmem:[#allocation5 + $0x3b0] sm:$0xff]  }
 0x308   : > { %10543 = vmatprep.subr.bf16.mxu1 %v12137_v11 }
 0x30a   : > { %10480 = vmatmul.mubr.bf16.gmra.mrb[48].mxu1 %v13169_v27 }
 0x30b   : > { %10483 = vmatprep.mubr.bf16.mxu1 %v13173_v2 }
 0x312   : > { %10484 = vmatmul.mubr.bf16.gmra.mrb[52].mxu1 %v13175_v37 }
 0x313   : > { %10487 = vmatprep.mubr.bf16.mxu1 %v13179_v1 }
 0x31a   : > { %10488 = vmatmul.mubr.bf16.gmra.mrb[56].mxu1 %v13181_v25 }
 0x31b   : > { %10491 = vmatprep.mubr.bf16.mxu1 %v13185_v31 }
 0x322   : > { %10492 = vmatmul.mubr.bf16.gmra.mrb[60].mxu1 %v13248_v28 }
 0x323   : > { %10511 = vmatprep.mubr.bf16.mxu1 %v12919_v22  ;;  %v12142_v22 = vld [vmem:[#allocation5 + $0x3a8] sm:$0xff]  }
 0x32a   : > { %10512 = vmatmul.mubr.bf16.vlgmr.msra.gmra.mrb[32].mxu1 %v12925_v36 }
 0x32b   : > { %10515 = vmatprep.mubr.bf16.mxu1 %v12954_v29  ;;  %10544 = vmatpush3.bf16.msra.mxu1 %v12137_v11  ;;  %v12144_v11 = vld [vmem:[#allocation5 + $0x3b8] sm:$0xff]  }
 0x32c   : > { %10545 = vmatprep.subr.bf16.mxu1 %v12138_v45 }
 0x32f   : > { %10546 = vmatpush3.bf16.msra.mxu1 %v12138_v45  ;;  %v12146_v45 = vld [vmem:[#allocation5 + $0x3c8] sm:$0xff]  }
 0x330   : > { %10547 = vmatprep.subr.bf16.mxu1 %v12139_v13 }
 0x332   : > { %10516 = vmatmul.mubr.bf16.gmra.mrb[36].mxu1 %v12960_v51 }
 0x333   : > { %10519 = vmatprep.mubr.bf16.mxu1 %v12988_v6  ;;  %10548 = vmatpush3.bf16.msra.mxu1 %v12139_v13  ;;  %v12147_v13 = vld [vmem:[#allocation5 + $0x3d0] sm:$0xff]  }
 0x334   : > { %10549 = vmatprep.subr.bf16.mxu1 %v12140_v62 }
 0x337   : > { %10550 = vmatpush3.bf16.msra.mxu1 %v12140_v62  ;;  %v12148_v62 = vld [vmem:[#allocation5 + $0x3d8] sm:$0xff]  }
 0x338   : > { %10551 = vmatprep.subr.bf16.mxu1 %v12141_v0 }
 0x33a   : > { %10520 = vmatmul.mubr.bf16.gmra.mrb[40].mxu1 %v12994_v18 }
 0x33b   : > { %10523 = vmatprep.mubr.bf16.mxu1 %v13018_v50  ;;  %10552 = vmatpush3.bf16.msra.mxu1 %v12141_v0  ;;  %v12149_v0 = vld [vmem:[#allocation5 + $0x3e0] sm:$0xff]  }
 0x33c   : > { %10553 = vmatprep.subr.bf16.mxu1 %v12142_v22 }
 0x33f   : > { %10554 = vmatpush3.bf16.msra.mxu1 %v12142_v22  ;;  %v12151_v22 = vld [vmem:[#allocation5 + $0x3f0] sm:$0xff]  }
 0x340   : > { %10555 = vmatprep.subr.bf16.mxu1 %v12143_v3 }
 0x342   : > { %10524 = vmatmul.mubr.bf16.gmra.mrb[44].mxu1 %v13024_v17 }
 0x343   : > { %10527 = vmatprep.mubr.bf16.mxu1 %v13050_v38  ;;  %10556 = vmatpush3.bf16.msra.mxu1 %v12143_v3  ;;  %v12152_v3 = vld [vmem:[#allocation5 + $0x3f8] sm:$0xff]  }
 0x344   : > { %10557 = vmatprep.subr.bf16.mxu1 %v12144_v11 }
 0x347   : > { %10558 = vmatpush3.bf16.msra.mxu1 %v12144_v11  ;;  %v12153_v11 = vld [vmem:[#allocation5 + $0x400] sm:$0xff]  }
 0x348   : > { %10591 = vmatprep.subr.bf16.mxu1 %v12145_v24 }
 0x34a   : > { %10528 = vmatmul.mubr.bf16.gmra.mrb[48].mxu1 %v13057_v7 }
 0x34b   : > { %10531 = vmatprep.mubr.bf16.mxu1 %v13081_v48 }
 0x352   : > { %10532 = vmatmul.mubr.bf16.gmra.mrb[52].mxu1 %v13087_v4 }
 0x353   : > { %10535 = vmatprep.mubr.bf16.mxu1 %v13111_v46 }
 0x35a   : > { %10536 = vmatmul.mubr.bf16.gmra.mrb[56].mxu1 %v13117_v14 }
 0x35b   : > { %10539 = vmatprep.mubr.bf16.mxu1 %v13139_v33 }
 0x362   : > { %10540 = vmatmul.mubr.bf16.gmra.mrb[60].mxu1 %v13268_v57 }
 0x363   : > { %10559 = vmatprep.mubr.bf16.mxu1 %v13188_v30  ;;  %v12150_v30 = vld [vmem:[#allocation5 + $0x3e8] sm:$0xff]  }
 0x36a   : > { %10560 = vmatmul.mubr.bf16.vlgmr.msra.gmra.mrb[32].mxu1 %v13190_v55 }
 0x36b   : > { %10563 = vmatprep.mubr.bf16.mxu1 %v13194_v21  ;;  %10592 = vmatpush3.bf16.msra.mxu1 %v12145_v24  ;;  %v13286_v24 = vld [vmem:[#allocation2 + $0x8] sm:$0xff] }
 0x36c   : > { %10593 = vmatprep.subr.bf16.mxu1 %v12146_v45 }
 0x36f   : > { %10594 = vmatpush3.bf16.msra.mxu1 %v12146_v45  ;;  %v13290_v45 = vpack.c.bf16 %v13286_v24, %v13286_v24 }
 0x370   : > { %10595 = vmatprep.subr.bf16.mxu1 %v12147_v13 }
 0x371   : > { %10751 = vmatprep.mubr.bf16.mxu0 %v13290_v45 }
 0x372   : > { %10564 = vmatmul.mubr.bf16.gmra.mrb[36].mxu1 %v13196_v47 }
 0x373   : > { %10567 = vmatprep.mubr.bf16.mxu1 %v13200_v53  ;;  %10596 = vmatpush3.bf16.msra.mxu1 %v12147_v13  ;;  %v3379_v13 = vld [vmem:[#allocation2 + $0x209] sm:$0xff] }
 0x374   : > { %10597 = vmatprep.subr.bf16.mxu1 %v12148_v62 }
 0x377   : > { %10598 = vmatpush3.bf16.msra.mxu1 %v12148_v62  ;;  %v3380_v62 = vld [vmem:[#allocation2 + $0x211] sm:$0xff] }
 0x378   : > { %10599 = vmatprep.subr.bf16.mxu1 %v12149_v0 }
 0x37a   : > { %10568 = vmatmul.mubr.bf16.gmra.mrb[40].mxu1 %v13202_v23 }
 0x37b   : > { %10571 = vmatprep.mubr.bf16.mxu1 %v13206_v19  ;;  %10600 = vmatpush3.bf16.msra.mxu1 %v12149_v0  ;;  %v13293_v0 = vpack.c.bf16 %v3380_v62, %v3379_v13  ;;  %v12157_v13 = vld [vmem:[#allocation5 + $0x420] sm:$0xff]  }
 0x37c   : > { %10601 = vmatprep.subr.bf16.mxu1 %v12150_v30 }
 0x37f   : > { %10602 = vmatpush3.bf16.msra.mxu1 %v12150_v30  ;;  %v12154_v30 = vld [vmem:[#allocation5 + $0x408] sm:$0xff]  }
 0x380   : > { %10603 = vmatprep.subr.bf16.mxu1 %v12151_v22 }
 0x382   : > { %10572 = vmatmul.mubr.bf16.gmra.mrb[44].mxu1 %v13208_v39 }
 0x383   : > { %10575 = vmatprep.mubr.bf16.mxu1 %v13212_v32  ;;  %10604 = vmatpush3.bf16.msra.mxu1 %v12151_v22  ;;  %v12155_v22 = vld [vmem:[#allocation5 + $0x410] sm:$0xff]  }
 0x384   : > { %10605 = vmatprep.subr.bf16.mxu1 %v12152_v3 }
 0x387   : > { %10606 = vmatpush3.bf16.msra.mxu1 %v12152_v3  ;;  %v12156_v3 = vld [vmem:[#allocation5 + $0x418] sm:$0xff]  }
 0x388   : > { %10639 = vmatprep.subr.bf16.mxu1 %v12153_v11 }
 0x38a   : > { %10576 = vmatmul.mubr.bf16.gmra.mrb[48].mxu1 %v13214_v56 }
 0x38b   : > { %10579 = vmatprep.mubr.bf16.mxu1 %v13218_v63 }
 0x392   : > { %10580 = vmatmul.mubr.bf16.gmra.mrb[52].mxu1 %v13220_v42 }
 0x393   : > { %10583 = vmatprep.mubr.bf16.mxu1 %v13224_v16 }
 0x39a   : > { %10584 = vmatmul.mubr.bf16.gmra.mrb[56].mxu1 %v13226_v52 }
 0x39b   : > { %10587 = vmatprep.mubr.bf16.mxu1 %v13230_v49 }
 0x3a2   : > { %10588 = vmatmul.mubr.bf16.gmra.mrb[60].mxu1 %v13293_v0 }
 0x3a3   : > { %10607 = vmatprep.mubr.bf16.mxu1 %v13144_v41  ;;  %v12158_v41 = vld [vmem:[#allocation5 + $0x428] sm:$0xff]  }
 0x3aa   : > { %10608 = vmatmul.mubr.bf16.vlgmr.msra.gmra.mrb[32].mxu1 %v13149_v12  ;;  %v12159_v12 = vld [vmem:[#allocation5 + $0x430] sm:$0xff]  }
 0x3ab   : > { %10611 = vmatprep.mubr.bf16.mxu1 %v13151_v34  ;;  %10640 = vmatpush3.bf16.msra.mxu1 %v12153_v11  ;;  %v12160_v34 = vld [vmem:[#allocation5 + $0x438] sm:$0xff]  }
 0x3ac   : > { %10641 = vmatprep.subr.bf16.mxu1 %v12154_v30  ;;  %v12168_v11 = vld [vmem:[#allocation5 + $0x478] sm:$0xff]  }
 0x3af   : > { %10642 = vmatpush3.bf16.msra.mxu1 %v12154_v30 }
 0x3b0   : > { %10643 = vmatprep.subr.bf16.mxu1 %v12155_v22 }
 0x3b2   : > { %10612 = vmatmul.mubr.bf16.gmra.mrb[36].mxu1 %v13155_v60  ;;  %v12161_v60 = vld [vmem:[#allocation5 + $0x440] sm:$0xff]  }
 0x3b3   : > { %10615 = vmatprep.mubr.bf16.mxu1 %v13157_v9  ;;  %10644 = vmatpush3.bf16.msra.mxu1 %v12155_v22 }
 0x3b4   : > { %10645 = vmatprep.subr.bf16.mxu1 %v12156_v3 }
 0x3b7   : > { %10646 = vmatpush3.bf16.msra.mxu1 %v12156_v3  ;;  %v12178_v3 = vld [vmem:[#allocation5 + $0x488] sm:$0xff]  }
 0x3b8   : > { %10647 = vmatprep.subr.bf16.mxu1 %v12157_v13 }
 0x3ba   : > { %10616 = vmatmul.mubr.bf16.gmra.mrb[40].mxu1 %v13161_v35  ;;  %v3238_v35 = vld [vmem:[#allocation2 + $0x22f] sm:$0xff] }
 0x3bb   : > { %10619 = vmatprep.mubr.bf16.mxu1 %v13163_v44  ;;  %10648 = vmatpush3.bf16.msra.mxu1 %v12157_v13  ;;  %v12169_v44 = vld [vmem:[#allocation5 + $0x4c0] sm:$0xff]  }
 0x3bc   : > { %10649 = vmatprep.subr.bf16.mxu1 %v12158_v41  ;;  %10735 = vmatprep.subr.bf16.mxu0 %v12169_v44 }
 0x3bd   : > { %10736 = vmatpush3.bf16.msra.mxu0 %v12169_v44 }
 0x3bf   : > { %10650 = vmatpush3.bf16.msra.mxu1 %v12158_v41 }
 0x3c0   : > { %10651 = vmatprep.subr.bf16.mxu1 %v12159_v12 }
 0x3c2   : > { %10620 = vmatmul.mubr.bf16.gmra.mrb[44].mxu1 %v13167_v8  ;;  %v3237_v8 = vld [vmem:[#allocation2 + $0x227] sm:$0xff] }
 0x3c3   : > { %10623 = vmatprep.mubr.bf16.mxu1 %v13169_v27  ;;  %10652 = vmatpush3.bf16.msra.mxu1 %v12159_v12  ;;  %v3256_v9 = vpack.c.bf16 %v3238_v35, %v3237_v8  ;;  %v12170_v27 = vld [vmem:[#allocation5 + $0x4c8] sm:$0xff]  }
 0x3c4   : > { %10653 = vmatprep.subr.bf16.mxu1 %v12160_v34  ;;  %10737 = vmatprep.subr.bf16.mxu0 %v12170_v27 }
 0x3c5   : > { %10738 = vmatpush3.bf16.msra.mxu0 %v12170_v27  ;;  %v12179_v27 = vld [vmem:[#allocation5 + $0x490] sm:$0xff]  }
 0x3c7   : > { %10654 = vmatpush3.bf16.msra.mxu1 %v12160_v34 }
 0x3c8   : > { %10687 = vmatprep.subr.bf16.mxu1 %v12161_v60 }
 0x3ca   : > { %10624 = vmatmul.mubr.bf16.gmra.mrb[48].mxu1 %v13173_v2  ;;  %v12162_v2 = vld [vmem:[#allocation5 + $0x448] sm:$0xff]  }
 0x3cb   : > { %10627 = vmatprep.mubr.bf16.mxu1 %v13175_v37  ;;  %v12171_v37 = vld [vmem:[#allocation5 + $0x4d0] sm:$0xff]  }
 0x3cc   : > { %10739 = vmatprep.subr.bf16.mxu0 %v12171_v37 }
 0x3cd   : > { %10740 = vmatpush3.bf16.msra.mxu0 %v12171_v37 }
 0x3d2   : > { %10628 = vmatmul.mubr.bf16.gmra.mrb[52].mxu1 %v13179_v1  ;;  %v12173_v1 = vld [vmem:[#allocation5 + $0x4e0] sm:$0xff]  }
 0x3d3   : > { %10631 = vmatprep.mubr.bf16.mxu1 %v13181_v25  ;;  %v12163_v25 = vld [vmem:[#allocation5 + $0x450] sm:$0xff]  }
 0x3da   : > { %10632 = vmatmul.mubr.bf16.gmra.mrb[56].mxu1 %v13185_v31  ;;  %v12172_v31 = vld [vmem:[#allocation5 + $0x4d8] sm:$0xff]  }
 0x3db   : > { %10635 = vmatprep.mubr.bf16.mxu1 %v13248_v28  ;;  %10741 = vmatprep.subr.bf16.mxu0 %v12172_v31  ;;  %v12174_v28 = vld [vmem:[#allocation5 + $0x4e8] sm:$0xff]  }
 0x3dc   : > { %10742 = vmatpush3.bf16.msra.mxu0 %v12172_v31 }
 0x3dd   : > { %10743 = vmatprep.subr.bf16.mxu0 %v12173_v1 }
 0x3e0   : > { %10744 = vmatpush3.bf16.msra.mxu0 %v12173_v1 }
 0x3e1   : > { %10745 = vmatprep.subr.bf16.mxu0 %v12174_v28 }
 0x3e2   : > { %10636 = vmatmul.mubr.bf16.gmra.mrb[60].mxu1 %v3256_v9 }
 0x3e3   : > { %10655 = vmatprep.mubr.bf16.mxu1 %v12925_v36  ;;  %v12164_v36 = vld [vmem:[#allocation5 + $0x458] sm:$0xff]  }
 0x3e4   : > { %10746 = vmatpush3.bf16.msra.mxu0 %v12174_v28 }
 0x3ea   : > { %10656 = vmatmul.mubr.bf16.vlgmr.msra.gmra.mrb[32].mxu1 %v12954_v29  ;;  %v12165_v29 = vld [vmem:[#allocation5 + $0x460] sm:$0xff]  }
 0x3eb   : > { %10659 = vmatprep.mubr.bf16.mxu1 %v12960_v51  ;;  %10688 = vmatpush3.bf16.msra.mxu1 %v12161_v60  ;;  %v12166_v51 = vld [vmem:[#allocation5 + $0x468] sm:$0xff]  }
 0x3ec   : > { %10689 = vmatprep.subr.bf16.mxu1 %v12162_v2 }
 0x3ef   : > { %10690 = vmatpush3.bf16.msra.mxu1 %v12162_v2 }
 0x3f0   : > { %10691 = vmatprep.subr.bf16.mxu1 %v12163_v25 }
 0x3f2   : > { %10660 = vmatmul.mubr.bf16.gmra.mrb[36].mxu1 %v12988_v6  ;;  %v12167_v6 = vld [vmem:[#allocation5 + $0x470] sm:$0xff]  }
 0x3f3   : > { %10663 = vmatprep.mubr.bf16.mxu1 %v12994_v18  ;;  %10692 = vmatpush3.bf16.msra.mxu1 %v12163_v25  ;;  %v3381_v18 = vld [vmem:[#allocation2 + $0x229] sm:$0xff] }
 0x3f4   : > { %10693 = vmatprep.subr.bf16.mxu1 %v12164_v36 }
 0x3f7   : > { %10694 = vmatpush3.bf16.msra.mxu1 %v12164_v36 }
 0x3f8   : > { %10695 = vmatprep.subr.bf16.mxu1 %v12165_v29 }
 0x3fa   : > { %10664 = vmatmul.mubr.bf16.gmra.mrb[40].mxu1 %v13018_v50  ;;  %v12175_v50 = vld [vmem:[#allocation5 + $0x4f0] sm:$0xff]  }
 0x3fb   : > { %10667 = vmatprep.mubr.bf16.mxu1 %v13024_v17  ;;  %10696 = vmatpush3.bf16.msra.mxu1 %v12165_v29  ;;  %v12177_v17 = vld [vmem:[#allocation5 + $0x480] sm:$0xff]  }
 0x3fc   : > { %10697 = vmatprep.subr.bf16.mxu1 %v12166_v51  ;;  %10747 = vmatprep.subr.bf16.mxu0 %v12175_v50 }
 0x3fd   : > { %10748 = vmatpush3.bf16.msra.mxu0 %v12175_v50 }
 0x3ff   : > { %10698 = vmatpush3.bf16.msra.mxu1 %v12166_v51 }
 0x400   : > { %10699 = vmatprep.subr.bf16.mxu1 %v12167_v6 }
 0x402   : > { %10668 = vmatmul.mubr.bf16.gmra.mrb[44].mxu1 %v13050_v38 }
 0x403   : > { %10671 = vmatprep.mubr.bf16.mxu1 %v13057_v7  ;;  %10700 = vmatpush3.bf16.msra.mxu1 %v12167_v6  ;;  %v12180_v6 = vld [vmem:[#allocation5 + $0x498] sm:$0xff]  }
 0x404   : > { %10701 = vmatprep.subr.bf16.mxu1 %v12168_v11 }
 0x407   : > { %10702 = vmatpush3.bf16.msra.mxu1 %v12168_v11 }
 0x408   : > { %11167 = vmatprep.subr.bf16.mxu1 %v13286_v24 }
 0x40a   : > { %10672 = vmatmul.mubr.bf16.gmra.mrb[48].mxu1 %v13081_v48 }
 0x40b   : > { %10675 = vmatprep.mubr.bf16.mxu1 %v13087_v4 }
 0x412   : > { %10676 = vmatmul.mubr.bf16.gmra.mrb[52].mxu1 %v13111_v46 }
 0x413   : > { %10679 = vmatprep.mubr.bf16.mxu1 %v13117_v14 }
 0x41a   : > { %10680 = vmatmul.mubr.bf16.gmra.mrb[56].mxu1 %v13139_v33 }
 0x41b   : > { %10683 = vmatprep.mubr.bf16.mxu1 %v13268_v57 }
 0x422   : > { %10684 = vmatmul.mubr.bf16.gmra.mrb[60].mxu1 %v13290_v45 }
 0x423   : > { %10703 = vmatprep.mubr.bf16.mxu1 %v13190_v55  ;;  %v13351_v55 = vld [vmem:[%s13838_s3 + $0x1] ss:$0 sm:$0xff] }
 0x42a   : > { %10704 = vmatmul.mubr.bf16.vlgmr.msra.gmra.mrb[32].mxu1 %v13194_v21 }
 0x42b   : > { %10707 = vmatprep.mubr.bf16.mxu1 %v13196_v47 }
 0x432   : > { %10708 = vmatmul.mubr.bf16.gmra.mrb[36].mxu1 %v13200_v53 }
 0x433   : > { %10711 = vmatprep.mubr.bf16.mxu1 %v13202_v23 }
 0x43a   : > { %10712 = vmatmul.mubr.bf16.gmra.mrb[40].mxu1 %v13206_v19  ;;  %v3382_v19 = vld [vmem:[#allocation2 + $0x231] sm:$0xff] }
 0x43b   : > { %10715 = vmatprep.mubr.bf16.mxu1 %v13208_v39  ;;  %v3400_v53 = vpack.c.bf16 %v3382_v19, %v3381_v18 }
 0x442   : > { %10716 = vmatmul.mubr.bf16.gmra.mrb[44].mxu1 %v13212_v32  ;;  %v12176_v32 = vld [vmem:[#allocation5 + $0x4f8] sm:$0xff]  }
 0x443   : > { %10719 = vmatprep.mubr.bf16.mxu1 %v13214_v56  ;;  %10749 = vmatprep.subr.bf16.mxu0 %v12176_v32 }
 0x444   : > { %10750 = vmatpush3.bf16.msra.mxu0 %v12176_v32 }
 0x445   : > { %10783 = vmatprep.subr.bf16.mxu0 %v12177_v17 }
 0x44a   : > { %10720 = vmatmul.mubr.bf16.gmra.mrb[48].mxu1 %v13218_v63 }
 0x44b   : > { %10723 = vmatprep.mubr.bf16.mxu1 %v13220_v42 }
 0x452   : > { %10724 = vmatmul.mubr.bf16.gmra.mrb[52].mxu1 %v13224_v16 }
 0x453   : > { %10727 = vmatprep.mubr.bf16.mxu1 %v13226_v52  ;;  %v13346_v52 = vld [vmem:[%s13837_s2 + $0x1] ss:$0 sm:$0xff] }
 0x45a   : > { %10728 = vmatmul.mubr.bf16.gmra.mrb[56].mxu1 %v13230_v49 }
 0x45b   : > { %10731 = vmatprep.mubr.bf16.mxu1 %v13293_v0 }
 0x462   : > { %10732 = vmatmul.mubr.bf16.gmra.mrb[60].mxu1 %v3400_v53 }
 0x4fd   : > { %v10705_v42 = vpop.f32.mrb[32].mxu1 }
 0x4fe   : > { %v5828_v21 = vmul.f32 %v10705_v42, %v13346_v52  ;;  %v5662_v38 = vpop.f32.mrb[33].mxu1 }
 0x4ff   : > { %v5826_v7 = vmul.f32 %v13346_v52, %v5662_v38  ;;  %v10706_v48 = vpop.f32.mrb[34].mxu1  ;;  %v12181_v38 = vld [vmem:[#allocation5 + $0x4a0] sm:$0xff]  }
 0x500   : > { %v5865_v4 = vadd.f32 %v13351_v55, %v5828_v21  ;;  %v5829_v46 = vmul.f32 %v10706_v48, %v13346_v52  ;;  %v5665_v14 = vpop.f32.mrb[35].mxu1 }
 0x501   : > { %v5863_v33 = vadd.f32 %v13351_v55, %v5826_v7  ;;  %v5827_v47 = vmul.f32 %v13346_v52, %v5665_v14 }
 0x502   : > { %v5897_v23 = vmax.f32 %v5865_v4, 0.0  ;;  %v5866_v39 = vadd.f32 %v13351_v55, %v5829_v46 }
 0x503   : > { %v5895_v56 = vmax.f32 %v5863_v33, 0.0  ;;  %v5864_v63 = vadd.f32 %v13351_v55, %v5827_v47 }
 0x504   : > { %5929 = vst [vmem:[#allocation2 + $0x48] sm:$0xff] %v5897_v23  ;;  %v5898_v16 = vmax.f32 %v5866_v39, 0.0 }
 0x505   : > { %5927 = vst [vmem:[#allocation2 + $0x28] sm:$0xff] %v5895_v56  ;;  %v5896_v49 = vmax.f32 %v5864_v63, 0.0  ;;  %v10709_v57 = vpop.f32.mrb[36].mxu1 }
 0x506   : > { %5930 = vst [vmem:[#allocation2 + $0x50] sm:$0xff] %v5898_v16  ;;  %v5832_v24 = vmul.f32 %v10709_v57, %v13346_v52  ;;  %v5678_v45 = vpop.f32.mrb[37].mxu1  ;;  %v13362_v62 = vpack.c.bf16 %v5898_v16, %v5897_v23 }
 0x507   : > { %5928 = vst [vmem:[#allocation2 + $0x30] sm:$0xff] %v5896_v49  ;;  %v5830_v0 = vmul.f32 %v13346_v52, %v5678_v45  ;;  %v10710_v30 = vpop.f32.mrb[38].mxu1  ;;  %v13365_v22 = vpack.c.bf16 %v5896_v49, %v5895_v56  ;;  %v12182_v56 = vld [vmem:[#allocation5 + $0x4a8] sm:$0xff]  }
 0x508   : > { %v5869_v13 = vadd.f32 %v13351_v55, %v5832_v24  ;;  %v5833_v41 = vmul.f32 %v10710_v30, %v13346_v52  ;;  %v5681_v12 = vpop.f32.mrb[39].mxu1 }
 0x509   : > { %v5867_v34 = vadd.f32 %v13351_v55, %v5830_v0  ;;  %v5831_v60 = vmul.f32 %v13346_v52, %v5681_v12  ;;  %10752 = vmatmul.mubr.bf16.vlgmr.msra.gmra.mrb[32].mxu0 %v13365_v22 }
 0x50a   : > { %v5901_v8 = vmax.f32 %v5869_v13, 0.0  ;;  %v5870_v35 = vadd.f32 %v13351_v55, %v5833_v41  ;;  %10755 = vmatprep.mubr.bf16.mxu0 %v13362_v62  ;;  %10784 = vmatpush3.bf16.msra.mxu0 %v12177_v17  ;;  %v12183_v13 = vld [vmem:[#allocation5 + $0x4b0] sm:$0xff]  }
 0x50b   : > { %v5899_v9 = vmax.f32 %v5867_v34, 0.0  ;;  %v5868_v44 = vadd.f32 %v13351_v55, %v5831_v60  ;;  %10785 = vmatprep.subr.bf16.mxu0 %v12178_v3 }
 0x50c   : > { %5933 = vst [vmem:[#allocation2 + $0x88] sm:$0xff] %v5901_v8  ;;  %v5902_v37 = vmax.f32 %v5870_v35, 0.0 }
 0x50d   : > { %5931 = vst [vmem:[#allocation2 + $0x68] sm:$0xff] %v5899_v9  ;;  %v5900_v2 = vmax.f32 %v5868_v44, 0.0  ;;  %v10713_v31 = vpop.f32.mrb[40].mxu1 }
 0x50e   : > { %5934 = vst [vmem:[#allocation2 + $0x90] sm:$0xff] %v5902_v37  ;;  %v5836_v25 = vmul.f32 %v10713_v31, %v13346_v52  ;;  %v5694_v1 = vpop.f32.mrb[41].mxu1  ;;  %v13376_v36 = vpack.c.bf16 %v5902_v37, %v5901_v8  ;;  %10786 = vmatpush3.bf16.msra.mxu0 %v12178_v3  ;;  %v12184_v37 = vld [vmem:[#allocation5 + $0x4b8] sm:$0xff]  }
 0x50f   : > { %5932 = vst [vmem:[#allocation2 + $0x70] sm:$0xff] %v5900_v2  ;;  %v5834_v28 = vmul.f32 %v13346_v52, %v5694_v1  ;;  %v10714_v29 = vpop.f32.mrb[42].mxu1  ;;  %v13379_v51 = vpack.c.bf16 %v5900_v2, %v5899_v9  ;;  %10787 = vmatprep.subr.bf16.mxu0 %v12179_v27 }
 0x510   : > { %v5873_v11 = vadd.f32 %v13351_v55, %v5836_v25  ;;  %v5837_v18 = vmul.f32 %v10714_v29, %v13346_v52  ;;  %v5697_v19 = vpop.f32.mrb[43].mxu1 }
 0x511   : > { %v5871_v53 = vadd.f32 %v13351_v55, %v5834_v28  ;;  %v5835_v50 = vmul.f32 %v13346_v52, %v5697_v19  ;;  %10756 = vmatmul.mubr.bf16.gmra.mrb[36].mxu0 %v13379_v51  ;;  %v13417_v19 = vld [vmem:[#allocation5 + $0x500] sm:$0xff]  }
 0x512   : > { %v5905_v32 = vmax.f32 %v5873_v11, 0.0  ;;  %v5874_v17 = vadd.f32 %v13351_v55, %v5837_v18  ;;  %10759 = vmatprep.mubr.bf16.mxu0 %v13376_v36  ;;  %10788 = vmatpush3.bf16.msra.mxu0 %v12179_v27 }
 0x513   : > { %v5903_v42 = vmax.f32 %v5871_v53, 0.0  ;;  %v5872_v21 = vadd.f32 %v13351_v55, %v5835_v50  ;;  %10789 = vmatprep.subr.bf16.mxu0 %v12180_v6 }
 0x514   : > { %5937 = vst [vmem:[#allocation2 + $0xc8] sm:$0xff] %v5905_v32  ;;  %v5906_v7 = vmax.f32 %v5874_v17, 0.0 }
 0x515   : > { %5935 = vst [vmem:[#allocation2 + $0xa8] sm:$0xff] %v5903_v42  ;;  %v5904_v48 = vmax.f32 %v5872_v21, 0.0  ;;  %v10717_v4 = vpop.f32.mrb[44].mxu1 }
 0x516   : > { %5938 = vst [vmem:[#allocation2 + $0xd0] sm:$0xff] %v5906_v7  ;;  %v5840_v46 = vmul.f32 %v10717_v4, %v13346_v52  ;;  %v5710_v14 = vpop.f32.mrb[45].mxu1  ;;  %v13390_v33 = vpack.c.bf16 %v5906_v7, %v5905_v32  ;;  %10790 = vmatpush3.bf16.msra.mxu0 %v12180_v6 }
 0x517   : > { %5936 = vst [vmem:[#allocation2 + $0xb0] sm:$0xff] %v5904_v48  ;;  %v5838_v47 = vmul.f32 %v13346_v52, %v5710_v14  ;;  %v10718_v23 = vpop.f32.mrb[46].mxu1  ;;  %v13393_v39 = vpack.c.bf16 %v5904_v48, %v5903_v42  ;;  %10791 = vmatprep.subr.bf16.mxu0 %v12181_v38 }
 0x518   : > { %v5877_v63 = vadd.f32 %v13351_v55, %v5840_v46  ;;  %v5841_v16 = vmul.f32 %v10718_v23, %v13346_v52  ;;  %v5713_v49 = vpop.f32.mrb[47].mxu1 }
 0x519   : > { %v5875_v57 = vadd.f32 %v13351_v55, %v5838_v47  ;;  %v5839_v24 = vmul.f32 %v13346_v52, %v5713_v49  ;;  %10760 = vmatmul.mubr.bf16.gmra.mrb[40].mxu0 %v13393_v39 }
 0x51a   : > { %v5909_v45 = vmax.f32 %v5877_v63, 0.0  ;;  %v5878_v0 = vadd.f32 %v13351_v55, %v5841_v16  ;;  %10763 = vmatprep.mubr.bf16.mxu0 %v13390_v33  ;;  %10792 = vmatpush3.bf16.msra.mxu0 %v12181_v38 }
 0x51b   : > { %v5907_v30 = vmax.f32 %v5875_v57, 0.0  ;;  %v5876_v3 = vadd.f32 %v13351_v55, %v5839_v24  ;;  %10793 = vmatprep.subr.bf16.mxu0 %v12182_v56 }
 0x51c   : > { %5941 = vst [vmem:[#allocation2 + $0x108] sm:$0xff] %v5909_v45  ;;  %v5910_v41 = vmax.f32 %v5878_v0, 0.0 }
 0x51d   : > { %5939 = vst [vmem:[#allocation2 + $0xe8] sm:$0xff] %v5907_v30  ;;  %v5908_v12 = vmax.f32 %v5876_v3, 0.0  ;;  %v10721_v34 = vpop.f32.mrb[48].mxu1 }
 0x51e   : > { %5942 = vst [vmem:[#allocation2 + $0x110] sm:$0xff] %v5910_v41  ;;  %v5844_v60 = vmul.f32 %v10721_v34, %v13346_v52  ;;  %v5726_v8 = vpop.f32.mrb[49].mxu1  ;;  %v13404_v35 = vpack.c.bf16 %v5910_v41, %v5909_v45  ;;  %10794 = vmatpush3.bf16.msra.mxu0 %v12182_v56 }
 0x51f   : > { %5940 = vst [vmem:[#allocation2 + $0xf0] sm:$0xff] %v5908_v12  ;;  %v5842_v9 = vmul.f32 %v13346_v52, %v5726_v8  ;;  %v10722_v44 = vpop.f32.mrb[50].mxu1  ;;  %v13407_v27 = vpack.c.bf16 %v5908_v12, %v5907_v30  ;;  %10795 = vmatprep.subr.bf16.mxu0 %v12183_v13 }
 0x520   : > { %v5881_v2 = vadd.f32 %v13351_v55, %v5844_v60  ;;  %v5845_v31 = vmul.f32 %v10722_v44, %v13346_v52  ;;  %v5729_v25 = vpop.f32.mrb[51].mxu1 }
 0x521   : > { %v5879_v1 = vadd.f32 %v13351_v55, %v5842_v9  ;;  %v5843_v28 = vmul.f32 %v13346_v52, %v5729_v25  ;;  %10764 = vmatmul.mubr.bf16.gmra.mrb[44].mxu0 %v13407_v27 }
 0x522   : > { %v5913_v29 = vmax.f32 %v5881_v2, 0.0  ;;  %v5882_v6 = vadd.f32 %v13351_v55, %v5845_v31  ;;  %10767 = vmatprep.mubr.bf16.mxu0 %v13404_v35  ;;  %10796 = vmatpush3.bf16.msra.mxu0 %v12183_v13 }
 0x523   : > { %v5911_v11 = vmax.f32 %v5879_v1, 0.0  ;;  %v5880_v18 = vadd.f32 %v13351_v55, %v5843_v28  ;;  %10797 = vmatprep.subr.bf16.mxu0 %v12184_v37 }
 0x524   : > { %5945 = vst [vmem:[#allocation2 + $0x148] sm:$0xff] %v5913_v29  ;;  %v5914_v53 = vmax.f32 %v5882_v6, 0.0 }
 0x525   : > { %5943 = vst [vmem:[#allocation2 + $0x128] sm:$0xff] %v5911_v11  ;;  %v5912_v50 = vmax.f32 %v5880_v18, 0.0  ;;  %v10725_v32 = vpop.f32.mrb[52].mxu1 }
 0x526   : > { %5946 = vst [vmem:[#allocation2 + $0x150] sm:$0xff] %v5914_v53  ;;  %v5848_v17 = vmul.f32 %v10725_v32, %v13346_v52  ;;  %v5742_v42 = vpop.f32.mrb[53].mxu1  ;;  %v13420_v21 = vpack.c.bf16 %v5914_v53, %v5913_v29  ;;  %10798 = vmatpush3.bf16.msra.mxu0 %v12184_v37 }
 0x527   : > { %5944 = vst [vmem:[#allocation2 + $0x130] sm:$0xff] %v5912_v50  ;;  %v5846_v38 = vmul.f32 %v13346_v52, %v5742_v42  ;;  %v10726_v7 = vpop.f32.mrb[54].mxu1  ;;  %v13423_v48 = vpack.c.bf16 %v5912_v50, %v5911_v11  ;;  %10831 = vmatprep.subr.bf16.mxu0 %v13417_v19 }
 0x528   : > { %v5885_v4 = vadd.f32 %v13351_v55, %v5848_v17  ;;  %v5849_v46 = vmul.f32 %v10726_v7, %v13346_v52  ;;  %v5745_v14 = vpop.f32.mrb[55].mxu1 }
 0x529   : > { %v5883_v47 = vadd.f32 %v13351_v55, %v5846_v38  ;;  %v5847_v23 = vmul.f32 %v13346_v52, %v5745_v14  ;;  %10768 = vmatmul.mubr.bf16.gmra.mrb[48].mxu0 %v13423_v48 }
 0x52a   : > { %v5917_v56 = vmax.f32 %v5885_v4, 0.0  ;;  %v5886_v63 = vadd.f32 %v13351_v55, %v5849_v46  ;;  %10771 = vmatprep.mubr.bf16.mxu0 %v13420_v21 }
 0x52b   : > { %v5915_v16 = vmax.f32 %v5883_v47, 0.0  ;;  %v5884_v49 = vadd.f32 %v13351_v55, %v5847_v23 }
 0x52c   : > { %5949 = vst [vmem:[#allocation2 + $0x188] sm:$0xff] %v5917_v56  ;;  %v5918_v57 = vmax.f32 %v5886_v63, 0.0  ;;  %v5992_v63 = vld [vmem:[#allocation2 + $0xf] sm:$0xff] }
 0x52d   : > { %5947 = vst [vmem:[#allocation2 + $0x168] sm:$0xff] %v5915_v16  ;;  %v5916_v24 = vmax.f32 %v5884_v49, 0.0  ;;  %v10729_v45 = vpop.f32.mrb[56].mxu1 }
 0x52e   : > { %5950 = vst [vmem:[#allocation2 + $0x190] sm:$0xff] %v5918_v57  ;;  %v5852_v0 = vmul.f32 %v10729_v45, %v13346_v52  ;;  %v5758_v30 = vpop.f32.mrb[57].mxu1  ;;  %v13435_v3 = vpack.c.bf16 %v5918_v57, %v5917_v56  ;;  %v5991_v56 = vld [vmem:[#allocation2 + $0x7] sm:$0xff]  ;;  %v5994_v45 = vld [vmem:[#allocation2 + $0x2f] sm:$0xff] }
 0x52f   : > { %5948 = vst [vmem:[#allocation2 + $0x170] sm:$0xff] %v5916_v24  ;;  %v5850_v13 = vmul.f32 %v13346_v52, %v5758_v30  ;;  %v10730_v41 = vpop.f32.mrb[58].mxu1  ;;  %v13438_v12 = vpack.c.bf16 %v5916_v24, %v5915_v16  ;;  %v6027_v57 = vpack.c.bf16 %v5992_v63, %v5991_v56  ;;  %v5993_v30 = vld [vmem:[#allocation2 + $0x27] sm:$0xff]  ;;  %v6010_v56 = vld [vmem:[#allocation2 + $0x12f] sm:$0xff] }
 0x530   : > { %v5889_v34 = vadd.f32 %v13351_v55, %v5852_v0  ;;  %v5853_v60 = vmul.f32 %v10730_v41, %v13346_v52  ;;  %v5761_v8 = vpop.f32.mrb[59].mxu1  ;;  %v5996_v0 = vld [vmem:[#allocation2 + $0x4f] sm:$0xff] }
 0x531   : > { %v5887_v9 = vadd.f32 %v13351_v55, %v5850_v13  ;;  %v5851_v44 = vmul.f32 %v13346_v52, %v5761_v8  ;;  %10772 = vmatmul.mubr.bf16.gmra.mrb[52].mxu0 %v13438_v12  ;;  %v5995_v13 = vld [vmem:[#allocation2 + $0x47] sm:$0xff]  ;;  %v5998_v8 = vld [vmem:[#allocation2 + $0x6f] sm:$0xff] }
 0x532   : > { %v5921_v37 = vmax.f32 %v5889_v34, 0.0  ;;  %v5890_v2 = vadd.f32 %v13351_v55, %v5853_v60  ;;  %10775 = vmatprep.mubr.bf16.mxu0 %v13435_v3  ;;  %v12186_v41 = vld [vmem:[#allocation5 + $0x508] sm:$0xff]   ;;  %v13469_v34 = vpack.c.bf16 %v5996_v0, %v5995_v13  ;;  %v12187_v60 = vld [vmem:[#allocation5 + $0x510] sm:$0xff]  }
 0x533   : > { %v5919_v31 = vmax.f32 %v5887_v9, 0.0  ;;  %v5888_v25 = vadd.f32 %v13351_v55, %v5851_v44  ;;  %v6000_v9 = vld [vmem:[#allocation2 + $0x8f] sm:$0xff]  ;;  %v5997_v44 = vld [vmem:[#allocation2 + $0x67] sm:$0xff] }
 0x534   : > { %5953 = vst [vmem:[#allocation2 + $0x1c8] sm:$0xff] %v5921_v37  ;;  %v5922_v1 = vmax.f32 %v5890_v2, 0.0  ;;  %v5999_v2 = vld [vmem:[#allocation2 + $0x87] sm:$0xff]  ;;  %v6012_v63 = vld [vmem:[#allocation2 + $0x14f] sm:$0xff] }
 0x535   : > { %5951 = vst [vmem:[#allocation2 + $0x1a8] sm:$0xff] %v5919_v31  ;;  %v5920_v28 = vmax.f32 %v5888_v25, 0.0  ;;  %v10733_v29 = vpop.f32.mrb[60].mxu1  ;;  %v13476_v25 = vpack.c.bf16 %v6000_v9, %v5999_v2  ;;  %v6013_v13 = vld [vmem:[#allocation2 + $0x167] sm:$0xff] }
 0x536   : > { %5954 = vst [vmem:[#allocation2 + $0x1d0] sm:$0xff] %v5922_v1  ;;  %v5856_v6 = vmul.f32 %v10733_v29, %v13346_v52  ;;  %v5774_v11 = vpop.f32.mrb[61].mxu1  ;;  %v13449_v18 = vpack.c.bf16 %v5922_v1, %v5921_v37  ;;  %v13474_v37 = vpack.c.bf16 %v5998_v8, %v5997_v44  ;;  %v6002_v1 = vld [vmem:[#allocation2 + $0xaf] sm:$0xff]  ;;  %v6001_v29 = vld [vmem:[#allocation2 + $0xa7] sm:$0xff] }
 0x537   : > { %5952 = vst [vmem:[#allocation2 + $0x1b0] sm:$0xff] %v5920_v28  ;;  %v5854_v53 = vmul.f32 %v13346_v52, %v5774_v11  ;;  %v10734_v50 = vpop.f32.mrb[62].mxu1  ;;  %v13452_v32 = vpack.c.bf16 %v5920_v28, %v5919_v31  ;;  %v12188_v31 = vld [vmem:[#allocation5 + $0x518] sm:$0xff]   ;;  %v6004_v28 = vld [vmem:[#allocation2 + $0xcf] sm:$0xff]  ;;  %v6003_v11 = vld [vmem:[#allocation2 + $0xc7] sm:$0xff] }
 0x538   : > { %v5893_v17 = vadd.f32 %v13351_v55, %v5856_v6  ;;  %v5857_v42 = vmul.f32 %v10734_v50, %v13346_v52  ;;  %v5777_v38 = vpop.f32.mrb[63].mxu1  ;;  %v13480_v6 = vpack.c.bf16 %v6002_v1, %v6001_v29  ;;  %v13482_v50 = vpack.c.bf16 %v6004_v28, %v6003_v11  ;;  %v6014_v0 = vld [vmem:[#allocation2 + $0x16f] sm:$0xff] }
 0x539   : > { %v5891_v7 = vadd.f32 %v13351_v55, %v5854_v53  ;;  %v5855_v4 = vmul.f32 %v13346_v52, %v5777_v38  ;;  %10776 = vmatmul.mubr.bf16.gmra.mrb[56].mxu0 %v13452_v32  ;;  %v12190_v53 = vld [vmem:[#allocation5 + $0x528] sm:$0xff]   ;;  %v6136_v29 = vld [vmem:[#allocation2 + $0x11] sm:$0xff] }
 0x53a   : > { %v5925_v46 = vmax.f32 %v5893_v17, 0.0  ;;  %v5894_v14 = vadd.f32 %v13351_v55, %v5857_v42  ;;  %10779 = vmatprep.mubr.bf16.mxu0 %v13449_v18  ;;  %v12191_v17 = vld [vmem:[#allocation5 + $0x530] sm:$0xff]  }
 0x53b   : > { %v5923_v47 = vmax.f32 %v5891_v7, 0.0  ;;  %v5892_v23 = vadd.f32 %v13351_v55, %v5855_v4  ;;  %v13467_v55 = vpack.c.bf16 %v5994_v45, %v5993_v30  ;;  %v6006_v42 = vld [vmem:[#allocation2 + $0xef] sm:$0xff]  ;;  %v6005_v7 = vld [vmem:[#allocation2 + $0xe7] sm:$0xff] }
 0x53c   : > { %5957 = vst [vmem:[#allocation2 + $0x208] sm:$0xff] %v5925_v46  ;;  %v5926_v16 = vmax.f32 %v5894_v14, 0.0  ;;  %v6008_v38 = vld [vmem:[#allocation2 + $0x10f] sm:$0xff]  ;;  %v13486_v4 = vpack.c.bf16 %v6006_v42, %v6005_v7  ;;  %v12192_v14 = vld [vmem:[#allocation5 + $0x538] sm:$0xff]   ;;  %v6017_v2 = vld [vmem:[#allocation2 + $0x1a7] sm:$0xff] }
 0x53d   : > { %5955 = vst [vmem:[#allocation2 + $0x1e8] sm:$0xff] %v5923_v47  ;;  %v5924_v49 = vmax.f32 %v5892_v23, 0.0  ;;  %v12193_v23 = vld [vmem:[#allocation5 + $0x540] sm:$0xff]   ;;  %v6016_v30 = vld [vmem:[#allocation2 + $0x18f] sm:$0xff] }
 0x53e   : > { %5958 = vst [vmem:[#allocation2 + $0x210] sm:$0xff] %v5926_v16  ;;  %v13462_v24 = vpack.c.bf16 %v5926_v16, %v5925_v46  ;;  %v6007_v46 = vld [vmem:[#allocation2 + $0x107] sm:$0xff]  ;;  %v6018_v9 = vld [vmem:[#allocation2 + $0x1af] sm:$0xff] }
 0x53f   : > { %5956 = vst [vmem:[#allocation2 + $0x1f0] sm:$0xff] %v5924_v49  ;;  %v13464_v52 = vpack.c.bf16 %v5924_v49, %v5923_v47  ;;  %v13488_v47 = vpack.c.bf16 %v6008_v38, %v6007_v46  ;;  %v6009_v16 = vld [vmem:[#allocation2 + $0x127] sm:$0xff]  ;;  %v6020_v44 = vld [vmem:[#allocation2 + $0x1cf] sm:$0xff] }
 0x540   : > { %v13492_v49 = vpack.c.bf16 %v6010_v56, %v6009_v16  ;;  %v6135_v28 = vld [vmem:[#allocation2 + $0x9] sm:$0xff]  ;;  %v6138_v7 = vld [vmem:[#allocation2 + $0x31] sm:$0xff] }
 0x541   : > { %10780 = vmatmul.mubr.bf16.gmra.mrb[60].mxu0 %v13464_v52  ;;  %v6137_v38 = vld [vmem:[#allocation2 + $0x29] sm:$0xff] }
 0x542   : > { %10799 = vmatprep.mubr.bf16.mxu0 %v6027_v57  ;;  %v6011_v57 = vld [vmem:[#allocation2 + $0x147] sm:$0xff]  ;;  %v13513_v56 = vpack.c.bf16 %v6138_v7, %v6137_v38  ;;  %v12199_v7 = vld [vmem:[#allocation5 + $0x570] sm:$0xff]  }
 0x543   : > { %v13494_v45 = vpack.c.bf16 %v6012_v63, %v6011_v57  ;;  %v6139_v46 = vld [vmem:[#allocation2 + $0x49] sm:$0xff] }
 0x544   : > { %v12194_v63 = vld [vmem:[#allocation5 + $0x548] sm:$0xff]   ;;  %v12195_v57 = vld [vmem:[#allocation5 + $0x550] sm:$0xff]  }
 0x546   : > { %v6022_v11 = vld [vmem:[#allocation2 + $0x1ef] sm:$0xff] }
 0x549   : > { %10800 = vmatmul.mubr.bf16.vlgmr.msra.gmra.mrb[32].mxu0 %v13467_v55 }
 0x54a   : > { %10803 = vmatprep.mubr.bf16.mxu0 %v13469_v34  ;;  %10832 = vmatpush3.bf16.msra.mxu0 %v13417_v19  ;;  %v12189_v19 = vld [vmem:[#allocation5 + $0x520] sm:$0xff]  }
 0x54b   : > { %10833 = vmatprep.subr.bf16.mxu0 %v12186_v41 }
 0x54e   : > { %10834 = vmatpush3.bf16.msra.mxu0 %v12186_v41  ;;  %v13498_v41 = vpack.c.bf16 %v6014_v0, %v6013_v13  ;;  %v6141_v0 = vld [vmem:[#allocation2 + $0x69] sm:$0xff] }
 0x54f   : > { %10835 = vmatprep.subr.bf16.mxu0 %v12187_v60  ;;  %v6143_v13 = vld [vmem:[#allocation2 + $0x89] sm:$0xff] }
 0x551   : > { %10804 = vmatmul.mubr.bf16.gmra.mrb[36].mxu0 %v13474_v37 }
 0x552   : > { %10807 = vmatprep.mubr.bf16.mxu0 %v13476_v25  ;;  %10836 = vmatpush3.bf16.msra.mxu0 %v12187_v60  ;;  %v6015_v60 = vld [vmem:[#allocation2 + $0x187] sm:$0xff] }
 0x553   : > { %10837 = vmatprep.subr.bf16.mxu0 %v12188_v31  ;;  %v13500_v8 = vpack.c.bf16 %v6016_v30, %v6015_v60  ;;  %v6142_v30 = vld [vmem:[#allocation2 + $0x71] sm:$0xff] }
 0x554   : > { %v6144_v60 = vld [vmem:[#allocation2 + $0x91] sm:$0xff] }
 0x556   : > { %10838 = vmatpush3.bf16.msra.mxu0 %v12188_v31  ;;  %v13504_v31 = vpack.c.bf16 %v6018_v9, %v6017_v2  ;;  %v13519_v9 = vpack.c.bf16 %v6142_v30, %v6141_v0  ;;  %v13521_v2 = vpack.c.bf16 %v6144_v60, %v6143_v13  ;;  %v12200_v30 = vld [vmem:[#allocation5 + $0x578] sm:$0xff]   ;;  %v12201_v60 = vld [vmem:[#allocation5 + $0x580] sm:$0xff]  }
 0x557   : > { %10839 = vmatprep.subr.bf16.mxu0 %v12189_v19 }
 0x559   : > { %10808 = vmatmul.mubr.bf16.gmra.mrb[40].mxu0 %v13480_v6 }
 0x55a   : > { %10811 = vmatprep.mubr.bf16.mxu0 %v13482_v50  ;;  %10840 = vmatpush3.bf16.msra.mxu0 %v12189_v19  ;;  %v6019_v19 = vld [vmem:[#allocation2 + $0x1c7] sm:$0xff] }
 0x55b   : > { %10841 = vmatprep.subr.bf16.mxu0 %v12190_v53  ;;  %v13506_v1 = vpack.c.bf16 %v6020_v44, %v6019_v19  ;;  %v12196_v44 = vld [vmem:[#allocation5 + $0x558] sm:$0xff]   ;;  %v6145_v19 = vld [vmem:[#allocation2 + $0xa9] sm:$0xff] }
 0x55e   : > { %10842 = vmatpush3.bf16.msra.mxu0 %v12190_v53  ;;  %v6021_v53 = vld [vmem:[#allocation2 + $0x1e7] sm:$0xff] }
 0x55f   : > { %10843 = vmatprep.subr.bf16.mxu0 %v12191_v17  ;;  %v13510_v42 = vpack.c.bf16 %v6022_v11, %v6021_v53  ;;  %v6148_v11 = vld [vmem:[#allocation2 + $0xd1] sm:$0xff] }
 0x561   : > { %10812 = vmatmul.mubr.bf16.gmra.mrb[44].mxu0 %v13486_v4 }
 0x562   : > { %10815 = vmatprep.mubr.bf16.mxu0 %v13488_v47  ;;  %10844 = vmatpush3.bf16.msra.mxu0 %v12191_v17  ;;  %v6171_v17 = vpack.c.bf16 %v6136_v29, %v6135_v28  ;;  %v6146_v28 = vld [vmem:[#allocation2 + $0xb1] sm:$0xff]  ;;  %v6147_v29 = vld [vmem:[#allocation2 + $0xc9] sm:$0xff] }
 0x563   : > { %10845 = vmatprep.subr.bf16.mxu0 %v12192_v14  ;;  %v13525_v53 = vpack.c.bf16 %v6146_v28, %v6145_v19  ;;  %v13527_v38 = vpack.c.bf16 %v6148_v11, %v6147_v29  ;;  %v6155_v19 = vld [vmem:[#allocation2 + $0x149] sm:$0xff]  ;;  %v6156_v28 = vld [vmem:[#allocation2 + $0x151] sm:$0xff] }
 0x564   : > { %v13539_v11 = vpack.c.bf16 %v6156_v28, %v6155_v19  ;;  %v6164_v19 = vld [vmem:[#allocation2 + $0x1d1] sm:$0xff] }
 0x566   : > { %10846 = vmatpush3.bf16.msra.mxu0 %v12192_v14  ;;  %v6140_v14 = vld [vmem:[#allocation2 + $0x51] sm:$0xff] }
 0x567   : > { %10879 = vmatprep.subr.bf16.mxu0 %v12193_v23  ;;  %v13515_v16 = vpack.c.bf16 %v6140_v14, %v6139_v46  ;;  %v6149_v46 = vld [vmem:[#allocation2 + $0xe9] sm:$0xff]  ;;  %v6150_v14 = vld [vmem:[#allocation2 + $0xf1] sm:$0xff] }
 0x568   : > { %v13531_v0 = vpack.c.bf16 %v6150_v14, %v6149_v46  ;;  %v6158_v46 = vld [vmem:[#allocation2 + $0x171] sm:$0xff]  ;;  %v6159_v14 = vld [vmem:[#allocation2 + $0x189] sm:$0xff] }
 0x569   : > { %10816 = vmatmul.mubr.bf16.gmra.mrb[48].mxu0 %v13492_v49 }
 0x56a   : > { %10819 = vmatprep.mubr.bf16.mxu0 %v13494_v45 }
 0x571   : > { %10820 = vmatmul.mubr.bf16.gmra.mrb[52].mxu0 %v13498_v41 }
 0x572   : > { %10823 = vmatprep.mubr.bf16.mxu0 %v13500_v8 }
 0x579   : > { %10824 = vmatmul.mubr.bf16.gmra.mrb[56].mxu0 %v13504_v31 }
 0x57a   : > { %10827 = vmatprep.mubr.bf16.mxu0 %v13506_v1 }
 0x581   : > { %10828 = vmatmul.mubr.bf16.gmra.mrb[60].mxu0 %v13510_v42 }
 0x582   : > { %10847 = vmatprep.mubr.bf16.mxu0 %v6171_v17  ;;  %v12198_v17 = vld [vmem:[#allocation5 + $0x568] sm:$0xff]  }
 0x589   : > { %10848 = vmatmul.mubr.bf16.vlgmr.msra.gmra.mrb[32].mxu0 %v13513_v56 }
 0x58a   : > { %10851 = vmatprep.mubr.bf16.mxu0 %v13515_v16  ;;  %10880 = vmatpush3.bf16.msra.mxu0 %v12193_v23  ;;  %v12197_v23 = vld [vmem:[#allocation5 + $0x560] sm:$0xff]  }
 0x58b   : > { %10881 = vmatprep.subr.bf16.mxu0 %v12194_v63 }
 0x58e   : > { %10882 = vmatpush3.bf16.msra.mxu0 %v12194_v63  ;;  %v6151_v63 = vld [vmem:[#allocation2 + $0x109] sm:$0xff] }
 0x58f   : > { %10883 = vmatprep.subr.bf16.mxu0 %v12195_v57 }
 0x591   : > { %10852 = vmatmul.mubr.bf16.gmra.mrb[36].mxu0 %v13519_v9 }
 0x592   : > { %10855 = vmatprep.mubr.bf16.mxu0 %v13521_v2  ;;  %10884 = vmatpush3.bf16.msra.mxu0 %v12195_v57  ;;  %v6152_v57 = vld [vmem:[#allocation2 + $0x111] sm:$0xff] }
 0x593   : > { %10885 = vmatprep.subr.bf16.mxu0 %v12196_v44  ;;  %v13533_v13 = vpack.c.bf16 %v6152_v57, %v6151_v63 }
 0x596   : > { %10886 = vmatpush3.bf16.msra.mxu0 %v12196_v44  ;;  %v6153_v44 = vld [vmem:[#allocation2 + $0x129] sm:$0xff] }
 0x597   : > { %10887 = vmatprep.subr.bf16.mxu0 %v12197_v23 }
 0x599   : > { %10856 = vmatmul.mubr.bf16.gmra.mrb[40].mxu0 %v13525_v53 }
 0x59a   : > { %10859 = vmatprep.mubr.bf16.mxu0 %v13527_v38  ;;  %10888 = vmatpush3.bf16.msra.mxu0 %v12197_v23  ;;  %v6154_v23 = vld [vmem:[#allocation2 + $0x131] sm:$0xff] }
 0x59b   : > { %10889 = vmatprep.subr.bf16.mxu0 %v12198_v17  ;;  %v13537_v29 = vpack.c.bf16 %v6154_v23, %v6153_v44  ;;  %v6162_v44 = vld [vmem:[#allocation2 + $0x1b1] sm:$0xff]  ;;  %v6163_v23 = vld [vmem:[#allocation2 + $0x1c9] sm:$0xff] }
 0x59c   : > { %v13551_v15 = vpack.c.bf16 %v6164_v19, %v6163_v23  ;;  %v12205_v23 = vld [vmem:[#allocation5 + $0x5a0] sm:$0xff]   ;;  %v12208_v19 = vld [vmem:[#allocation5 + $0x5b8] sm:$0xff]  }
 0x59e   : > { %10890 = vmatpush3.bf16.msra.mxu0 %v12198_v17  ;;  %v6157_v17 = vld [vmem:[#allocation2 + $0x169] sm:$0xff] }
 0x59f   : > { %10891 = vmatprep.subr.bf16.mxu0 %v12199_v7  ;;  %v13543_v63 = vpack.c.bf16 %v6158_v46, %v6157_v17  ;;  %v6165_v17 = vld [vmem:[#allocation2 + $0x1e9] sm:$0xff]  ;;  %v6166_v46 = vld [vmem:[#allocation2 + $0x1f1] sm:$0xff] }
 0x5a1   : > { %10860 = vmatmul.mubr.bf16.gmra.mrb[44].mxu0 %v13531_v0 }
 0x5a2   : > { %10863 = vmatprep.mubr.bf16.mxu0 %v13533_v13  ;;  %10892 = vmatpush3.bf16.msra.mxu0 %v12199_v7  ;;  %v6160_v7 = vld [vmem:[#allocation2 + $0x191] sm:$0xff] }
 0x5a3   : > { %10893 = vmatprep.subr.bf16.mxu0 %v12200_v30  ;;  %v13545_v57 = vpack.c.bf16 %v6160_v7, %v6159_v14  ;;  %v13555_v14 = vpack.c.bf16 %v6166_v46, %v6165_v17  ;;  %v12202_v7 = vld [vmem:[#allocation5 + $0x588] sm:$0xff]   ;;  %v12209_v17 = vld [vmem:[#allocation5 + $0x5c0] sm:$0xff]  }
 0x5a4   : > { %v6024_v46 = vld [vmem:[#allocation2 + $0x20f] sm:$0xff] }
 0x5a6   : > { %10894 = vmatpush3.bf16.msra.mxu0 %v12200_v30  ;;  %v6161_v30 = vld [vmem:[#allocation2 + $0x1a9] sm:$0xff] }
 0x5a7   : > { %10927 = vmatprep.subr.bf16.mxu0 %v12201_v60  ;;  %v13549_v28 = vpack.c.bf16 %v6162_v44, %v6161_v30  ;;  %v12203_v30 = vld [vmem:[#allocation5 + $0x590] sm:$0xff]   ;;  %v12204_v44 = vld [vmem:[#allocation5 + $0x598] sm:$0xff]  }
 0x5a9   : > { %10864 = vmatmul.mubr.bf16.gmra.mrb[48].mxu0 %v13537_v29 }
 0x5aa   : > { %10867 = vmatprep.mubr.bf16.mxu0 %v13539_v11 }
 0x5b1   : > { %10868 = vmatmul.mubr.bf16.gmra.mrb[52].mxu0 %v13543_v63 }
 0x5b2   : > { %10871 = vmatprep.mubr.bf16.mxu0 %v13545_v57 }
 0x5b9   : > { %10872 = vmatmul.mubr.bf16.gmra.mrb[56].mxu0 %v13549_v28 }
 0x5ba   : > { %10875 = vmatprep.mubr.bf16.mxu0 %v13551_v15 }
 0x5c1   : > { %10876 = vmatmul.mubr.bf16.gmra.mrb[60].mxu0 %v13555_v14 }
 0x5c2   : > { %10895 = vmatprep.mubr.bf16.mxu0 %v13467_v55  ;;  %v12206_v55 = vld [vmem:[#allocation5 + $0x5a8] sm:$0xff]  }
 0x5c9   : > { %10896 = vmatmul.mubr.bf16.vlgmr.msra.gmra.mrb[32].mxu0 %v13469_v34 }
 0x5ca   : > { %10899 = vmatprep.mubr.bf16.mxu0 %v13474_v37  ;;  %10928 = vmatpush3.bf16.msra.mxu0 %v12201_v60  ;;  %v12207_v60 = vld [vmem:[#allocation5 + $0x5b0] sm:$0xff]  }
 0x5cb   : > { %10929 = vmatprep.subr.bf16.mxu0 %v12202_v7 }
 0x5ce   : > { %10930 = vmatpush3.bf16.msra.mxu0 %v12202_v7  ;;  %v6023_v7 = vld [vmem:[#allocation2 + $0x207] sm:$0xff] }
 0x5cf   : > { %10931 = vmatprep.subr.bf16.mxu0 %v12203_v30 }
 0x5d1   : > { %10900 = vmatmul.mubr.bf16.gmra.mrb[36].mxu0 %v13476_v25 }
 0x5d2   : > { %10903 = vmatprep.mubr.bf16.mxu0 %v13480_v6  ;;  %10932 = vmatpush3.bf16.msra.mxu0 %v12203_v30  ;;  %v13573_v30 = vpack.c.bf16 %v6024_v46, %v6023_v7  ;;  %v12217_v46 = vld [vmem:[#allocation5 + $0x600] sm:$0xff]   ;;  %v12218_v7 = vld [vmem:[#allocation5 + $0x608] sm:$0xff]  }
 0x5d3   : > { %10933 = vmatprep.subr.bf16.mxu0 %v12204_v44 }
 0x5d6   : > { %10934 = vmatpush3.bf16.msra.mxu0 %v12204_v44  ;;  %v12210_v44 = vld [vmem:[#allocation5 + $0x5c8] sm:$0xff]  }
 0x5d7   : > { %10935 = vmatprep.subr.bf16.mxu0 %v12205_v23 }
 0x5d9   : > { %10904 = vmatmul.mubr.bf16.gmra.mrb[40].mxu0 %v13482_v50 }
 0x5da   : > { %10907 = vmatprep.mubr.bf16.mxu0 %v13486_v4  ;;  %10936 = vmatpush3.bf16.msra.mxu0 %v12205_v23  ;;  %v12211_v23 = vld [vmem:[#allocation5 + $0x5d0] sm:$0xff]  }
 0x5db   : > { %10937 = vmatprep.subr.bf16.mxu0 %v12206_v55 }
 0x5de   : > { %10938 = vmatpush3.bf16.msra.mxu0 %v12206_v55  ;;  %v12212_v55 = vld [vmem:[#allocation5 + $0x5d8] sm:$0xff]  }
 0x5df   : > { %10939 = vmatprep.subr.bf16.mxu0 %v12207_v60 }
 0x5e1   : > { %10908 = vmatmul.mubr.bf16.gmra.mrb[44].mxu0 %v13488_v47 }
 0x5e2   : > { %10911 = vmatprep.mubr.bf16.mxu0 %v13492_v49  ;;  %10940 = vmatpush3.bf16.msra.mxu0 %v12207_v60  ;;  %v12213_v60 = vld [vmem:[#allocation5 + $0x5e0] sm:$0xff]  }
 0x5e3   : > { %10941 = vmatprep.subr.bf16.mxu0 %v12208_v19 }
 0x5e6   : > { %10942 = vmatpush3.bf16.msra.mxu0 %v12208_v19  ;;  %v12215_v19 = vld [vmem:[#allocation5 + $0x5f0] sm:$0xff]  }
 0x5e7   : > { %10975 = vmatprep.subr.bf16.mxu0 %v12209_v17 }
 0x5e9   : > { %10912 = vmatmul.mubr.bf16.gmra.mrb[48].mxu0 %v13494_v45 }
 0x5ea   : > { %10915 = vmatprep.mubr.bf16.mxu0 %v13498_v41 }
 0x5f1   : > { %10916 = vmatmul.mubr.bf16.gmra.mrb[52].mxu0 %v13500_v8 }
 0x5f2   : > { %10919 = vmatprep.mubr.bf16.mxu0 %v13504_v31 }
 0x5f9   : > { %10920 = vmatmul.mubr.bf16.gmra.mrb[56].mxu0 %v13506_v1 }
 0x5fa   : > { %10923 = vmatprep.mubr.bf16.mxu0 %v13510_v42 }
 0x601   : > { %10924 = vmatmul.mubr.bf16.gmra.mrb[60].mxu0 %v13573_v30 }
 0x602   : > { %10943 = vmatprep.mubr.bf16.mxu0 %v13365_v22  ;;  %v12214_v22 = vld [vmem:[#allocation5 + $0x5e8] sm:$0xff]  }
 0x609   : > { %10944 = vmatmul.mubr.bf16.vlgmr.msra.gmra.mrb[32].mxu0 %v13362_v62 }
 0x60a   : > { %10947 = vmatprep.mubr.bf16.mxu0 %v13379_v51  ;;  %10976 = vmatpush3.bf16.msra.mxu0 %v12209_v17  ;;  %v12216_v17 = vld [vmem:[#allocation5 + $0x5f8] sm:$0xff]  }
 0x60b   : > { %10977 = vmatprep.subr.bf16.mxu0 %v12210_v44 }
 0x60e   : > { %10978 = vmatpush3.bf16.msra.mxu0 %v12210_v44  ;;  %v12219_v44 = vld [vmem:[#allocation5 + $0x610] sm:$0xff]  }
 0x60f   : > { %10979 = vmatprep.subr.bf16.mxu0 %v12211_v23 }
 0x611   : > { %10948 = vmatmul.mubr.bf16.gmra.mrb[36].mxu0 %v13376_v36 }
 0x612   : > { %10951 = vmatprep.mubr.bf16.mxu0 %v13393_v39  ;;  %10980 = vmatpush3.bf16.msra.mxu0 %v12211_v23  ;;  %v12220_v23 = vld [vmem:[#allocation5 + $0x618] sm:$0xff]  }
 0x613   : > { %10981 = vmatprep.subr.bf16.mxu0 %v12212_v55 }
 0x616   : > { %10982 = vmatpush3.bf16.msra.mxu0 %v12212_v55  ;;  %v12221_v55 = vld [vmem:[#allocation5 + $0x620] sm:$0xff]  }
 0x617   : > { %10983 = vmatprep.subr.bf16.mxu0 %v12213_v60 }
 0x619   : > { %10952 = vmatmul.mubr.bf16.gmra.mrb[40].mxu0 %v13390_v33 }
 0x61a   : > { %10955 = vmatprep.mubr.bf16.mxu0 %v13407_v27  ;;  %10984 = vmatpush3.bf16.msra.mxu0 %v12213_v60  ;;  %v12223_v60 = vld [vmem:[#allocation5 + $0x630] sm:$0xff]  }
 0x61b   : > { %10985 = vmatprep.subr.bf16.mxu0 %v12214_v22 }
 0x61e   : > { %10986 = vmatpush3.bf16.msra.mxu0 %v12214_v22  ;;  %v12224_v22 = vld [vmem:[#allocation5 + $0x638] sm:$0xff]  }
 0x61f   : > { %10987 = vmatprep.subr.bf16.mxu0 %v12215_v19 }
 0x621   : > { %10956 = vmatmul.mubr.bf16.gmra.mrb[44].mxu0 %v13404_v35 }
 0x622   : > { %10959 = vmatprep.mubr.bf16.mxu0 %v13423_v48  ;;  %10988 = vmatpush3.bf16.msra.mxu0 %v12215_v19  ;;  %v12225_v19 = vld [vmem:[#allocation5 + $0x640] sm:$0xff]  }
 0x623   : > { %10989 = vmatprep.subr.bf16.mxu0 %v12216_v17 }
 0x626   : > { %10990 = vmatpush3.bf16.msra.mxu0 %v12216_v17  ;;  %v6167_v17 = vld [vmem:[#allocation2 + $0x209] sm:$0xff] }
 0x627   : > { %11023 = vmatprep.subr.bf16.mxu0 %v12217_v46 }
 0x629   : > { %10960 = vmatmul.mubr.bf16.gmra.mrb[48].mxu0 %v13420_v21 }
 0x62a   : > { %10963 = vmatprep.mubr.bf16.mxu0 %v13438_v12 }
 0x631   : > { %10964 = vmatmul.mubr.bf16.gmra.mrb[52].mxu0 %v13435_v3 }
 0x632   : > { %10967 = vmatprep.mubr.bf16.mxu0 %v13452_v32 }
 0x639   : > { %10968 = vmatmul.mubr.bf16.gmra.mrb[56].mxu0 %v13449_v18 }
 0x63a   : > { %10971 = vmatprep.mubr.bf16.mxu0 %v13464_v52 }
 0x641   : > { %10972 = vmatmul.mubr.bf16.gmra.mrb[60].mxu0 %v13462_v24 }
 0x642   : > { %10991 = vmatprep.mubr.bf16.mxu0 %v13513_v56  ;;  %v12222_v56 = vld [vmem:[#allocation5 + $0x628] sm:$0xff]  }
 0x649   : > { %10992 = vmatmul.mubr.bf16.vlgmr.msra.gmra.mrb[32].mxu0 %v13515_v16 }
 0x64a   : > { %10995 = vmatprep.mubr.bf16.mxu0 %v13519_v9  ;;  %11024 = vmatpush3.bf16.msra.mxu0 %v12217_v46  ;;  %v6168_v46 = vld [vmem:[#allocation2 + $0x211] sm:$0xff] }
 0x64b   : > { %11025 = vmatprep.subr.bf16.mxu0 %v12218_v7 }
 0x64e   : > { %11026 = vmatpush3.bf16.msra.mxu0 %v12218_v7  ;;  %v13607_v7 = vpack.c.bf16 %v6168_v46, %v6167_v17 }
 0x64f   : > { %11027 = vmatprep.subr.bf16.mxu0 %v12219_v44 }
 0x651   : > { %10996 = vmatmul.mubr.bf16.gmra.mrb[36].mxu0 %v13521_v2 }
 0x652   : > { %10999 = vmatprep.mubr.bf16.mxu0 %v13525_v53  ;;  %11028 = vmatpush3.bf16.msra.mxu0 %v12219_v44  ;;  %v12226_v44 = vld [vmem:[#allocation5 + $0x648] sm:$0xff]  }
 0x653   : > { %11029 = vmatprep.subr.bf16.mxu0 %v12220_v23 }
 0x656   : > { %11030 = vmatpush3.bf16.msra.mxu0 %v12220_v23  ;;  %v12227_v23 = vld [vmem:[#allocation5 + $0x650] sm:$0xff]  }
 0x657   : > { %11031 = vmatprep.subr.bf16.mxu0 %v12221_v55 }
 0x659   : > { %11000 = vmatmul.mubr.bf16.gmra.mrb[40].mxu0 %v13527_v38 }
 0x65a   : > { %11003 = vmatprep.mubr.bf16.mxu0 %v13531_v0  ;;  %11032 = vmatpush3.bf16.msra.mxu0 %v12221_v55  ;;  %v12228_v55 = vld [vmem:[#allocation5 + $0x658] sm:$0xff]  }
 0x65b   : > { %11033 = vmatprep.subr.bf16.mxu0 %v12222_v56 }
 0x65e   : > { %11034 = vmatpush3.bf16.msra.mxu0 %v12222_v56  ;;  %v12229_v56 = vld [vmem:[#allocation5 + $0x660] sm:$0xff]  }
 0x65f   : > { %11035 = vmatprep.subr.bf16.mxu0 %v12223_v60 }
 0x661   : > { %11004 = vmatmul.mubr.bf16.gmra.mrb[44].mxu0 %v13533_v13 }
 0x662   : > { %11007 = vmatprep.mubr.bf16.mxu0 %v13537_v29  ;;  %11036 = vmatpush3.bf16.msra.mxu0 %v12223_v60 }
 0x663   : > { %11037 = vmatprep.subr.bf16.mxu0 %v12224_v22 }
 0x666   : > { %11038 = vmatpush3.bf16.msra.mxu0 %v12224_v22 }
 0x667   : > { %11071 = vmatprep.subr.bf16.mxu0 %v12225_v19 }
 0x669   : > { %11008 = vmatmul.mubr.bf16.gmra.mrb[48].mxu0 %v13539_v11 }
 0x66a   : > { %11011 = vmatprep.mubr.bf16.mxu0 %v13543_v63 }
 0x671   : > { %11012 = vmatmul.mubr.bf16.gmra.mrb[52].mxu0 %v13545_v57 }
 0x672   : > { %11015 = vmatprep.mubr.bf16.mxu0 %v13549_v28 }
 0x679   : > { %11016 = vmatmul.mubr.bf16.gmra.mrb[56].mxu0 %v13551_v15 }
 0x67a   : > { %11019 = vmatprep.mubr.bf16.mxu0 %v13555_v14 }
 0x681   : > { %11020 = vmatmul.mubr.bf16.gmra.mrb[60].mxu0 %v13607_v7 }
 0x682   : > { %11039 = vmatprep.mubr.bf16.mxu0 %v13469_v34  ;;  %v12230_v34 = vld [vmem:[#allocation5 + $0x668] sm:$0xff]  }
 0x689   : > { %11040 = vmatmul.mubr.bf16.vlgmr.msra.gmra.mrb[32].mxu0 %v13474_v37  ;;  %v12231_v37 = vld [vmem:[#allocation5 + $0x670] sm:$0xff]  }
 0x68a   : > { %11043 = vmatprep.mubr.bf16.mxu0 %v13476_v25  ;;  %11072 = vmatpush3.bf16.msra.mxu0 %v12225_v19  ;;  %v12232_v25 = vld [vmem:[#allocation5 + $0x678] sm:$0xff]  }
 0x68b   : > { %11073 = vmatprep.subr.bf16.mxu0 %v12226_v44 }
 0x68e   : > { %11074 = vmatpush3.bf16.msra.mxu0 %v12226_v44 }
 0x68f   : > { %11075 = vmatprep.subr.bf16.mxu0 %v12227_v23 }
 0x691   : > { %11044 = vmatmul.mubr.bf16.gmra.mrb[36].mxu0 %v13480_v6  ;;  %v12233_v6 = vld [vmem:[#allocation5 + $0x680] sm:$0xff]  }
 0x692   : > { %11047 = vmatprep.mubr.bf16.mxu0 %v13482_v50  ;;  %11076 = vmatpush3.bf16.msra.mxu0 %v12227_v23  ;;  %v6025_v50 = vld [vmem:[#allocation2 + $0x227] sm:$0xff] }
 0x693   : > { %11077 = vmatprep.subr.bf16.mxu0 %v12228_v55 }
 0x696   : > { %11078 = vmatpush3.bf16.msra.mxu0 %v12228_v55 }
 0x697   : > { %11079 = vmatprep.subr.bf16.mxu0 %v12229_v56 }
 0x699   : > { %11048 = vmatmul.mubr.bf16.gmra.mrb[40].mxu0 %v13486_v4  ;;  %v6026_v4 = vld [vmem:[#allocation2 + $0x22f] sm:$0xff] }
 0x69a   : > { %11051 = vmatprep.mubr.bf16.mxu0 %v13488_v47  ;;  %11080 = vmatpush3.bf16.msra.mxu0 %v12229_v56  ;;  %v6044_v47 = vpack.c.bf16 %v6026_v4, %v6025_v50 }
 0x69b   : > { %11081 = vmatprep.subr.bf16.mxu0 %v12230_v34 }
 0x69e   : > { %11082 = vmatpush3.bf16.msra.mxu0 %v12230_v34 }
 0x69f   : > { %11083 = vmatprep.subr.bf16.mxu0 %v12231_v37 }
 0x6a1   : > { %11052 = vmatmul.mubr.bf16.gmra.mrb[44].mxu0 %v13492_v49  ;;  %v12234_v49 = vld [vmem:[#allocation5 + $0x688] sm:$0xff]  }
 0x6a2   : > { %11055 = vmatprep.mubr.bf16.mxu0 %v13494_v45  ;;  %11084 = vmatpush3.bf16.msra.mxu0 %v12231_v37  ;;  %v12235_v45 = vld [vmem:[#allocation5 + $0x690] sm:$0xff]  }
 0x6a3   : > { %11085 = vmatprep.subr.bf16.mxu0 %v12232_v25 }
 0x6a6   : > { %11086 = vmatpush3.bf16.msra.mxu0 %v12232_v25 }
 0x6a7   : > { %11119 = vmatprep.subr.bf16.mxu0 %v12233_v6 }
 0x6a9   : > { %11056 = vmatmul.mubr.bf16.gmra.mrb[48].mxu0 %v13498_v41  ;;  %v12236_v41 = vld [vmem:[#allocation5 + $0x698] sm:$0xff]  }
 0x6aa   : > { %11059 = vmatprep.mubr.bf16.mxu0 %v13500_v8  ;;  %v12237_v8 = vld [vmem:[#allocation5 + $0x6a0] sm:$0xff]  }
 0x6b1   : > { %11060 = vmatmul.mubr.bf16.gmra.mrb[52].mxu0 %v13504_v31  ;;  %v13682_v31 = vld [vmem:[%s13837_s2 + $0x2] ss:$0 sm:$0xff] }
 0x6b2   : > { %11063 = vmatprep.mubr.bf16.mxu0 %v13506_v1 }
 0x6b9   : > { %11064 = vmatmul.mubr.bf16.gmra.mrb[56].mxu0 %v13510_v42  ;;  %v13687_v42 = vld [vmem:[%s13838_s3 + $0x2] ss:$0 sm:$0xff] }
 0x6ba   : > { %11067 = vmatprep.mubr.bf16.mxu0 %v13573_v30 }
 0x6c1   : > { %11068 = vmatmul.mubr.bf16.gmra.mrb[60].mxu0 %v6044_v47 }
 0x6c2   : > { %11087 = vmatprep.mubr.bf16.mxu0 %v13362_v62  ;;  %v12238_v62 = vld [vmem:[#allocation5 + $0x6a8] sm:$0xff]  }
 0x6c9   : > { %11088 = vmatmul.mubr.bf16.vlgmr.msra.gmra.mrb[32].mxu0 %v13379_v51  ;;  %v12240_v51 = vld [vmem:[#allocation5 + $0x6b8] sm:$0xff]  }
 0x6ca   : > { %11091 = vmatprep.mubr.bf16.mxu0 %v13376_v36  ;;  %11120 = vmatpush3.bf16.msra.mxu0 %v12233_v6  ;;  %v12239_v36 = vld [vmem:[#allocation5 + $0x6b0] sm:$0xff]  }
 0x6cb   : > { %11121 = vmatprep.subr.bf16.mxu0 %v12234_v49 }
 0x6ce   : > { %11122 = vmatpush3.bf16.msra.mxu0 %v12234_v49 }
 0x6cf   : > { %11123 = vmatprep.subr.bf16.mxu0 %v12235_v45 }
 0x6d1   : > { %11092 = vmatmul.mubr.bf16.gmra.mrb[36].mxu0 %v13393_v39 }
 0x6d2   : > { %11095 = vmatprep.mubr.bf16.mxu0 %v13390_v33  ;;  %11124 = vmatpush3.bf16.msra.mxu0 %v12235_v45  ;;  %v12259_v33 = vld [vmem:[#allocation2 + $0x8] sm:$0xff] }
 0x6d3   : > { %11125 = vmatprep.subr.bf16.mxu0 %v12236_v41  ;;  %v6116_v39 = vpack.c.bf16 %v12259_v33, %v12259_v33  ;;  %11183 = vmatprep.mubr.msk.bf16.mxu1 %vm12361_vm1, %v12259_v33 }
 0x6d6   : > { %11126 = vmatpush3.bf16.msra.mxu0 %v12236_v41 }
 0x6d7   : > { %11127 = vmatprep.subr.bf16.mxu0 %v12237_v8 }
 0x6d9   : > { %11096 = vmatmul.mubr.bf16.gmra.mrb[40].mxu0 %v13407_v27  ;;  %v6170_v27 = vld [vmem:[#allocation2 + $0x231] sm:$0xff] }
 0x6da   : > { %11099 = vmatprep.mubr.bf16.mxu0 %v13404_v35  ;;  %11128 = vmatpush3.bf16.msra.mxu0 %v12237_v8  ;;  %v6169_v35 = vld [vmem:[#allocation2 + $0x229] sm:$0xff] }
 0x6db   : > { %11129 = vmatprep.subr.bf16.mxu0 %v12238_v62 }
 0x6de   : > { %11130 = vmatpush3.bf16.msra.mxu0 %v12238_v62 }
 0x6df   : > { %11131 = vmatprep.subr.bf16.mxu0 %v12239_v36 }
 0x6e1   : > { %11100 = vmatmul.mubr.bf16.gmra.mrb[44].mxu0 %v13423_v48  ;;  %v12241_v48 = vld [vmem:[%s13839_s4] sm:$0xff]  }
 0x6e2   : > { %11103 = vmatprep.mubr.bf16.mxu0 %v13420_v21  ;;  %11132 = vmatpush3.bf16.msra.mxu0 %v12239_v36  ;;  %v6188_v21 = vpack.c.bf16 %v6170_v27, %v6169_v35 }
 0x6e3   : > { %11133 = vmatprep.subr.bf16.mxu0 %v12240_v51  ;;  %11168 = vmatpush3.bf16.msra.mxu1 %v12241_v48 }
 0x6e4   : > { %11169 = vmatprep.subr.bf16.mxu1 %v12259_v33 }
 0x6e6   : > { %11134 = vmatpush3.bf16.msra.mxu0 %v12240_v51 }
 0x6e9   : > { %11104 = vmatmul.mubr.bf16.gmra.mrb[48].mxu0 %v13438_v12  ;;  %v12244_v12 = vld [vmem:[%s13839_s4 + $0x18] sm:$0xff]  }
 0x6ea   : > { %11107 = vmatprep.mubr.bf16.mxu0 %v13435_v3  ;;  %v12242_v3 = vld [vmem:[%s13839_s4 + $0x8] sm:$0xff]  }
 0x6eb   : > { %11170 = vmatpush3.bf16.msra.mxu1 %v12242_v3 }
 0x6ec   : > { %11171 = vmatprep.subr.bf16.mxu1 %v12259_v33 }
 0x6f1   : > { %11108 = vmatmul.mubr.bf16.gmra.mrb[52].mxu0 %v13452_v32  ;;  %v12246_v32 = vld [vmem:[%s13839_s4 + $0x28] sm:$0xff]  }
 0x6f2   : > { %11111 = vmatprep.mubr.bf16.mxu0 %v13449_v18  ;;  %v12245_v18 = vld [vmem:[%s13839_s4 + $0x20] sm:$0xff]  }
 0x6f9   : > { %11112 = vmatmul.mubr.bf16.gmra.mrb[56].mxu0 %v13464_v52  ;;  %v12248_v52 = vld [vmem:[%s13839_s4 + $0x38] sm:$0xff]  }
 0x6fa   : > { %11115 = vmatprep.mubr.bf16.mxu0 %v13462_v24  ;;  %v12247_v24 = vld [vmem:[%s13839_s4 + $0x30] sm:$0xff]  }
 0x701   : > { %11116 = vmatmul.mubr.bf16.gmra.mrb[60].mxu0 %v6116_v39 }
 0x702   : > { %11135 = vmatprep.mubr.bf16.mxu0 %v13515_v16 }
 0x709   : > { %11136 = vmatmul.mubr.bf16.vlgmr.msra.gmra.mrb[32].mxu0 %v13519_v9 }
 0x70a   : > { %11139 = vmatprep.mubr.bf16.mxu0 %v13521_v2 }
 0x711   : > { %11140 = vmatmul.mubr.bf16.gmra.mrb[36].mxu0 %v13525_v53 }
 0x712   : > { %11143 = vmatprep.mubr.bf16.mxu0 %v13527_v38 }
 0x719   : > { %11144 = vmatmul.mubr.bf16.gmra.mrb[40].mxu0 %v13531_v0 }
 0x71a   : > { %11147 = vmatprep.mubr.bf16.mxu0 %v13533_v13 }
 0x721   : > { %11148 = vmatmul.mubr.bf16.gmra.mrb[44].mxu0 %v13537_v29 }
 0x722   : > { %11151 = vmatprep.mubr.bf16.mxu0 %v13539_v11 }
 0x729   : > { %11152 = vmatmul.mubr.bf16.gmra.mrb[48].mxu0 %v13543_v63 }
 0x72a   : > { %11155 = vmatprep.mubr.bf16.mxu0 %v13545_v57 }
 0x731   : > { %11156 = vmatmul.mubr.bf16.gmra.mrb[52].mxu0 %v13549_v28 }
 0x732   : > { %11159 = vmatprep.mubr.bf16.mxu0 %v13551_v15  ;;  %v12243_v15 = vld [vmem:[%s13839_s4 + $0x10] sm:$0xff]  }
 0x733   : > { %11172 = vmatpush3.bf16.msra.mxu1 %v12243_v15 }
 0x734   : > { %11173 = vmatprep.subr.bf16.mxu1 %v12259_v33 }
 0x737   : > { %11174 = vmatpush3.bf16.msra.mxu1 %v12244_v12 }
 0x738   : > { %11175 = vmatprep.subr.bf16.mxu1 %v12259_v33 }
 0x739   : > { %11160 = vmatmul.mubr.bf16.gmra.mrb[56].mxu0 %v13555_v14 }
 0x73a   : > { %11163 = vmatprep.mubr.bf16.mxu0 %v13607_v7 }
 0x73b   : > { %11176 = vmatpush3.bf16.msra.mxu1 %v12245_v18 }
 0x73c   : > { %11177 = vmatprep.subr.bf16.mxu1 %v12259_v33 }
 0x73f   : > { %11178 = vmatpush3.bf16.msra.mxu1 %v12246_v32 }
 0x740   : > { %11179 = vmatprep.subr.bf16.mxu1 %v12259_v33 }
 0x741   : > { %11164 = vmatmul.mubr.bf16.gmra.mrb[60].mxu0 %v6188_v21 }
 0x743   : > { %11180 = vmatpush3.bf16.msra.mxu1 %v12247_v24 }
 0x744   : > { %11181 = vmatprep.subr.bf16.mxu1 %v12259_v33 }
 0x747   : > { %11182 = vmatpush3.bf16.msra.mxu1 %v12248_v52  ;;  %v13896_v52 = vld [vmem:[#allocation11_spill] sm:$0xff] }
 0x7dc   : > { %v11137_v1 = vpop.f32.mrb[32].mxu0 }
 0x7dd   : > { %v8616_v16 = vmul.f32 %v11137_v1, %v13682_v31  ;;  %v8450_v9 = vpop.f32.mrb[33].mxu0 }
 0x7de   : > { %v8614_v2 = vmul.f32 %v13682_v31, %v8450_v9  ;;  %v11138_v53 = vpop.f32.mrb[34].mxu0 }
 0x7df   : > { %v8653_v38 = vadd.f32 %v13687_v42, %v8616_v16  ;;  %v8617_v0 = vmul.f32 %v11138_v53, %v13682_v31  ;;  %v8453_v13 = vpop.f32.mrb[35].mxu0 }
 0x7e0   : > { %v8651_v29 = vadd.f32 %v13687_v42, %v8614_v2  ;;  %v8615_v11 = vmul.f32 %v13682_v31, %v8453_v13  ;;  %v13897_v2 = vld [vmem:[#allocation13_spill] sm:$0xff] }
 0x7e1   : > { %v8654_v63 = vadd.f32 %v13687_v42, %v8617_v0  ;;  %v8685_v14 = vadd.f32 %v8653_v38, %v12901_v59  ;;  %v13898_v0 = vld [vmem:[#allocation12_spill] sm:$0xff] }
 0x7e2   : > { %v8683_v57 = vadd.f32 %v8651_v29, %v12904_v61  ;;  %v8652_v28 = vadd.f32 %v13687_v42, %v8615_v11 }
 0x7e3   : > { %v8686_v22 = vadd.f32 %v8654_v63, %v12908_v43  ;;  %v8717_v55 = vmax.f32 %v8685_v14, 0.0 }
 0x7e4   : > { %v8684_v30 = vadd.f32 %v8652_v28, %v12911_v5  ;;  %v11141_v60 = vpop.f32.mrb[36].mxu0  ;;  %v8715_v46 = vmax.f32 %v8683_v57, 0.0 }
 0x7e5   : > { %v8620_v19 = vmul.f32 %v11141_v60, %v13682_v31  ;;  %v8466_v17 = vpop.f32.mrb[37].mxu0  ;;  %v8718_v43 = vmax.f32 %v8686_v22, 0.0 }
 0x7e6   : > { %v8716_v7 = vmax.f32 %v8684_v30, 0.0  ;;  %v8618_v44 = vmul.f32 %v13682_v31, %v8466_v17  ;;  %v11142_v23 = vpop.f32.mrb[38].mxu0 }
 0x7e7   : > { %v8621_v61 = vmul.f32 %v11142_v23, %v13682_v31  ;;  %v8469_v56 = vpop.f32.mrb[39].mxu0  ;;  %v8657_v59 = vadd.f32 %v13687_v42, %v8620_v19  ;;  %v13899_v23 = vld [vmem:[#allocation15_spill] sm:$0xff] }
 0x7e8   : > { %v8747_v34 = vadd.f32 %v8716_v7, %v8715_v46  ;;  %v8655_v5 = vadd.f32 %v13687_v42, %v8618_v44  ;;  %v8619_v37 = vmul.f32 %v13682_v31, %v8469_v56 }
 0x7e9   : > { %v8658_v50 = vadd.f32 %v13687_v42, %v8621_v61  ;;  %v8689_v47 = vadd.f32 %v8657_v59, %v12930_v40 }
 0x7ea   : > { %v8748_v25 = vadd.f32 %v8747_v34, %v8717_v55  ;;  %v8687_v6 = vadd.f32 %v8655_v5, %v12935_v54  ;;  %v8656_v4 = vadd.f32 %v13687_v42, %v8619_v37  ;;  %v13900_v34 = vld [vmem:[#allocation14_spill] sm:$0xff] }
 0x7eb   : > { %v8690_v33 = vadd.f32 %v8658_v50, %v12939_v10  ;;  %v8721_v48 = vmax.f32 %v8689_v47, 0.0 }
 0x7ec   : > { %v8719_v49 = vmax.f32 %v8687_v6, 0.0  ;;  %v8749_v45 = vadd.f32 %v8748_v25, %v8718_v43  ;;  %v8688_v41 = vadd.f32 %v8656_v4, %v12943_v26  ;;  %v11145_v8 = vpop.f32.mrb[40].mxu0  ;;  %v13901_v43 = vld [vmem:[#allocation17_spill] sm:$0xff] }
 0x7ed   : > { %v8624_v62 = vmul.f32 %v11145_v8, %v13682_v31  ;;  %v8482_v36 = vpop.f32.mrb[41].mxu0  ;;  %v8722_v18 = vmax.f32 %v8690_v33, 0.0 }
 0x7ee   : > { %v8750_v51 = vadd.f32 %v8749_v45, %v8719_v49  ;;  %v8720_v39 = vmax.f32 %v8688_v41, 0.0  ;;  %v8622_v54 = vmul.f32 %v13682_v31, %v8482_v36  ;;  %v11146_v35 = vpop.f32.mrb[42].mxu0  ;;  %v13902_v49 = vld [vmem:[#allocation16_spill] sm:$0xff] }
 0x7ef   : > { %v8661_v27 = vadd.f32 %v13687_v42, %v8624_v62  ;;  %v8625_v21 = vmul.f32 %v11146_v35, %v13682_v31  ;;  %v8485_v40 = vpop.f32.mrb[43].mxu0 }
 0x7f0   : > { %v8751_v3 = vadd.f32 %v8750_v51, %v8720_v39  ;;  %v8659_v26 = vadd.f32 %v13687_v42, %v8622_v54  ;;  %v8623_v15 = vmul.f32 %v13682_v31, %v8485_v40 }
 0x7f1   : > { %v8662_v12 = vadd.f32 %v13687_v42, %v8625_v21  ;;  %v8693_v1 = vadd.f32 %v8661_v27, %v13896_v52 }
 0x7f2   : > { %v8752_v32 = vadd.f32 %v8751_v3, %v8721_v48  ;;  %v8691_v10 = vadd.f32 %v8659_v26, %v12969_v20  ;;  %v8660_v24 = vadd.f32 %v13687_v42, %v8623_v15  ;;  %v13903_v3 = vld [vmem:[#allocation19_spill] sm:$0xff] }
 0x7f3   : > { %v8694_v13 = vadd.f32 %v8662_v12, %v13898_v0  ;;  %v8725_v20 = vmax.f32 %v8693_v1, 0.0  ;;  %v13904_v12 = vld [vmem:[#allocation18_spill] sm:$0xff] }
 0x7f4   : > { %v8723_v16 = vmax.f32 %v8691_v10, 0.0  ;;  %v8753_v9 = vadd.f32 %v8752_v32, %v8722_v18  ;;  %v8692_v53 = vadd.f32 %v8660_v24, %v13897_v2  ;;  %v11149_v38 = vpop.f32.mrb[44].mxu0  ;;  %v13905_v24 = vld [vmem:[#allocation21_spill] sm:$0xff] }
 0x7f5   : > { %v8628_v29 = vmul.f32 %v11149_v38, %v13682_v31  ;;  %v8498_v11 = vpop.f32.mrb[45].mxu0  ;;  %v8726_v7 = vmax.f32 %v8694_v13, 0.0 }
 0x7f6   : > { %v8754_v63 = vadd.f32 %v8753_v9, %v8723_v16  ;;  %v8724_v57 = vmax.f32 %v8692_v53, 0.0  ;;  %v8626_v28 = vmul.f32 %v13682_v31, %v8498_v11  ;;  %v11150_v14 = vpop.f32.mrb[46].mxu0  ;;  %v13906_v16 = vld [vmem:[#allocation20_spill] sm:$0xff] }
 0x7f7   : > { %v8629_v30 = vmul.f32 %v11150_v14, %v13682_v31  ;;  %v8501_v60 = vpop.f32.mrb[47].mxu0  ;;  %v8665_v19 = vadd.f32 %v13687_v42, %v8628_v29 }
 0x7f8   : > { %v8755_v22 = vadd.f32 %v8754_v63, %v8724_v57  ;;  %v8663_v17 = vadd.f32 %v13687_v42, %v8626_v28  ;;  %v8627_v46 = vmul.f32 %v13682_v31, %v8501_v60 }
 0x7f9   : > { %v8666_v61 = vadd.f32 %v13687_v42, %v8629_v30  ;;  %v8697_v59 = vadd.f32 %v8665_v19, %v13900_v34  ;;  %v13907_v19 = vld [vmem:[#allocation23_spill] sm:$0xff] }
 0x7fa   : > { %v8756_v44 = vadd.f32 %v8755_v22, %v8725_v20  ;;  %v8695_v55 = vadd.f32 %v8663_v17, %v13899_v23  ;;  %v8664_v56 = vadd.f32 %v13687_v42, %v8627_v46 }
 0x7fb   : > { %v8698_v45 = vadd.f32 %v8666_v61, %v13902_v49  ;;  %v8729_v39 = vmax.f32 %v8697_v59, 0.0 }
 0x7fc   : > { %v8727_v5 = vmax.f32 %v8695_v55, 0.0  ;;  %v8757_v37 = vadd.f32 %v8756_v44, %v8726_v7  ;;  %v8696_v25 = vadd.f32 %v8664_v56, %v13901_v43  ;;  %v11153_v6 = vpop.f32.mrb[48].mxu0  ;;  %v13908_v44 = vld [vmem:[#allocation22_spill] sm:$0xff]  ;;  %v13909_v56 = vld [vmem:[#allocation25_spill] sm:$0xff] }
 0x7fd   : > { %v8632_v50 = vmul.f32 %v11153_v6, %v13682_v31  ;;  %v8514_v4 = vpop.f32.mrb[49].mxu0  ;;  %v8730_v40 = vmax.f32 %v8698_v45, 0.0 }
 0x7fe   : > { %v8758_v47 = vadd.f32 %v8757_v37, %v8727_v5  ;;  %v8728_v41 = vmax.f32 %v8696_v25, 0.0  ;;  %v8630_v8 = vmul.f32 %v13682_v31, %v8514_v4  ;;  %v11154_v62 = vpop.f32.mrb[50].mxu0  ;;  %v13910_v25 = vld [vmem:[#allocation24_spill] sm:$0xff] }
 0x7ff   : > { %v8669_v36 = vadd.f32 %v13687_v42, %v8632_v50  ;;  %v8633_v51 = vmul.f32 %v11154_v62, %v13682_v31  ;;  %v8517_v33 = vpop.f32.mrb[51].mxu0 }
 0x800   : > { %v8759_v54 = vadd.f32 %v8758_v47, %v8728_v41  ;;  %v8667_v35 = vadd.f32 %v13687_v42, %v8630_v8  ;;  %v8631_v27 = vmul.f32 %v13682_v31, %v8517_v33 }
 0x801   : > { %v8670_v21 = vadd.f32 %v13687_v42, %v8633_v51  ;;  %v8701_v18 = vadd.f32 %v8669_v36, %v13904_v12 }
 0x802   : > { %v8760_v48 = vadd.f32 %v8759_v54, %v8729_v39  ;;  %v8699_v26 = vadd.f32 %v8667_v35, %v13903_v3  ;;  %v8668_v15 = vadd.f32 %v13687_v42, %v8631_v27  ;;  %v13911_v35 = vld [vmem:[#allocation27_spill] sm:$0xff] }
 0x803   : > { %v8702_v9 = vadd.f32 %v8670_v21, %v13906_v16  ;;  %v8733_v11 = vmax.f32 %v8701_v18, 0.0 }
 0x804   : > { %v8731_v32 = vmax.f32 %v8699_v26, 0.0  ;;  %v8761_v10 = vadd.f32 %v8760_v48, %v8730_v40  ;;  %v8700_v52 = vadd.f32 %v8668_v15, %v13905_v24  ;;  %v11157_v1 = vpop.f32.mrb[52].mxu0  ;;  %v13912_v40 = vld [vmem:[#allocation26_spill] sm:$0xff]  ;;  %v13913_v15 = vld [vmem:[#allocation29_spill] sm:$0xff] }
 0x805   : > { %v8636_v2 = vmul.f32 %v11157_v1, %v13682_v31  ;;  %v8530_v53 = vpop.f32.mrb[53].mxu0  ;;  %v8734_v60 = vmax.f32 %v8702_v9, 0.0 }
 0x806   : > { %v8762_v38 = vadd.f32 %v8761_v10, %v8731_v32  ;;  %v8732_v0 = vmax.f32 %v8700_v52, 0.0  ;;  %v8634_v13 = vmul.f32 %v13682_v31, %v8530_v53  ;;  %v11158_v29 = vpop.f32.mrb[54].mxu0  ;;  %v13914_v32 = vld [vmem:[#allocation28_spill] sm:$0xff] }
 0x807   : > { %v8637_v63 = vmul.f32 %v11158_v29, %v13682_v31  ;;  %v8533_v57 = vpop.f32.mrb[55].mxu0  ;;  %v8673_v14 = vadd.f32 %v13687_v42, %v8636_v2 }
 0x808   : > { %v8763_v28 = vadd.f32 %v8762_v38, %v8732_v0  ;;  %v8671_v20 = vadd.f32 %v13687_v42, %v8634_v13  ;;  %v8635_v30 = vmul.f32 %v13682_v31, %v8533_v57 }
 0x809   : > { %v8674_v46 = vadd.f32 %v13687_v42, %v8637_v63  ;;  %v8705_v23 = vadd.f32 %v8673_v14, %v13908_v44  ;;  %v13915_v14 = vld [vmem:[#allocation30_spill] sm:$0xff] }
 0x80a   : > { %v8764_v22 = vadd.f32 %v8763_v28, %v8733_v11  ;;  %v8703_v17 = vadd.f32 %v8671_v20, %v13907_v19  ;;  %v8672_v7 = vadd.f32 %v13687_v42, %v8635_v30 }
 0x80b   : > { %v8706_v6 = vadd.f32 %v8674_v46, %v13910_v25  ;;  %v8737_v8 = vmax.f32 %v8705_v23, 0.0  ;;  %v13916_v46 = vld [vmem:[#allocation32_spill] sm:$0xff]  ;;  %v13917_v23 = vld [vmem:[#allocation31_spill] sm:$0xff] }
 0x80c   : > { %v8735_v55 = vmax.f32 %v8703_v17, 0.0  ;;  %v8765_v61 = vadd.f32 %v8764_v22, %v8734_v60  ;;  %v8704_v34 = vadd.f32 %v8672_v7, %v13909_v56  ;;  %v11161_v59 = vpop.f32.mrb[56].mxu0 }
 0x80d   : > { %v8640_v5 = vmul.f32 %v11161_v59, %v13682_v31  ;;  %v8546_v37 = vpop.f32.mrb[57].mxu0  ;;  %v8738_v39 = vmax.f32 %v8706_v6, 0.0 }
 0x80e   : > { %v8766_v43 = vadd.f32 %v8765_v61, %v8735_v55  ;;  %v8736_v50 = vmax.f32 %v8704_v34, 0.0  ;;  %v8638_v4 = vmul.f32 %v13682_v31, %v8546_v37  ;;  %v11162_v47 = vpop.f32.mrb[58].mxu0 }
 0x80f   : > { %v8677_v49 = vadd.f32 %v13687_v42, %v8640_v5  ;;  %v8641_v45 = vmul.f32 %v11162_v47, %v13682_v31  ;;  %v8549_v41 = vpop.f32.mrb[59].mxu0  ;;  %v8802_v47 = vld [vmem:[%s13840_s5] sm:$0x1] }
 0x810   : > { %v8767_v62 = vadd.f32 %v8766_v43, %v8736_v50  ;;  %v8675_v36 = vadd.f32 %v13687_v42, %v8638_v4  ;;  %v8639_v51 = vmul.f32 %v13682_v31, %v8549_v41 }
 0x811   : > { %v8678_v33 = vadd.f32 %v13687_v42, %v8641_v45  ;;  %v8709_v48 = vadd.f32 %v8677_v49, %v13912_v40 }
 0x812   : > { %v8768_v54 = vadd.f32 %v8767_v62, %v8737_v8  ;;  %v8707_v27 = vadd.f32 %v8675_v36, %v13911_v35  ;;  %v8676_v21 = vadd.f32 %v13687_v42, %v8639_v51 }
 0x813   : > { %v8710_v10 = vadd.f32 %v8678_v33, %v13914_v32  ;;  %v8741_v53 = vmax.f32 %v8709_v48, 0.0 }
 0x814   : > { %v8739_v3 = vmax.f32 %v8707_v27, 0.0  ;;  %v8769_v26 = vadd.f32 %v8768_v54, %v8738_v39  ;;  %v8708_v12 = vadd.f32 %v8676_v21, %v13913_v15  ;;  %v11165_v18 = vpop.f32.mrb[60].mxu0 }
 0x815   : > { %v8644_v24 = vmul.f32 %v11165_v18, %v13682_v31  ;;  %v8562_v52 = vpop.f32.mrb[61].mxu0  ;;  %v8742_v57 = vmax.f32 %v8710_v10, 0.0 }
 0x816   : > { %v8770_v1 = vadd.f32 %v8769_v26, %v8739_v3  ;;  %v8740_v16 = vmax.f32 %v8708_v12, 0.0  ;;  %v8642_v9 = vmul.f32 %v13682_v31, %v8562_v52  ;;  %v11166_v2 = vpop.f32.mrb[62].mxu0 }
 0x817   : > { %v8645_v38 = vmul.f32 %v11166_v2, %v13682_v31  ;;  %v8565_v0 = vpop.f32.mrb[63].mxu0  ;;  %v8681_v29 = vadd.f32 %v13687_v42, %v8644_v24 }
 0x818   : > { %v8771_v13 = vadd.f32 %v8770_v1, %v8740_v16  ;;  %v8679_v11 = vadd.f32 %v13687_v42, %v8642_v9  ;;  %v8643_v63 = vmul.f32 %v13682_v31, %v8565_v0 }
 0x819   : > { %v8682_v30 = vadd.f32 %v13687_v42, %v8645_v38  ;;  %v8713_v22 = vadd.f32 %v8681_v29, %v13122_v58 }
 0x81a   : > { %v8772_v28 = vadd.f32 %v8771_v13, %v8741_v53  ;;  %v8711_v20 = vadd.f32 %v8679_v11, %v13915_v14  ;;  %v8680_v60 = vadd.f32 %v13687_v42, %v8643_v63 }
 0x81b   : > { %v8714_v55 = vadd.f32 %v8682_v30, %v13917_v23  ;;  %v8745_v31 = vmax.f32 %v8713_v22, 0.0 }
 0x81c   : > { %v8743_v19 = vmax.f32 %v8711_v20, 0.0  ;;  %v8773_v17 = vadd.f32 %v8772_v28, %v8742_v57  ;;  %v8712_v7 = vadd.f32 %v8680_v60, %v13916_v46 }
 0x81d   : > { %v8746_v34 = vmax.f32 %v8714_v55, 0.0 }
 0x81e   : > { %v8774_v44 = vadd.f32 %v8773_v17, %v8743_v19  ;;  %v8744_v61 = vmax.f32 %v8712_v7, 0.0 }
 0x820   : > { %v8775_v56 = vadd.f32 %v8774_v44, %v8744_v61 }
 0x822   : > { %v8776_v59 = vadd.f32 %v8775_v56, %v8745_v31 }
 0x824   : > { %v8777_v5 = vadd.f32 %v8776_v59, %v8746_v34 }
 0x826   : > { %v8778_v37 = vrot.slane %v8777_v5, 4 }
 0x828   : > { %v8779_v43 = vadd.f32 %v8778_v37, %v8777_v5 }
 0x82a   : > { %v8780_v42 = vrot.slane %v8779_v43, 2 }
 0x82c   : > { %v8781_v25 = vadd.f32 %v8780_v42, %v8779_v43 }
 0x82e   : > { %v8782_v58 = vrot.slane %v8781_v25, 1 }
 0x830   : > { %v8783_v6 = vadd.f32 %v8782_v58, %v8781_v25 }
 0x832   : > { %v8784_v50 = vmul.f32 0.00390625, %v8783_v6 }
 0x834   : > { %v8785_v4 = vpack.c.bf16 %v8784_v50, %v8784_v50 }
 0x836   : > { %11184 = vmatmul.mubr.bf16.vlgmr.msra.gmra.mrb[64].mxu1 %v8785_v4 }
 0x909   : > { %v8885_v49 = vpop.f32.mrb[64].mxu1 }
 0x90a   : > { %v8886_v45 = vadd.f32 %v8885_v49, %v8802_v47  ;;  %v11185_v41 = vpop.f32.mrb[65].mxu1 }
 0x90b   : > { %v8888_v8 = vpop.f32.mrb[66].mxu1 }
 0x90c   : > { %8891 = vst [vmem:[%s258_s17] sm:$0x1] %v8886_v45  ;;  %v11186_v62 = vpop.f32.mrb[67].mxu1 }
 0x90d   : > { %12301 = shalt.err (!%p12298_p7)
}
 0x90e   : > { %s12302_s11 = scalar_lea.hbm %s13793_s26, 16  ;;  %s12306_s14 = scalar_lea.hbm %s13841_s6, 32 }
 0x90f   : > { %p12303_p8 = scmp.ne.s32.totalorder %s13793_s26, %s12302_s11  ;;  %p12307_p1 = scmp.lt.u32.totalorder %s13793_s26, %s13841_s6 }
 0x910   : > { %p12308_p0 = scmp.lt.u32.totalorder %s12306_s14, %s12302_s11  ;;  %p12310_p6 = scmp.lt.u32.totalorder %s12302_s11, %s13793_s26 }
 0x911   : > { %p12304_p11 = pnand %p12303_p8, %p13918_p9 }
 0x912   : > { %p12309_p5 = por %p12308_p0, %p12307_p1 }
 0x913   : > { %p12305_p13 = pneg %p12304_p11 }
 0x914   : > { %p12311_p10 = por %p12310_p6, %p12309_p5 }
 0x916   : > { %p12312_p12 = pnand %p12311_p10, %p12305_p13 }
 0x918   : > { %12315 = shalt.err (!%p12312_p12)
}
 0x919   : > { %11975 = dma.vmem_to_hbm [thread:$0]  (%p13918_p9), %s13795_s18, 16, %s13793_s26, %s8893_s28  }
 0x91a PF: > { %p11987_p2 = scmp.ge.s32.totalorder %s12354_s24, 2  ;;  %s8917_s17 = sand.u32 1, %s12342_s21  }
 0x91b   : > { %p13919_p3 = scmp.ne.s32.totalorder %s13868_s8, 0  ;;  %s8918_s19 = scalar_lea.sflag [#allocation7], %s8917_s17 }
 0x91d   : > { %p11982_p4 = pnand %p11987_p2, %p13919_p3 }
 0x91f   : > { %12337 = dma.done.wait (!%p11982_p4), %s8918_s19, 16  }
 0x920   : > { %12339 = vsyncadd (!%p11982_p4), %s8918_s19, 4294967280  ;;  %p17_p7 = scmp.ge.s32.totalorder %s12423_s27, 4   ;;  %s13920_s21 = smov %s12346_s22 }
 0x921   : > { %s13921_s22 = smov %s12350_s23  ;;  %s13922_s23 = smov %s12434_s30 }
 0x922   : > { %s13923_s24 = smov %s12423_s27  ;;  %19 = sbr.rel (!%p17_p7) target bundleno = 4 (0x4), region = 120 }
 0x929   :  { %8922 = vsyncpa [#allocation6], 1 }
 0x92a   :  { %8924 = vsyncpa [#allocation6 + $0x1], 1 }
 0x92b   :  { %8925 = vsyncpa [#allocation7], 1 }
 0x92c   :  { %8927 = vsyncpa [#allocation7 + $0x1], 1 }

</bundles_post_ra>
